<compile_context>
chip_gen: v7x
topology: tpu7x:2x2x1
jax: 0.10.0
libtpu: 0.0.40
codegen_flags: <defaults>
</compile_context>

<pallas_src>
import math
import functools

import jax
import jax.numpy as jnp
from jax.experimental import pallas as pl
from jax.experimental.pallas import tpu as pltpu

EPS = 1e-5
LANE = 128

_CPARAMS = pltpu.CompilerParams(
    dimension_semantics=("parallel",),      # all grids here are embarrassingly parallel
    vmem_limit_bytes=48 * 1024 * 1024,      # headroom below v7x's 64 MiB physical VMEM
)


def _round_up(x, m):
    return (x + m - 1) // m * m


# ----------------------------- Pallas kernels ------------------------------

def make_conv1_kernel(stride, Ho, Wo, has_sc):
    """conv1 (3x3, stride) [+ 1x1 shortcut conv] + per-channel partial BN stats.

    One grid step = one batch element.  Patches are formed on-chip from the phase
    planes (9 shifted bf16 matmuls, f32 accumulation)."""
    nph = stride * stride

    def kernel(*refs):
        ph_refs = refs[:nph]
        w1_ref = refs[nph]
        if has_sc:
            wsc_ref = refs[nph + 1]
            y1_ref, st1_ref, ysc_ref, stsc_ref = refs[nph + 2:]
        else:
            y1_ref, st1_ref = refs[nph + 1:]

        cout = y1_ref.shape[-1]
        m = Ho * Wo
        acc = jnp.zeros((m, cout), jnp.float32)
        acc_sc = None
        for kh in range(3):
            for kw in range(3):
                pref = ph_refs[(kh % stride) * stride + (kw % stride)]
                patch = pref[0,
                             kh // stride:kh // stride + Ho,
                             kw // stride:kw // stride + Wo, :]
                patch = patch.reshape(m, patch.shape[-1])          # (m, Cin_p) bf16
                acc = acc + jnp.dot(patch, w1_ref[kh, kw],
                                    preferred_element_type=jnp.float32)
                if has_sc and kh == 1 and kw == 1:
                    # The 1x1 stride-s shortcut conv reads exactly the center-tap patch.
                    acc_sc = jnp.dot(patch, wsc_ref[...],
                                     preferred_element_type=jnp.float32)

        y1_ref[0] = acc.reshape(Ho, Wo, cout)
        st1_ref[0, 0:1, :] = jnp.sum(acc, axis=0, keepdims=True)
        st1_ref[0, 1:2, :] = jnp.sum(acc * acc, axis=0, keepdims=True)
        if has_sc:
            ysc_ref[0] = acc_sc.reshape(Ho, Wo, cout)
            stsc_ref[0, 0:1, :] = jnp.sum(acc_sc, axis=0, keepdims=True)
            stsc_ref[0, 1:2, :] = jnp.sum(acc_sc * acc_sc, axis=0, keepdims=True)

    return kernel


def make_conv2_kernel(Ho, Wo):
    """BN1 (folded scale/shift) -> on-chip zero-pad -> conv2 (3x3, stride 1) + partial stats.

    h1 is never materialized in HBM: it is built in a VMEM scratch plane per image."""

    def kernel(y1_ref, s1_ref, b1_ref, w2_ref, y2_ref, st2_ref, hpad_ref):
        cp = y2_ref.shape[-1]
        h1 = y1_ref[0] * s1_ref[...] + b1_ref[...]          # (Ho, Wo, Cp) f32

        hpad_ref[...] = jnp.zeros_like(hpad_ref)            # zero halo
        hpad_ref[1:Ho + 1, 1:Wo + 1, :] = h1                # interior

        m = Ho * Wo
        acc = jnp.zeros((m, cp), jnp.float32)
        for kh in range(3):
            for kw in range(3):
                patch = hpad_ref[kh:kh + Ho, kw:kw + Wo, :]
                patch = patch.astype(jnp.bfloat16).reshape(m, cp)
                acc = acc + jnp.dot(patch, w2_ref[kh, kw],
                                    preferred_element_type=jnp.float32)

        y2_ref[0] = acc.reshape(Ho, Wo, cp)
        st2_ref[0, 0:1, :] = jnp.sum(acc, axis=0, keepdims=True)
        st2_ref[0, 1:2, :] = jnp.sum(acc * acc, axis=0, keepdims=True)

    return kernel


def make_epilogue_kernel(has_sc):
    """Apply BN2 (+BNsc), residual add, ReLU on (tm, Cp) lane-dense row tiles."""
    if has_sc:
        def kernel(y2_ref, ysc_ref, s2_ref, b2_ref, ssc_ref, bsc_ref, o_ref):
            bn2 = y2_ref[...] * s2_ref[...] + b2_ref[...]
            sc = ysc_ref[...] * ssc_ref[...] + bsc_ref[...]
            o_ref[...] = jnp.maximum(bn2 + sc, 0.0)
    else:
        def kernel(y2_ref, res_ref, s2_ref, b2_ref, o_ref):
            bn2 = y2_ref[...] * s2_ref[...] + b2_ref[...]
            o_ref[...] = jnp.maximum(bn2 + res_ref[...], 0.0)
    return kernel


# ------------------------------ JAX glue -----------------------------------

def _phase_split(x_cp, stride, Ho, Wo):
    """Pad spatially by 1, split into stride*stride phase planes (space-to-batch) so the
    kernel only needs contiguous slices.  Total data volume ~= the padded input (no 9x
    im2col blow-up).  Planes are bf16 (MXU operands)."""
    xp = jnp.pad(x_cp, ((0, 0), (1, 1), (1, 1), (0, 0)))
    Hph = Ho + 2 // stride
    Wph = Wo + 2 // stride
    phases = []
    for ph in range(stride):
        for pw in range(stride):
            sub = xp[:, ph::stride, pw::stride, :][:, :Hph, :Wph, :]
            dh = Hph - sub.shape[1]
            dw = Wph - sub.shape[2]
            if dh or dw:
                sub = jnp.pad(sub, ((0, 0), (0, dh), (0, dw), (0, 0)))
            phases.append(sub.astype(jnp.bfloat16))
    return phases, Hph, Wph


def _pack_w3x3(w_oihw, cin_p, cout_p):
    cout, cin, _, _ = w_oihw.shape
    w = jnp.transpose(w_oihw, (2, 3, 1, 0))                 # (3,3,cin,cout)
    w = jnp.pad(w, ((0, 0), (0, 0), (0, cin_p - cin), (0, cout_p - cout)))
    return w.astype(jnp.bfloat16)


def _pack_w1x1(w_oihw, cin_p, cout_p):
    cout, cin, _, _ = w_oihw.shape
    w = jnp.transpose(w_oihw[:, :, 0, 0], (1, 0))           # (cin, cout)
    w = jnp.pad(w, ((0, cin_p - cin), (0, cout_p - cout)))
    return w.astype(jnp.bfloat16)


def _bn_fold(stats, gamma, beta, count, cpad):
    """Per-grid-step partial (sum, sum_sq) -> global BN scale/shift (f32, channel-padded)."""
    s = jnp.sum(stats[:, 0, :], axis=0)
    ss = jnp.sum(stats[:, 1, :], axis=0)
    mean = s / count
    var = jnp.maximum(ss / count - mean * mean, 0.0)        # biased var, like PyTorch
    g = jnp.pad(gamma.astype(jnp.float32), (0, cpad - gamma.shape[0]))
    b = jnp.pad(beta.astype(jnp.float32), (0, cpad - beta.shape[0]))
    scale = g * jax.lax.rsqrt(var + EPS)
    shift = b - mean * scale
    return scale, shift


def init_resblock_params(key, inchannel, outchannel, stride=1):
    ks = jax.random.split(key, 9)

    def conv_w(k, cout, cin, ksz):
        fan_in = cin * ksz * ksz
        bound = 1.0 / math.sqrt(fan_in)
        return jax.random.uniform(k, (cout, cin, ksz, ksz), jnp.float32, -bound, bound)

    p = {
        "w1": conv_w(ks[0], outchannel, inchannel, 3),
        "g1": jax.random.uniform(ks[1], (outchannel,), jnp.float32, 0.5, 1.5),
        "b1": jax.random.uniform(ks[2], (outchannel,), jnp.float32, -0.5, 0.5),
        "w2": conv_w(ks[3], outchannel, outchannel, 3),
        "g2": jax.random.uniform(ks[4], (outchannel,), jnp.float32, 0.5, 1.5),
        "b2": jax.random.uniform(ks[5], (outchannel,), jnp.float32, -0.5, 0.5),
    }
    if stride != 1 or inchannel != outchannel:
        p["wsc"] = conv_w(ks[6], outchannel, inchannel, 1)
        p["gsc"] = jax.random.uniform(ks[7], (outchannel,), jnp.float32, 0.5, 1.5)
        p["bsc"] = jax.random.uniform(ks[8], (outchannel,), jnp.float32, -0.5, 0.5)
    return p


@functools.partial(jax.jit, static_argnames=("stride",))
def resblock_forward(params, x_nchw, stride=1):
    N, Cin, H, W = x_nchw.shape
    Cout = params["w1"].shape[0]
    cin_p = _round_up(Cin, LANE)
    cout_p = _round_up(Cout, LANE)
    has_sc = "wsc" in params

    Ho = (H + 2 - 3) // stride + 1
    Wo = (W + 2 - 3) // stride + 1
    M = N * Ho * Wo

    x = jnp.transpose(x_nchw.astype(jnp.float32), (0, 2, 3, 1))       # NHWC
    x_cp = jnp.pad(x, ((0, 0), (0, 0), (0, 0), (0, cin_p - Cin)))     # lane-pad channels

    phases, Hph, Wph = _phase_split(x_cp, stride, Ho, Wo)
    w1 = _pack_w3x3(params["w1"], cin_p, cout_p)
    w2 = _pack_w3x3(params["w2"], cout_p, cout_p)

    # ---- pass 1: conv1 (+ 1x1 shortcut conv), per image, partial BN stats ----
    plane_in = pl.BlockSpec((1, Hph, Wph, cin_p), lambda n: (n, 0, 0, 0))
    w3_spec = pl.BlockSpec((3, 3, cin_p, cout_p), lambda n: (0, 0, 0, 0))
    plane_out = pl.BlockSpec((1, Ho, Wo, cout_p), lambda n: (n, 0, 0, 0))
    stat_out = pl.BlockSpec((1, 2, cout_p), lambda n: (n, 0, 0))

    in_specs = [plane_in] * len(phases) + [w3_spec]
    args = list(phases) + [w1]
    out_shape = [jax.ShapeDtypeStruct((N, Ho, Wo, cout_p), jnp.float32),
                 jax.ShapeDtypeStruct((N, 2, cout_p), jnp.float32)]
    out_specs = [plane_out, stat_out]
    if has_sc:
        in_specs.append(pl.BlockSpec((cin_p, cout_p), lambda n: (0, 0)))
        args.append(_pack_w1x1(params["wsc"], cin_p, cout_p))
        out_shape += [jax.ShapeDtypeStruct((N, Ho, Wo, cout_p), jnp.float32),
                      jax.ShapeDtypeStruct((N, 2, cout_p), jnp.float32)]
        out_specs += [plane_out, stat_out]

    outs = pl.pallas_call(
        make_conv1_kernel(stride, Ho, Wo, has_sc),
        grid=(N,),
        in_specs=in_specs,
        out_specs=tuple(out_specs),
        out_shape=tuple(out_shape),
        compiler_params=_CPARAMS,
    )(*args)
    if has_sc:
        y1, st1, ysc, stsc = outs
    else:
        y1, st1 = outs

    scale1, shift1 = _bn_fold(st1, params["g1"], params["b1"], M, cout_p)

    # ---- pass 2: BN1-apply + conv2, per image, partial BN stats (h1 never hits HBM) ----
    cvec3 = pl.BlockSpec((1, 1, cout_p), lambda n: (0, 0, 0))
    y2, st2 = pl.pallas_call(
        make_conv2_kernel(Ho, Wo),
        grid=(N,),
        in_specs=(pl.BlockSpec((1, Ho, Wo, cout_p), lambda n: (n, 0, 0, 0)),
                  cvec3, cvec3,
                  pl.BlockSpec((3, 3, cout_p, cout_p), lambda n: (0, 0, 0, 0))),
        out_specs=(plane_out, stat_out),
        out_shape=(jax.ShapeDtypeStruct((N, Ho, Wo, cout_p), jnp.float32),
                   jax.ShapeDtypeStruct((N, 2, cout_p), jnp.float32)),
        scratch_shapes=[pltpu.VMEM((Ho + 2, Wo + 2, cout_p), jnp.float32)],
        compiler_params=_CPARAMS,
    )(y1, scale1.reshape(1, 1, cout_p), shift1.reshape(1, 1, cout_p), w2)

    scale2, shift2 = _bn_fold(st2, params["g2"], params["b2"], M, cout_p)

    # ---- pass 3: BN2 (+BNsc), residual add, ReLU; M-row tiling (lane-dense output) ----
    y2r = y2.reshape(M, cout_p)
    if has_sc:
        scalesc, shiftsc = _bn_fold(stsc, params["gsc"], params["bsc"], M, cout_p)
        resr = ysc.reshape(M, cout_p)
    else:
        resr = x_cp.reshape(M, cout_p)       # identity shortcut: stride==1, cin_p==cout_p

    tm = min(1024, _round_up(M, 8))
    Mp = _round_up(M, tm)
    if Mp != M:
        y2r = jnp.pad(y2r, ((0, Mp - M), (0, 0)))
        resr = jnp.pad(resr, ((0, Mp - M), (0, 0)))

    row_spec = pl.BlockSpec((tm, cout_p), lambda i: (i, 0))
    vec_spec = pl.BlockSpec((1, cout_p), lambda i: (0, 0))
    if has_sc:
        ep_args = (y2r, resr, scale2.reshape(1, -1), shift2.reshape(1, -1),
                   scalesc.reshape(1, -1), shiftsc.reshape(1, -1))
        ep_specs = (row_spec, row_spec, vec_spec, vec_spec, vec_spec, vec_spec)
    else:
        ep_args = (y2r, resr, scale2.reshape(1, -1), shift2.reshape(1, -1))
        ep_specs = (row_spec, row_spec, vec_spec, vec_spec)

    out = pl.pallas_call(
        make_epilogue_kernel(has_sc),
        grid=(Mp // tm,),
        in_specs=ep_specs,
        out_specs=row_spec,
        out_shape=jax.ShapeDtypeStruct((Mp, cout_p), jnp.float32),
        compiler_params=_CPARAMS,
    )(*ep_args)

    out = out[:M].reshape(N, Ho, Wo, cout_p)[:, :, :, :Cout]
    return jnp.transpose(out, (0, 3, 1, 2))                           # back to NCHW


# ------------------------- pure-JAX reference ------------------------------

def resblock_reference(params, x_nchw, stride=1):
    x = x_nchw.astype(jnp.float32)

    def conv(inp, w, s, pad):
        return jax.lax.conv_general_dilated(
            inp, w, window_strides=(s, s), padding=[(pad, pad), (pad, pad)],
            dimension_numbers=("NCHW", "OIHW", "NCHW"),
            precision=jax.lax.Precision.HIGHEST)

    def bn(y, g, b):
        mean = jnp.mean(y, axis=(0, 2, 3), keepdims=True)
        var = jnp.mean((y - mean) ** 2, axis=(0, 2, 3), keepdims=True)
        return ((y - mean) * jax.lax.rsqrt(var + EPS) * g.reshape(1, -1, 1, 1)
                + b.reshape(1, -1, 1, 1))

    out = bn(conv(x, params["w1"], stride, 1), params["g1"], params["b1"])
    out = bn(conv(out, params["w2"], 1, 1), params["g2"], params["b2"])
    if "wsc" in params:
        sc = bn(conv(x, params["wsc"], stride, 0), params["gsc"], params["bsc"])
    else:
        sc = x
    return jax.nn.relu(out + sc)


def _check(y, ref):
    # Kernel uses native bf16 MXU operands vs the f32/HIGHEST reference, so compare with
    # a tolerance relative to the overall activation scale.
    err = float(jnp.max(jnp.abs(y - ref)))
    tol = 2e-2 * (1.0 + float(jnp.max(jnp.abs(ref))))
    assert err <= tol, (err, tol)


# --------------------------------- main -------------------------------------

if __name__ == "__main__":
    key = jax.random.PRNGKey(0)
    k_x1, k_p1, k_x2, k_p2 = jax.random.split(key, 4)

    # Case 1: downsampling block (stride=2, inchannel != outchannel -> conv shortcut)
    in_c, out_c, stride = 4, 8, 2
    x1 = jax.random.normal(k_x1, (2, in_c, 16, 16), jnp.float32)
    params1 = init_resblock_params(k_p1, in_c, out_c, stride)
    y1 = jax.block_until_ready(resblock_forward(params1, x1, stride=stride))
    assert y1.shape == (2, out_c, 8, 8), y1.shape
    _check(y1, resblock_reference(params1, x1, stride=stride))

    # Case 2: identity-shortcut block (stride=1, inchannel == outchannel)
    x2 = jax.random.normal(k_x2, (2, 8, 16, 16), jnp.float32)
    params2 = init_resblock_params(k_p2, 8, 8, 1)
    y2 = jax.block_until_ready(resblock_forward(params2, x2, stride=1))
    assert y2.shape == (2, 8, 16, 16), y2.shape
    _check(y2, resblock_reference(params2, x2, stride=1))

    print("KERNEL_OK")
</pallas_src>

<mosaic_0001>
module attributes {stable_mosaic.version = 11 : i64} {
  func.func @kernel(%arg0: i32, %arg1: memref<1x9x9x128xbf16, #tpu.memory_space<vmem>>, %arg2: memref<1x9x9x128xbf16, #tpu.memory_space<vmem>>, %arg3: memref<1x9x9x128xbf16, #tpu.memory_space<vmem>>, %arg4: memref<1x9x9x128xbf16, #tpu.memory_space<vmem>>, %arg5: memref<3x3x128x128xbf16, #tpu.memory_space<vmem>>, %arg6: memref<128x128xbf16, #tpu.memory_space<vmem>>, %arg7: memref<1x8x8x128xf32, #tpu.memory_space<vmem>>, %arg8: memref<1x2x128xf32, #tpu.memory_space<vmem>>, %arg9: memref<1x8x8x128xf32, #tpu.memory_space<vmem>>, %arg10: memref<1x2x128xf32, #tpu.memory_space<vmem>>) attributes {dimension_semantics = [#tpu.dimension_semantics<parallel>], iteration_bounds = array<i64: 2>, scalar_prefetch = 0 : i64, scratch_operands = 0 : i64, tpu.core_type = #tpu.core_type<tc>, window_params = [{transform_indices = @transform_0, window_bounds = array<i64: 1, 9, 9, 128>}, {transform_indices = @transform_1, window_bounds = array<i64: 1, 9, 9, 128>}, {transform_indices = @transform_2, window_bounds = array<i64: 1, 9, 9, 128>}, {transform_indices = @transform_3, window_bounds = array<i64: 1, 9, 9, 128>}, {pipeline_mode = #tpu.pipeline_mode<synchronous>, transform_indices = @transform_4, window_bounds = array<i64: 3, 3, 128, 128>}, {pipeline_mode = #tpu.pipeline_mode<synchronous>, transform_indices = @transform_5, window_bounds = array<i64: 128, 128>}, {transform_indices = @transform_6, window_bounds = array<i64: 1, 8, 8, 128>}, {transform_indices = @transform_7, window_bounds = array<i64: 1, 2, 128>}, {transform_indices = @transform_8, window_bounds = array<i64: 1, 8, 8, 128>}, {transform_indices = @transform_9, window_bounds = array<i64: 1, 2, 128>}]} {
    %cst = arith.constant 0.000000e+00 : f32
    %0 = vector.broadcast %cst : f32 to vector<64x128xf32>
    %c0 = arith.constant 0 : index
    %c0_0 = arith.constant 0 : index
    %c0_1 = arith.constant 0 : index
    %c0_2 = arith.constant 0 : index
    %1 = vector.load %arg1[%c0, %c0_0, %c0_1, %c0_2] : memref<1x9x9x128xbf16, #tpu.memory_space<vmem>>, vector<1x8x8x128xbf16>
    %2 = vector.shape_cast %1 : vector<1x8x8x128xbf16> to vector<8x8x128xbf16>
    %3 = vector.shape_cast %2 : vector<8x8x128xbf16> to vector<64x128xbf16>
    %c0_3 = arith.constant 0 : index
    %c0_4 = arith.constant 0 : index
    %c0_5 = arith.constant 0 : index
    %c0_6 = arith.constant 0 : index
    %4 = vector.load %arg5[%c0_3, %c0_4, %c0_5, %c0_6] : memref<3x3x128x128xbf16, #tpu.memory_space<vmem>>, vector<1x1x128x128xbf16>
    %5 = vector.shape_cast %4 : vector<1x1x128x128xbf16> to vector<128x128xbf16>
    %cst_7 = arith.constant dense<0.000000e+00> : vector<64x128xf32>
    %6 = tpu.matmul %3, %5, %cst_7 {dimension_numbers = #tpu.dot_dimension_numbers<[1], [0], [0], [1], [0, 0, 1, 1], [], []>} : vector<64x128xbf16>, vector<128x128xbf16>, vector<64x128xf32> -> vector<64x128xf32>
    %7 = arith.addf %0, %6 : vector<64x128xf32>
    %c0_8 = arith.constant 0 : index
    %c0_9 = arith.constant 0 : index
    %c0_10 = arith.constant 0 : index
    %c0_11 = arith.constant 0 : index
    %8 = vector.load %arg2[%c0_8, %c0_9, %c0_10, %c0_11] : memref<1x9x9x128xbf16, #tpu.memory_space<vmem>>, vector<1x8x8x128xbf16>
    %9 = vector.shape_cast %8 : vector<1x8x8x128xbf16> to vector<8x8x128xbf16>
    %10 = vector.shape_cast %9 : vector<8x8x128xbf16> to vector<64x128xbf16>
    %c0_12 = arith.constant 0 : index
    %c1 = arith.constant 1 : index
    %c0_13 = arith.constant 0 : index
    %c0_14 = arith.constant 0 : index
    %11 = vector.load %arg5[%c0_12, %c1, %c0_13, %c0_14] : memref<3x3x128x128xbf16, #tpu.memory_space<vmem>>, vector<1x1x128x128xbf16>
    %12 = vector.shape_cast %11 : vector<1x1x128x128xbf16> to vector<128x128xbf16>
    %cst_15 = arith.constant dense<0.000000e+00> : vector<64x128xf32>
    %13 = tpu.matmul %10, %12, %cst_15 {dimension_numbers = #tpu.dot_dimension_numbers<[1], [0], [0], [1], [0, 0, 1, 1], [], []>} : vector<64x128xbf16>, vector<128x128xbf16>, vector<64x128xf32> -> vector<64x128xf32>
    %14 = arith.addf %7, %13 : vector<64x128xf32>
    %c0_16 = arith.constant 0 : index
    %c0_17 = arith.constant 0 : index
    %c1_18 = arith.constant 1 : index
    %c0_19 = arith.constant 0 : index
    %15 = vector.load %arg1[%c0_16, %c0_17, %c1_18, %c0_19] : memref<1x9x9x128xbf16, #tpu.memory_space<vmem>>, vector<1x8x8x128xbf16>
    %16 = vector.shape_cast %15 : vector<1x8x8x128xbf16> to vector<8x8x128xbf16>
    %17 = vector.shape_cast %16 : vector<8x8x128xbf16> to vector<64x128xbf16>
    %c0_20 = arith.constant 0 : index
    %c2 = arith.constant 2 : index
    %c0_21 = arith.constant 0 : index
    %c0_22 = arith.constant 0 : index
    %18 = vector.load %arg5[%c0_20, %c2, %c0_21, %c0_22] : memref<3x3x128x128xbf16, #tpu.memory_space<vmem>>, vector<1x1x128x128xbf16>
    %19 = vector.shape_cast %18 : vector<1x1x128x128xbf16> to vector<128x128xbf16>
    %cst_23 = arith.constant dense<0.000000e+00> : vector<64x128xf32>
    %20 = tpu.matmul %17, %19, %cst_23 {dimension_numbers = #tpu.dot_dimension_numbers<[1], [0], [0], [1], [0, 0, 1, 1], [], []>} : vector<64x128xbf16>, vector<128x128xbf16>, vector<64x128xf32> -> vector<64x128xf32>
    %21 = arith.addf %14, %20 : vector<64x128xf32>
    %c0_24 = arith.constant 0 : index
    %c0_25 = arith.constant 0 : index
    %c0_26 = arith.constant 0 : index
    %c0_27 = arith.constant 0 : index
    %22 = vector.load %arg3[%c0_24, %c0_25, %c0_26, %c0_27] : memref<1x9x9x128xbf16, #tpu.memory_space<vmem>>, vector<1x8x8x128xbf16>
    %23 = vector.shape_cast %22 : vector<1x8x8x128xbf16> to vector<8x8x128xbf16>
    %24 = vector.shape_cast %23 : vector<8x8x128xbf16> to vector<64x128xbf16>
    %c1_28 = arith.constant 1 : index
    %c0_29 = arith.constant 0 : index
    %c0_30 = arith.constant 0 : index
    %c0_31 = arith.constant 0 : index
    %25 = vector.load %arg5[%c1_28, %c0_29, %c0_30, %c0_31] : memref<3x3x128x128xbf16, #tpu.memory_space<vmem>>, vector<1x1x128x128xbf16>
    %26 = vector.shape_cast %25 : vector<1x1x128x128xbf16> to vector<128x128xbf16>
    %cst_32 = arith.constant dense<0.000000e+00> : vector<64x128xf32>
    %27 = tpu.matmul %24, %26, %cst_32 {dimension_numbers = #tpu.dot_dimension_numbers<[1], [0], [0], [1], [0, 0, 1, 1], [], []>} : vector<64x128xbf16>, vector<128x128xbf16>, vector<64x128xf32> -> vector<64x128xf32>
    %28 = arith.addf %21, %27 : vector<64x128xf32>
    %c0_33 = arith.constant 0 : index
    %c0_34 = arith.constant 0 : index
    %c0_35 = arith.constant 0 : index
    %c0_36 = arith.constant 0 : index
    %29 = vector.load %arg4[%c0_33, %c0_34, %c0_35, %c0_36] : memref<1x9x9x128xbf16, #tpu.memory_space<vmem>>, vector<1x8x8x128xbf16>
    %30 = vector.shape_cast %29 : vector<1x8x8x128xbf16> to vector<8x8x128xbf16>
    %31 = vector.shape_cast %30 : vector<8x8x128xbf16> to vector<64x128xbf16>
    %c1_37 = arith.constant 1 : index
    %c1_38 = arith.constant 1 : index
    %c0_39 = arith.constant 0 : index
    %c0_40 = arith.constant 0 : index
    %32 = vector.load %arg5[%c1_37, %c1_38, %c0_39, %c0_40] : memref<3x3x128x128xbf16, #tpu.memory_space<vmem>>, vector<1x1x128x128xbf16>
    %33 = vector.shape_cast %32 : vector<1x1x128x128xbf16> to vector<128x128xbf16>
    %cst_41 = arith.constant dense<0.000000e+00> : vector<64x128xf32>
    %34 = tpu.matmul %31, %33, %cst_41 {dimension_numbers = #tpu.dot_dimension_numbers<[1], [0], [0], [1], [0, 0, 1, 1], [], []>} : vector<64x128xbf16>, vector<128x128xbf16>, vector<64x128xf32> -> vector<64x128xf32>
    %35 = arith.addf %28, %34 : vector<64x128xf32>
    %c0_42 = arith.constant 0 : index
    %c0_43 = arith.constant 0 : index
    %36 = vector.load %arg6[%c0_42, %c0_43] : memref<128x128xbf16, #tpu.memory_space<vmem>>, vector<128x128xbf16>
    %cst_44 = arith.constant dense<0.000000e+00> : vector<64x128xf32>
    %37 = tpu.matmul %31, %36, %cst_44 {dimension_numbers = #tpu.dot_dimension_numbers<[1], [0], [0], [1], [0, 0, 1, 1], [], []>} : vector<64x128xbf16>, vector<128x128xbf16>, vector<64x128xf32> -> vector<64x128xf32>
    %c0_45 = arith.constant 0 : index
    %c0_46 = arith.constant 0 : index
    %c1_47 = arith.constant 1 : index
    %c0_48 = arith.constant 0 : index
    %38 = vector.load %arg3[%c0_45, %c0_46, %c1_47, %c0_48] : memref<1x9x9x128xbf16, #tpu.memory_space<vmem>>, vector<1x8x8x128xbf16>
    %39 = vector.shape_cast %38 : vector<1x8x8x128xbf16> to vector<8x8x128xbf16>
    %40 = vector.shape_cast %39 : vector<8x8x128xbf16> to vector<64x128xbf16>
    %c1_49 = arith.constant 1 : index
    %c2_50 = arith.constant 2 : index
    %c0_51 = arith.constant 0 : index
    %c0_52 = arith.constant 0 : index
    %41 = vector.load %arg5[%c1_49, %c2_50, %c0_51, %c0_52] : memref<3x3x128x128xbf16, #tpu.memory_space<vmem>>, vector<1x1x128x128xbf16>
    %42 = vector.shape_cast %41 : vector<1x1x128x128xbf16> to vector<128x128xbf16>
    %cst_53 = arith.constant dense<0.000000e+00> : vector<64x128xf32>
    %43 = tpu.matmul %40, %42, %cst_53 {dimension_numbers = #tpu.dot_dimension_numbers<[1], [0], [0], [1], [0, 0, 1, 1], [], []>} : vector<64x128xbf16>, vector<128x128xbf16>, vector<64x128xf32> -> vector<64x128xf32>
    %44 = arith.addf %35, %43 : vector<64x128xf32>
    %c0_54 = arith.constant 0 : index
    %c1_55 = arith.constant 1 : index
    %c0_56 = arith.constant 0 : index
    %c0_57 = arith.constant 0 : index
    %45 = vector.load %arg1[%c0_54, %c1_55, %c0_56, %c0_57] : memref<1x9x9x128xbf16, #tpu.memory_space<vmem>>, vector<1x8x8x128xbf16>
    %46 = vector.shape_cast %45 : vector<1x8x8x128xbf16> to vector<8x8x128xbf16>
    %47 = vector.shape_cast %46 : vector<8x8x128xbf16> to vector<64x128xbf16>
    %c2_58 = arith.constant 2 : index
    %c0_59 = arith.constant 0 : index
    %c0_60 = arith.constant 0 : index
    %c0_61 = arith.constant 0 : index
    %48 = vector.load %arg5[%c2_58, %c0_59, %c0_60, %c0_61] : memref<3x3x128x128xbf16, #tpu.memory_space<vmem>>, vector<1x1x128x128xbf16>
    %49 = vector.shape_cast %48 : vector<1x1x128x128xbf16> to vector<128x128xbf16>
    %cst_62 = arith.constant dense<0.000000e+00> : vector<64x128xf32>
    %50 = tpu.matmul %47, %49, %cst_62 {dimension_numbers = #tpu.dot_dimension_numbers<[1], [0], [0], [1], [0, 0, 1, 1], [], []>} : vector<64x128xbf16>, vector<128x128xbf16>, vector<64x128xf32> -> vector<64x128xf32>
    %51 = arith.addf %44, %50 : vector<64x128xf32>
    %c0_63 = arith.constant 0 : index
    %c1_64 = arith.constant 1 : index
    %c0_65 = arith.constant 0 : index
    %c0_66 = arith.constant 0 : index
    %52 = vector.load %arg2[%c0_63, %c1_64, %c0_65, %c0_66] : memref<1x9x9x128xbf16, #tpu.memory_space<vmem>>, vector<1x8x8x128xbf16>
    %53 = vector.shape_cast %52 : vector<1x8x8x128xbf16> to vector<8x8x128xbf16>
    %54 = vector.shape_cast %53 : vector<8x8x128xbf16> to vector<64x128xbf16>
    %c2_67 = arith.constant 2 : index
    %c1_68 = arith.constant 1 : index
    %c0_69 = arith.constant 0 : index
    %c0_70 = arith.constant 0 : index
    %55 = vector.load %arg5[%c2_67, %c1_68, %c0_69, %c0_70] : memref<3x3x128x128xbf16, #tpu.memory_space<vmem>>, vector<1x1x128x128xbf16>
    %56 = vector.shape_cast %55 : vector<1x1x128x128xbf16> to vector<128x128xbf16>
    %cst_71 = arith.constant dense<0.000000e+00> : vector<64x128xf32>
    %57 = tpu.matmul %54, %56, %cst_71 {dimension_numbers = #tpu.dot_dimension_numbers<[1], [0], [0], [1], [0, 0, 1, 1], [], []>} : vector<64x128xbf16>, vector<128x128xbf16>, vector<64x128xf32> -> vector<64x128xf32>
    %58 = arith.addf %51, %57 : vector<64x128xf32>
    %c0_72 = arith.constant 0 : index
    %c1_73 = arith.constant 1 : index
    %c1_74 = arith.constant 1 : index
    %c0_75 = arith.constant 0 : index
    %59 = vector.load %arg1[%c0_72, %c1_73, %c1_74, %c0_75] : memref<1x9x9x128xbf16, #tpu.memory_space<vmem>>, vector<1x8x8x128xbf16>
    %60 = vector.shape_cast %59 : vector<1x8x8x128xbf16> to vector<8x8x128xbf16>
    %61 = vector.shape_cast %60 : vector<8x8x128xbf16> to vector<64x128xbf16>
    %c2_76 = arith.constant 2 : index
    %c2_77 = arith.constant 2 : index
    %c0_78 = arith.constant 0 : index
    %c0_79 = arith.constant 0 : index
    %62 = vector.load %arg5[%c2_76, %c2_77, %c0_78, %c0_79] : memref<3x3x128x128xbf16, #tpu.memory_space<vmem>>, vector<1x1x128x128xbf16>
    %63 = vector.shape_cast %62 : vector<1x1x128x128xbf16> to vector<128x128xbf16>
    %cst_80 = arith.constant dense<0.000000e+00> : vector<64x128xf32>
    %64 = tpu.matmul %61, %63, %cst_80 {dimension_numbers = #tpu.dot_dimension_numbers<[1], [0], [0], [1], [0, 0, 1, 1], [], []>} : vector<64x128xbf16>, vector<128x128xbf16>, vector<64x128xf32> -> vector<64x128xf32>
    %65 = arith.addf %58, %64 : vector<64x128xf32>
    %66 = vector.shape_cast %65 : vector<64x128xf32> to vector<8x8x128xf32>
    %c0_81 = arith.constant 0 : index
    %c0_82 = arith.constant 0 : index
    %c0_83 = arith.constant 0 : index
    %c0_84 = arith.constant 0 : index
    %67 = vector.load %arg7[%c0_81, %c0_82, %c0_83, %c0_84] : memref<1x8x8x128xf32, #tpu.memory_space<vmem>>, vector<1x8x8x128xf32>
    %68 = vector.shape_cast %67 : vector<1x8x8x128xf32> to vector<8x8x128xf32>
    %69 = vector.shape_cast %66 : vector<8x8x128xf32> to vector<1x8x8x128xf32>
    tpu.vector_store %arg7[%c0_81, %c0_82, %c0_83, %c0_84], %69 {strides = array<i32>} : memref<1x8x8x128xf32, #tpu.memory_space<vmem>>, vector<1x8x8x128xf32>,
    %cst_85 = arith.constant dense<0.000000e+00> : vector<128xf32>
    %70 = vector.multi_reduction <add>, %65, %cst_85 [0] : vector<64x128xf32> to vector<128xf32>
    %71 = vector.shape_cast %70 : vector<128xf32> to vector<1x128xf32>
    %c0_86 = arith.constant 0 : index
    %c0_87 = arith.constant 0 : index
    %c0_88 = arith.constant 0 : index
    %72 = vector.load %arg8[%c0_86, %c0_87, %c0_88] : memref<1x2x128xf32, #tpu.memory_space<vmem>>, vector<1x1x128xf32>
    %73 = vector.shape_cast %72 : vector<1x1x128xf32> to vector<1x128xf32>
    %74 = vector.shape_cast %71 : vector<1x128xf32> to vector<1x1x128xf32>
    tpu.vector_store %arg8[%c0_86, %c0_87, %c0_88], %74 {strides = array<i32>} : memref<1x2x128xf32, #tpu.memory_space<vmem>>, vector<1x1x128xf32>,
    %75 = arith.mulf %65, %65 : vector<64x128xf32>
    %cst_89 = arith.constant dense<0.000000e+00> : vector<128xf32>
    %76 = vector.multi_reduction <add>, %75, %cst_89 [0] : vector<64x128xf32> to vector<128xf32>
    %77 = vector.shape_cast %76 : vector<128xf32> to vector<1x128xf32>
    %c0_90 = arith.constant 0 : index
    %c1_91 = arith.constant 1 : index
    %c0_92 = arith.constant 0 : index
    %78 = vector.load %arg8[%c0_90, %c1_91, %c0_92] : memref<1x2x128xf32, #tpu.memory_space<vmem>>, vector<1x1x128xf32>
    %79 = vector.shape_cast %78 : vector<1x1x128xf32> to vector<1x128xf32>
    %80 = vector.shape_cast %77 : vector<1x128xf32> to vector<1x1x128xf32>
    tpu.vector_store %arg8[%c0_90, %c1_91, %c0_92], %80 {strides = array<i32>} : memref<1x2x128xf32, #tpu.memory_space<vmem>>, vector<1x1x128xf32>,
    %81 = vector.shape_cast %37 : vector<64x128xf32> to vector<8x8x128xf32>
    %c0_93 = arith.constant 0 : index
    %c0_94 = arith.constant 0 : index
    %c0_95 = arith.constant 0 : index
    %c0_96 = arith.constant 0 : index
    %82 = vector.load %arg9[%c0_93, %c0_94, %c0_95, %c0_96] : memref<1x8x8x128xf32, #tpu.memory_space<vmem>>, vector<1x8x8x128xf32>
    %83 = vector.shape_cast %82 : vector<1x8x8x128xf32> to vector<8x8x128xf32>
    %84 = vector.shape_cast %81 : vector<8x8x128xf32> to vector<1x8x8x128xf32>
    tpu.vector_store %arg9[%c0_93, %c0_94, %c0_95, %c0_96], %84 {strides = array<i32>} : memref<1x8x8x128xf32, #tpu.memory_space<vmem>>, vector<1x8x8x128xf32>,
    %cst_97 = arith.constant dense<0.000000e+00> : vector<128xf32>
    %85 = vector.multi_reduction <add>, %37, %cst_97 [0] : vector<64x128xf32> to vector<128xf32>
    %86 = vector.shape_cast %85 : vector<128xf32> to vector<1x128xf32>
    %c0_98 = arith.constant 0 : index
    %c0_99 = arith.constant 0 : index
    %c0_100 = arith.constant 0 : index
    %87 = vector.load %arg10[%c0_98, %c0_99, %c0_100] : memref<1x2x128xf32, #tpu.memory_space<vmem>>, vector<1x1x128xf32>
    %88 = vector.shape_cast %87 : vector<1x1x128xf32> to vector<1x128xf32>
    %89 = vector.shape_cast %86 : vector<1x128xf32> to vector<1x1x128xf32>
    tpu.vector_store %arg10[%c0_98, %c0_99, %c0_100], %89 {strides = array<i32>} : memref<1x2x128xf32, #tpu.memory_space<vmem>>, vector<1x1x128xf32>,
    %90 = arith.mulf %37, %37 : vector<64x128xf32>
    %cst_101 = arith.constant dense<0.000000e+00> : vector<128xf32>
    %91 = vector.multi_reduction <add>, %90, %cst_101 [0] : vector<64x128xf32> to vector<128xf32>
    %92 = vector.shape_cast %91 : vector<128xf32> to vector<1x128xf32>
    %c0_102 = arith.constant 0 : index
    %c1_103 = arith.constant 1 : index
    %c0_104 = arith.constant 0 : index
    %93 = vector.load %arg10[%c0_102, %c1_103, %c0_104] : memref<1x2x128xf32, #tpu.memory_space<vmem>>, vector<1x1x128xf32>
    %94 = vector.shape_cast %93 : vector<1x1x128xf32> to vector<1x128xf32>
    %95 = vector.shape_cast %92 : vector<1x128xf32> to vector<1x1x128xf32>
    tpu.vector_store %arg10[%c0_102, %c1_103, %c0_104], %95 {strides = array<i32>} : memref<1x2x128xf32, #tpu.memory_space<vmem>>, vector<1x1x128xf32>,
    return
  }
  func.func @transform_0(%arg0: i32) -> (i32, i32, i32, i32) {
    %c0_i32 = arith.constant 0 : i32
    %c0_i32_0 = arith.constant 0 : i32
    %c0_i32_1 = arith.constant 0 : i32
    %c0_i32_2 = arith.constant 0 : i32
    return %arg0, %c0_i32, %c0_i32_0, %c0_i32_1 : i32, i32, i32, i32
  }
  func.func @transform_1(%arg0: i32) -> (i32, i32, i32, i32) {
    %c0_i32 = arith.constant 0 : i32
    %c0_i32_0 = arith.constant 0 : i32
    %c0_i32_1 = arith.constant 0 : i32
    %c0_i32_2 = arith.constant 0 : i32
    return %arg0, %c0_i32, %c0_i32_0, %c0_i32_1 : i32, i32, i32, i32
  }
  func.func @transform_2(%arg0: i32) -> (i32, i32, i32, i32) {
    %c0_i32 = arith.constant 0 : i32
    %c0_i32_0 = arith.constant 0 : i32
    %c0_i32_1 = arith.constant 0 : i32
    %c0_i32_2 = arith.constant 0 : i32
    return %arg0, %c0_i32, %c0_i32_0, %c0_i32_1 : i32, i32, i32, i32
  }
  func.func @transform_3(%arg0: i32) -> (i32, i32, i32, i32) {
    %c0_i32 = arith.constant 0 : i32
    %c0_i32_0 = arith.constant 0 : i32
    %c0_i32_1 = arith.constant 0 : i32
    %c0_i32_2 = arith.constant 0 : i32
    return %arg0, %c0_i32, %c0_i32_0, %c0_i32_1 : i32, i32, i32, i32
  }
  func.func @transform_4(%arg0: i32) -> (i32, i32, i32, i32) {
    %c0_i32 = arith.constant 0 : i32
    %c0_i32_0 = arith.constant 0 : i32
    %c0_i32_1 = arith.constant 0 : i32
    %c0_i32_2 = arith.constant 0 : i32
    %c0_i32_3 = arith.constant 0 : i32
    return %c0_i32, %c0_i32_0, %c0_i32_1, %c0_i32_2 : i32, i32, i32, i32
  }
  func.func @transform_5(%arg0: i32) -> (i32, i32) {
    %c0_i32 = arith.constant 0 : i32
    %c0_i32_0 = arith.constant 0 : i32
    %c0_i32_1 = arith.constant 0 : i32
    return %c0_i32, %c0_i32_0 : i32, i32
  }
  func.func @transform_6(%arg0: i32) -> (i32, i32, i32, i32) {
    %c0_i32 = arith.constant 0 : i32
    %c0_i32_0 = arith.constant 0 : i32
    %c0_i32_1 = arith.constant 0 : i32
    %c0_i32_2 = arith.constant 0 : i32
    return %arg0, %c0_i32, %c0_i32_0, %c0_i32_1 : i32, i32, i32, i32
  }
  func.func @transform_7(%arg0: i32) -> (i32, i32, i32) {
    %c0_i32 = arith.constant 0 : i32
    %c0_i32_0 = arith.constant 0 : i32
    %c0_i32_1 = arith.constant 0 : i32
    return %arg0, %c0_i32, %c0_i32_0 : i32, i32, i32
  }
  func.func @transform_8(%arg0: i32) -> (i32, i32, i32, i32) {
    %c0_i32 = arith.constant 0 : i32
    %c0_i32_0 = arith.constant 0 : i32
    %c0_i32_1 = arith.constant 0 : i32
    %c0_i32_2 = arith.constant 0 : i32
    return %arg0, %c0_i32, %c0_i32_0, %c0_i32_1 : i32, i32, i32, i32
  }
  func.func @transform_9(%arg0: i32) -> (i32, i32, i32) {
    %c0_i32 = arith.constant 0 : i32
    %c0_i32_0 = arith.constant 0 : i32
    %c0_i32_1 = arith.constant 0 : i32
    return %arg0, %c0_i32, %c0_i32_0 : i32, i32, i32
  }
}

module attributes {stable_mosaic.version = 11 : i64} {
  func.func @kernel(%arg0: i32, %arg1: memref<1x8x8x128xf32, #tpu.memory_space<vmem>>, %arg2: memref<1x1x128xf32, #tpu.memory_space<vmem>>, %arg3: memref<1x1x128xf32, #tpu.memory_space<vmem>>, %arg4: memref<3x3x128x128xbf16, #tpu.memory_space<vmem>>, %arg5: memref<1x8x8x128xf32, #tpu.memory_space<vmem>>, %arg6: memref<1x2x128xf32, #tpu.memory_space<vmem>>, %arg7: memref<10x10x128xf32, #tpu.memory_space<vmem>>) attributes {dimension_semantics = [#tpu.dimension_semantics<parallel>], iteration_bounds = array<i64: 2>, scalar_prefetch = 0 : i64, scratch_operands = 1 : i64, tpu.core_type = #tpu.core_type<tc>, window_params = [{transform_indices = @transform_0, window_bounds = array<i64: 1, 8, 8, 128>}, {pipeline_mode = #tpu.pipeline_mode<synchronous>, transform_indices = @transform_1, window_bounds = array<i64: 1, 1, 128>}, {pipeline_mode = #tpu.pipeline_mode<synchronous>, transform_indices = @transform_2, window_bounds = array<i64: 1, 1, 128>}, {pipeline_mode = #tpu.pipeline_mode<synchronous>, transform_indices = @transform_3, window_bounds = array<i64: 3, 3, 128, 128>}, {transform_indices = @transform_4, window_bounds = array<i64: 1, 8, 8, 128>}, {transform_indices = @transform_5, window_bounds = array<i64: 1, 2, 128>}]} {
    %c0 = arith.constant 0 : index
    %c0_0 = arith.constant 0 : index
    %c0_1 = arith.constant 0 : index
    %c0_2 = arith.constant 0 : index
    %0 = vector.load %arg1[%c0, %c0_0, %c0_1, %c0_2] : memref<1x8x8x128xf32, #tpu.memory_space<vmem>>, vector<1x8x8x128xf32>
    %1 = vector.shape_cast %0 : vector<1x8x8x128xf32> to vector<8x8x128xf32>
    %c0_3 = arith.constant 0 : index
    %c0_4 = arith.constant 0 : index
    %c0_5 = arith.constant 0 : index
    %2 = vector.load %arg2[%c0_3, %c0_4, %c0_5] : memref<1x1x128xf32, #tpu.memory_space<vmem>>, vector<1x1x128xf32>
    %3 = vector.broadcast %2 : vector<1x1x128xf32> to vector<8x8x128xf32>
    %4 = arith.mulf %1, %3 : vector<8x8x128xf32>
    %c0_6 = arith.constant 0 : index
    %c0_7 = arith.constant 0 : index
    %c0_8 = arith.constant 0 : index
    %5 = vector.load %arg3[%c0_6, %c0_7, %c0_8] : memref<1x1x128xf32, #tpu.memory_space<vmem>>, vector<1x1x128xf32>
    %6 = vector.broadcast %5 : vector<1x1x128xf32> to vector<8x8x128xf32>
    %7 = arith.addf %4, %6 : vector<8x8x128xf32>
    %cst = arith.constant 0.000000e+00 : f32
    %8 = vector.broadcast %cst : f32 to vector<10x10x128xf32>
    %c0_9 = arith.constant 0 : index
    %c0_10 = arith.constant 0 : index
    %c0_11 = arith.constant 0 : index
    %9 = vector.load %arg7[%c0_9, %c0_10, %c0_11] : memref<10x10x128xf32, #tpu.memory_space<vmem>>, vector<10x10x128xf32>
    tpu.vector_store %arg7[%c0_9, %c0_10, %c0_11], %8 {strides = array<i32>} : memref<10x10x128xf32, #tpu.memory_space<vmem>>, vector<10x10x128xf32>,
    %c1 = arith.constant 1 : index
    %c1_12 = arith.constant 1 : index
    %c0_13 = arith.constant 0 : index
    %10 = vector.load %arg7[%c1, %c1_12, %c0_13] : memref<10x10x128xf32, #tpu.memory_space<vmem>>, vector<8x8x128xf32>
    tpu.vector_store %arg7[%c1, %c1_12, %c0_13], %7 {strides = array<i32>} : memref<10x10x128xf32, #tpu.memory_space<vmem>>, vector<8x8x128xf32>,
    %cst_14 = arith.constant 0.000000e+00 : f32
    %11 = vector.broadcast %cst_14 : f32 to vector<64x128xf32>
    %c0_15 = arith.constant 0 : index
    %c0_16 = arith.constant 0 : index
    %c0_17 = arith.constant 0 : index
    %12 = vector.load %arg7[%c0_15, %c0_16, %c0_17] : memref<10x10x128xf32, #tpu.memory_space<vmem>>, vector<8x8x128xf32>
    %13 = arith.truncf %12 : vector<8x8x128xf32> to vector<8x8x128xbf16>
    %14 = vector.shape_cast %13 : vector<8x8x128xbf16> to vector<64x128xbf16>
    %c0_18 = arith.constant 0 : index
    %c0_19 = arith.constant 0 : index
    %c0_20 = arith.constant 0 : index
    %c0_21 = arith.constant 0 : index
    %15 = vector.load %arg4[%c0_18, %c0_19, %c0_20, %c0_21] : memref<3x3x128x128xbf16, #tpu.memory_space<vmem>>, vector<1x1x128x128xbf16>
    %16 = vector.shape_cast %15 : vector<1x1x128x128xbf16> to vector<128x128xbf16>
    %cst_22 = arith.constant dense<0.000000e+00> : vector<64x128xf32>
    %17 = tpu.matmul %14, %16, %cst_22 {dimension_numbers = #tpu.dot_dimension_numbers<[1], [0], [0], [1], [0, 0, 1, 1], [], []>} : vector<64x128xbf16>, vector<128x128xbf16>, vector<64x128xf32> -> vector<64x128xf32>
    %18 = arith.addf %11, %17 : vector<64x128xf32>
    %c0_23 = arith.constant 0 : index
    %c1_24 = arith.constant 1 : index
    %c0_25 = arith.constant 0 : index
    %19 = vector.load %arg7[%c0_23, %c1_24, %c0_25] : memref<10x10x128xf32, #tpu.memory_space<vmem>>, vector<8x8x128xf32>
    %20 = arith.truncf %19 : vector<8x8x128xf32> to vector<8x8x128xbf16>
    %21 = vector.shape_cast %20 : vector<8x8x128xbf16> to vector<64x128xbf16>
    %c0_26 = arith.constant 0 : index
    %c1_27 = arith.constant 1 : index
    %c0_28 = arith.constant 0 : index
    %c0_29 = arith.constant 0 : index
    %22 = vector.load %arg4[%c0_26, %c1_27, %c0_28, %c0_29] : memref<3x3x128x128xbf16, #tpu.memory_space<vmem>>, vector<1x1x128x128xbf16>
    %23 = vector.shape_cast %22 : vector<1x1x128x128xbf16> to vector<128x128xbf16>
    %cst_30 = arith.constant dense<0.000000e+00> : vector<64x128xf32>
    %24 = tpu.matmul %21, %23, %cst_30 {dimension_numbers = #tpu.dot_dimension_numbers<[1], [0], [0], [1], [0, 0, 1, 1], [], []>} : vector<64x128xbf16>, vector<128x128xbf16>, vector<64x128xf32> -> vector<64x128xf32>
    %25 = arith.addf %18, %24 : vector<64x128xf32>
    %c0_31 = arith.constant 0 : index
    %c2 = arith.constant 2 : index
    %c0_32 = arith.constant 0 : index
    %26 = vector.load %arg7[%c0_31, %c2, %c0_32] : memref<10x10x128xf32, #tpu.memory_space<vmem>>, vector<8x8x128xf32>
    %27 = arith.truncf %26 : vector<8x8x128xf32> to vector<8x8x128xbf16>
    %28 = vector.shape_cast %27 : vector<8x8x128xbf16> to vector<64x128xbf16>
    %c0_33 = arith.constant 0 : index
    %c2_34 = arith.constant 2 : index
    %c0_35 = arith.constant 0 : index
    %c0_36 = arith.constant 0 : index
    %29 = vector.load %arg4[%c0_33, %c2_34, %c0_35, %c0_36] : memref<3x3x128x128xbf16, #tpu.memory_space<vmem>>, vector<1x1x128x128xbf16>
    %30 = vector.shape_cast %29 : vector<1x1x128x128xbf16> to vector<128x128xbf16>
    %cst_37 = arith.constant dense<0.000000e+00> : vector<64x128xf32>
    %31 = tpu.matmul %28, %30, %cst_37 {dimension_numbers = #tpu.dot_dimension_numbers<[1], [0], [0], [1], [0, 0, 1, 1], [], []>} : vector<64x128xbf16>, vector<128x128xbf16>, vector<64x128xf32> -> vector<64x128xf32>
    %32 = arith.addf %25, %31 : vector<64x128xf32>
    %c1_38 = arith.constant 1 : index
    %c0_39 = arith.constant 0 : index
    %c0_40 = arith.constant 0 : index
    %33 = vector.load %arg7[%c1_38, %c0_39, %c0_40] : memref<10x10x128xf32, #tpu.memory_space<vmem>>, vector<8x8x128xf32>
    %34 = arith.truncf %33 : vector<8x8x128xf32> to vector<8x8x128xbf16>
    %35 = vector.shape_cast %34 : vector<8x8x128xbf16> to vector<64x128xbf16>
    %c1_41 = arith.constant 1 : index
    %c0_42 = arith.constant 0 : index
    %c0_43 = arith.constant 0 : index
    %c0_44 = arith.constant 0 : index
    %36 = vector.load %arg4[%c1_41, %c0_42, %c0_43, %c0_44] : memref<3x3x128x128xbf16, #tpu.memory_space<vmem>>, vector<1x1x128x128xbf16>
    %37 = vector.shape_cast %36 : vector<1x1x128x128xbf16> to vector<128x128xbf16>
    %cst_45 = arith.constant dense<0.000000e+00> : vector<64x128xf32>
    %38 = tpu.matmul %35, %37, %cst_45 {dimension_numbers = #tpu.dot_dimension_numbers<[1], [0], [0], [1], [0, 0, 1, 1], [], []>} : vector<64x128xbf16>, vector<128x128xbf16>, vector<64x128xf32> -> vector<64x128xf32>
    %39 = arith.addf %32, %38 : vector<64x128xf32>
    %c1_46 = arith.constant 1 : index
    %c1_47 = arith.constant 1 : index
    %c0_48 = arith.constant 0 : index
    %40 = vector.load %arg7[%c1_46, %c1_47, %c0_48] : memref<10x10x128xf32, #tpu.memory_space<vmem>>, vector<8x8x128xf32>
    %41 = arith.truncf %40 : vector<8x8x128xf32> to vector<8x8x128xbf16>
    %42 = vector.shape_cast %41 : vector<8x8x128xbf16> to vector<64x128xbf16>
    %c1_49 = arith.constant 1 : index
    %c1_50 = arith.constant 1 : index
    %c0_51 = arith.constant 0 : index
    %c0_52 = arith.constant 0 : index
    %43 = vector.load %arg4[%c1_49, %c1_50, %c0_51, %c0_52] : memref<3x3x128x128xbf16, #tpu.memory_space<vmem>>, vector<1x1x128x128xbf16>
    %44 = vector.shape_cast %43 : vector<1x1x128x128xbf16> to vector<128x128xbf16>
    %cst_53 = arith.constant dense<0.000000e+00> : vector<64x128xf32>
    %45 = tpu.matmul %42, %44, %cst_53 {dimension_numbers = #tpu.dot_dimension_numbers<[1], [0], [0], [1], [0, 0, 1, 1], [], []>} : vector<64x128xbf16>, vector<128x128xbf16>, vector<64x128xf32> -> vector<64x128xf32>
    %46 = arith.addf %39, %45 : vector<64x128xf32>
    %c1_54 = arith.constant 1 : index
    %c2_55 = arith.constant 2 : index
    %c0_56 = arith.constant 0 : index
    %47 = vector.load %arg7[%c1_54, %c2_55, %c0_56] : memref<10x10x128xf32, #tpu.memory_space<vmem>>, vector<8x8x128xf32>
    %48 = arith.truncf %47 : vector<8x8x128xf32> to vector<8x8x128xbf16>
    %49 = vector.shape_cast %48 : vector<8x8x128xbf16> to vector<64x128xbf16>
    %c1_57 = arith.constant 1 : index
    %c2_58 = arith.constant 2 : index
    %c0_59 = arith.constant 0 : index
    %c0_60 = arith.constant 0 : index
    %50 = vector.load %arg4[%c1_57, %c2_58, %c0_59, %c0_60] : memref<3x3x128x128xbf16, #tpu.memory_space<vmem>>, vector<1x1x128x128xbf16>
    %51 = vector.shape_cast %50 : vector<1x1x128x128xbf16> to vector<128x128xbf16>
    %cst_61 = arith.constant dense<0.000000e+00> : vector<64x128xf32>
    %52 = tpu.matmul %49, %51, %cst_61 {dimension_numbers = #tpu.dot_dimension_numbers<[1], [0], [0], [1], [0, 0, 1, 1], [], []>} : vector<64x128xbf16>, vector<128x128xbf16>, vector<64x128xf32> -> vector<64x128xf32>
    %53 = arith.addf %46, %52 : vector<64x128xf32>
    %c2_62 = arith.constant 2 : index
    %c0_63 = arith.constant 0 : index
    %c0_64 = arith.constant 0 : index
    %54 = vector.load %arg7[%c2_62, %c0_63, %c0_64] : memref<10x10x128xf32, #tpu.memory_space<vmem>>, vector<8x8x128xf32>
    %55 = arith.truncf %54 : vector<8x8x128xf32> to vector<8x8x128xbf16>
    %56 = vector.shape_cast %55 : vector<8x8x128xbf16> to vector<64x128xbf16>
    %c2_65 = arith.constant 2 : index
    %c0_66 = arith.constant 0 : index
    %c0_67 = arith.constant 0 : index
    %c0_68 = arith.constant 0 : index
    %57 = vector.load %arg4[%c2_65, %c0_66, %c0_67, %c0_68] : memref<3x3x128x128xbf16, #tpu.memory_space<vmem>>, vector<1x1x128x128xbf16>
    %58 = vector.shape_cast %57 : vector<1x1x128x128xbf16> to vector<128x128xbf16>
    %cst_69 = arith.constant dense<0.000000e+00> : vector<64x128xf32>
    %59 = tpu.matmul %56, %58, %cst_69 {dimension_numbers = #tpu.dot_dimension_numbers<[1], [0], [0], [1], [0, 0, 1, 1], [], []>} : vector<64x128xbf16>, vector<128x128xbf16>, vector<64x128xf32> -> vector<64x128xf32>
    %60 = arith.addf %53, %59 : vector<64x128xf32>
    %c2_70 = arith.constant 2 : index
    %c1_71 = arith.constant 1 : index
    %c0_72 = arith.constant 0 : index
    %61 = vector.load %arg7[%c2_70, %c1_71, %c0_72] : memref<10x10x128xf32, #tpu.memory_space<vmem>>, vector<8x8x128xf32>
    %62 = arith.truncf %61 : vector<8x8x128xf32> to vector<8x8x128xbf16>
    %63 = vector.shape_cast %62 : vector<8x8x128xbf16> to vector<64x128xbf16>
    %c2_73 = arith.constant 2 : index
    %c1_74 = arith.constant 1 : index
    %c0_75 = arith.constant 0 : index
    %c0_76 = arith.constant 0 : index
    %64 = vector.load %arg4[%c2_73, %c1_74, %c0_75, %c0_76] : memref<3x3x128x128xbf16, #tpu.memory_space<vmem>>, vector<1x1x128x128xbf16>
    %65 = vector.shape_cast %64 : vector<1x1x128x128xbf16> to vector<128x128xbf16>
    %cst_77 = arith.constant dense<0.000000e+00> : vector<64x128xf32>
    %66 = tpu.matmul %63, %65, %cst_77 {dimension_numbers = #tpu.dot_dimension_numbers<[1], [0], [0], [1], [0, 0, 1, 1], [], []>} : vector<64x128xbf16>, vector<128x128xbf16>, vector<64x128xf32> -> vector<64x128xf32>
    %67 = arith.addf %60, %66 : vector<64x128xf32>
    %c2_78 = arith.constant 2 : index
    %c2_79 = arith.constant 2 : index
    %c0_80 = arith.constant 0 : index
    %68 = vector.load %arg7[%c2_78, %c2_79, %c0_80] : memref<10x10x128xf32, #tpu.memory_space<vmem>>, vector<8x8x128xf32>
    %69 = arith.truncf %68 : vector<8x8x128xf32> to vector<8x8x128xbf16>
    %70 = vector.shape_cast %69 : vector<8x8x128xbf16> to vector<64x128xbf16>
    %c2_81 = arith.constant 2 : index
    %c2_82 = arith.constant 2 : index
    %c0_83 = arith.constant 0 : index
    %c0_84 = arith.constant 0 : index
    %71 = vector.load %arg4[%c2_81, %c2_82, %c0_83, %c0_84] : memref<3x3x128x128xbf16, #tpu.memory_space<vmem>>, vector<1x1x128x128xbf16>
    %72 = vector.shape_cast %71 : vector<1x1x128x128xbf16> to vector<128x128xbf16>
    %cst_85 = arith.constant dense<0.000000e+00> : vector<64x128xf32>
    %73 = tpu.matmul %70, %72, %cst_85 {dimension_numbers = #tpu.dot_dimension_numbers<[1], [0], [0], [1], [0, 0, 1, 1], [], []>} : vector<64x128xbf16>, vector<128x128xbf16>, vector<64x128xf32> -> vector<64x128xf32>
    %74 = arith.addf %67, %73 : vector<64x128xf32>
    %75 = vector.shape_cast %74 : vector<64x128xf32> to vector<8x8x128xf32>
    %c0_86 = arith.constant 0 : index
    %c0_87 = arith.constant 0 : index
    %c0_88 = arith.constant 0 : index
    %c0_89 = arith.constant 0 : index
    %76 = vector.load %arg5[%c0_86, %c0_87, %c0_88, %c0_89] : memref<1x8x8x128xf32, #tpu.memory_space<vmem>>, vector<1x8x8x128xf32>
    %77 = vector.shape_cast %76 : vector<1x8x8x128xf32> to vector<8x8x128xf32>
    %78 = vector.shape_cast %75 : vector<8x8x128xf32> to vector<1x8x8x128xf32>
    tpu.vector_store %arg5[%c0_86, %c0_87, %c0_88, %c0_89], %78 {strides = array<i32>} : memref<1x8x8x128xf32, #tpu.memory_space<vmem>>, vector<1x8x8x128xf32>,
    %cst_90 = arith.constant dense<0.000000e+00> : vector<128xf32>
    %79 = vector.multi_reduction <add>, %74, %cst_90 [0] : vector<64x128xf32> to vector<128xf32>
    %80 = vector.shape_cast %79 : vector<128xf32> to vector<1x128xf32>
    %c0_91 = arith.constant 0 : index
    %c0_92 = arith.constant 0 : index
    %c0_93 = arith.constant 0 : index
    %81 = vector.load %arg6[%c0_91, %c0_92, %c0_93] : memref<1x2x128xf32, #tpu.memory_space<vmem>>, vector<1x1x128xf32>
    %82 = vector.shape_cast %81 : vector<1x1x128xf32> to vector<1x128xf32>
    %83 = vector.shape_cast %80 : vector<1x128xf32> to vector<1x1x128xf32>
    tpu.vector_store %arg6[%c0_91, %c0_92, %c0_93], %83 {strides = array<i32>} : memref<1x2x128xf32, #tpu.memory_space<vmem>>, vector<1x1x128xf32>,
    %84 = arith.mulf %74, %74 : vector<64x128xf32>
    %cst_94 = arith.constant dense<0.000000e+00> : vector<128xf32>
    %85 = vector.multi_reduction <add>, %84, %cst_94 [0] : vector<64x128xf32> to vector<128xf32>
    %86 = vector.shape_cast %85 : vector<128xf32> to vector<1x128xf32>
    %c0_95 = arith.constant 0 : index
    %c1_96 = arith.constant 1 : index
    %c0_97 = arith.constant 0 : index
    %87 = vector.load %arg6[%c0_95, %c1_96, %c0_97] : memref<1x2x128xf32, #tpu.memory_space<vmem>>, vector<1x1x128xf32>
    %88 = vector.shape_cast %87 : vector<1x1x128xf32> to vector<1x128xf32>
    %89 = vector.shape_cast %86 : vector<1x128xf32> to vector<1x1x128xf32>
    tpu.vector_store %arg6[%c0_95, %c1_96, %c0_97], %89 {strides = array<i32>} : memref<1x2x128xf32, #tpu.memory_space<vmem>>, vector<1x1x128xf32>,
    return
  }
  func.func @transform_0(%arg0: i32) -> (i32, i32, i32, i32) {
    %c0_i32 = arith.constant 0 : i32
    %c0_i32_0 = arith.constant 0 : i32
    %c0_i32_1 = arith.constant 0 : i32
    %c0_i32_2 = arith.constant 0 : i32
    return %arg0, %c0_i32, %c0_i32_0, %c0_i32_1 : i32, i32, i32, i32
  }
  func.func @transform_1(%arg0: i32) -> (i32, i32, i32) {
    %c0_i32 = arith.constant 0 : i32
    %c0_i32_0 = arith.constant 0 : i32
    %c0_i32_1 = arith.constant 0 : i32
    %c0_i32_2 = arith.constant 0 : i32
    return %c0_i32, %c0_i32_0, %c0_i32_1 : i32, i32, i32
  }
  func.func @transform_2(%arg0: i32) -> (i32, i32, i32) {
    %c0_i32 = arith.constant 0 : i32
    %c0_i32_0 = arith.constant 0 : i32
    %c0_i32_1 = arith.constant 0 : i32
    %c0_i32_2 = arith.constant 0 : i32
    return %c0_i32, %c0_i32_0, %c0_i32_1 : i32, i32, i32
  }
  func.func @transform_3(%arg0: i32) -> (i32, i32, i32, i32) {
    %c0_i32 = arith.constant 0 : i32
    %c0_i32_0 = arith.constant 0 : i32
    %c0_i32_1 = arith.constant 0 : i32
    %c0_i32_2 = arith.constant 0 : i32
    %c0_i32_3 = arith.constant 0 : i32
    return %c0_i32, %c0_i32_0, %c0_i32_1, %c0_i32_2 : i32, i32, i32, i32
  }
  func.func @transform_4(%arg0: i32) -> (i32, i32, i32, i32) {
    %c0_i32 = arith.constant 0 : i32
    %c0_i32_0 = arith.constant 0 : i32
    %c0_i32_1 = arith.constant 0 : i32
    %c0_i32_2 = arith.constant 0 : i32
    return %arg0, %c0_i32, %c0_i32_0, %c0_i32_1 : i32, i32, i32, i32
  }
  func.func @transform_5(%arg0: i32) -> (i32, i32, i32) {
    %c0_i32 = arith.constant 0 : i32
    %c0_i32_0 = arith.constant 0 : i32
    %c0_i32_1 = arith.constant 0 : i32
    return %arg0, %c0_i32, %c0_i32_0 : i32, i32, i32
  }
}

module attributes {stable_mosaic.version = 11 : i64} {
  func.func @kernel(%arg0: i32, %arg1: memref<128x128xf32, #tpu.memory_space<vmem>>, %arg2: memref<128x128xf32, #tpu.memory_space<vmem>>, %arg3: memref<1x128xf32, #tpu.memory_space<vmem>>, %arg4: memref<1x128xf32, #tpu.memory_space<vmem>>, %arg5: memref<1x128xf32, #tpu.memory_space<vmem>>, %arg6: memref<1x128xf32, #tpu.memory_space<vmem>>, %arg7: memref<128x128xf32, #tpu.memory_space<vmem>>) attributes {dimension_semantics = [#tpu.dimension_semantics<parallel>], iteration_bounds = array<i64: 1>, scalar_prefetch = 0 : i64, scratch_operands = 0 : i64, tpu.core_type = #tpu.core_type<tc>, window_params = [{transform_indices = @transform_0, window_bounds = array<i64: 128, 128>}, {transform_indices = @transform_1, window_bounds = array<i64: 128, 128>}, {pipeline_mode = #tpu.pipeline_mode<synchronous>, transform_indices = @transform_2, window_bounds = array<i64: 1, 128>}, {pipeline_mode = #tpu.pipeline_mode<synchronous>, transform_indices = @transform_3, window_bounds = array<i64: 1, 128>}, {pipeline_mode = #tpu.pipeline_mode<synchronous>, transform_indices = @transform_4, window_bounds = array<i64: 1, 128>}, {pipeline_mode = #tpu.pipeline_mode<synchronous>, transform_indices = @transform_5, window_bounds = array<i64: 1, 128>}, {transform_indices = @transform_6, window_bounds = array<i64: 128, 128>}]} {
    %c0 = arith.constant 0 : index
    %c0_0 = arith.constant 0 : index
    %0 = vector.load %arg1[%c0, %c0_0] : memref<128x128xf32, #tpu.memory_space<vmem>>, vector<128x128xf32>
    %c0_1 = arith.constant 0 : index
    %c0_2 = arith.constant 0 : index
    %1 = vector.load %arg3[%c0_1, %c0_2] : memref<1x128xf32, #tpu.memory_space<vmem>>, vector<1x128xf32>
    %2 = vector.broadcast %1 : vector<1x128xf32> to vector<128x128xf32>
    %3 = arith.mulf %0, %2 : vector<128x128xf32>
    %c0_3 = arith.constant 0 : index
    %c0_4 = arith.constant 0 : index
    %4 = vector.load %arg4[%c0_3, %c0_4] : memref<1x128xf32, #tpu.memory_space<vmem>>, vector<1x128xf32>
    %5 = vector.broadcast %4 : vector<1x128xf32> to vector<128x128xf32>
    %6 = arith.addf %3, %5 : vector<128x128xf32>
    %c0_5 = arith.constant 0 : index
    %c0_6 = arith.constant 0 : index
    %7 = vector.load %arg2[%c0_5, %c0_6] : memref<128x128xf32, #tpu.memory_space<vmem>>, vector<128x128xf32>
    %c0_7 = arith.constant 0 : index
    %c0_8 = arith.constant 0 : index
    %8 = vector.load %arg5[%c0_7, %c0_8] : memref<1x128xf32, #tpu.memory_space<vmem>>, vector<1x128xf32>
    %9 = vector.broadcast %8 : vector<1x128xf32> to vector<128x128xf32>
    %10 = arith.mulf %7, %9 : vector<128x128xf32>
    %c0_9 = arith.constant 0 : index
    %c0_10 = arith.constant 0 : index
    %11 = vector.load %arg6[%c0_9, %c0_10] : memref<1x128xf32, #tpu.memory_space<vmem>>, vector<1x128xf32>
    %12 = vector.broadcast %11 : vector<1x128xf32> to vector<128x128xf32>
    %13 = arith.addf %10, %12 : vector<128x128xf32>
    %14 = arith.addf %6, %13 : vector<128x128xf32>
    %cst = arith.constant 0.000000e+00 : f32
    %15 = vector.broadcast %cst : f32 to vector<128x128xf32>
    %16 = arith.maximumf %14, %15 : vector<128x128xf32>
    %c0_11 = arith.constant 0 : index
    %c0_12 = arith.constant 0 : index
    %17 = vector.load %arg7[%c0_11, %c0_12] : memref<128x128xf32, #tpu.memory_space<vmem>>, vector<128x128xf32>
    tpu.vector_store %arg7[%c0_11, %c0_12], %16 {strides = array<i32>} : memref<128x128xf32, #tpu.memory_space<vmem>>, vector<128x128xf32>,
    return
  }
  func.func @transform_0(%arg0: i32) -> (i32, i32) {
    %c0_i32 = arith.constant 0 : i32
    %c0_i32_0 = arith.constant 0 : i32
    return %arg0, %c0_i32 : i32, i32
  }
  func.func @transform_1(%arg0: i32) -> (i32, i32) {
    %c0_i32 = arith.constant 0 : i32
    %c0_i32_0 = arith.constant 0 : i32
    return %arg0, %c0_i32 : i32, i32
  }
  func.func @transform_2(%arg0: i32) -> (i32, i32) {
    %c0_i32 = arith.constant 0 : i32
    %c0_i32_0 = arith.constant 0 : i32
    %c0_i32_1 = arith.constant 0 : i32
    return %c0_i32, %c0_i32_0 : i32, i32
  }
  func.func @transform_3(%arg0: i32) -> (i32, i32) {
    %c0_i32 = arith.constant 0 : i32
    %c0_i32_0 = arith.constant 0 : i32
    %c0_i32_1 = arith.constant 0 : i32
    return %c0_i32, %c0_i32_0 : i32, i32
  }
  func.func @transform_4(%arg0: i32) -> (i32, i32) {
    %c0_i32 = arith.constant 0 : i32
    %c0_i32_0 = arith.constant 0 : i32
    %c0_i32_1 = arith.constant 0 : i32
    return %c0_i32, %c0_i32_0 : i32, i32
  }
  func.func @transform_5(%arg0: i32) -> (i32, i32) {
    %c0_i32 = arith.constant 0 : i32
    %c0_i32_0 = arith.constant 0 : i32
    %c0_i32_1 = arith.constant 0 : i32
    return %c0_i32, %c0_i32_0 : i32, i32
  }
  func.func @transform_6(%arg0: i32) -> (i32, i32) {
    %c0_i32 = arith.constant 0 : i32
    %c0_i32_0 = arith.constant 0 : i32
    return %arg0, %c0_i32 : i32, i32
  }
}

</mosaic_0001>

<bundles_post_ra>
// kernel: resblock_forward.5
= control target key start
LH: loop header
LB: loop body
LE: loop exit
PB: predicated region body
PF: predicated region fallthrough
CT: control target
= control target key end

     0   :  { %s466_s0 = inlined_call_operand.vmem [shape: f32[128,128], index: 0, kind: input, shape index: {}]   ;;  %s467_s1 = inlined_call_operand.vmem [shape: f32[128,128], index: 1, kind: input, shape index: {}]   ;;  %s468_s2 = inlined_call_operand.vmem [shape: f32[1,128], index: 2, kind: input, shape index: {}]   ;;  %s469_s3 = inlined_call_operand.vmem [shape: f32[1,128], index: 3, kind: input, shape index: {}]   ;;  %s470_s4 = inlined_call_operand.vmem [shape: f32[1,128], index: 4, kind: input, shape index: {}]   ;;  %s471_s5 = inlined_call_operand.vmem [shape: f32[1,128], index: 5, kind: input, shape index: {}]   ;;  %s472_s6 = inlined_call_operand.vmem [shape: f32[128,128], index: 6, kind: output, shape index: {}]  }
   0x1   :  { %v23_v0 = vld [vmem:[%s466_s0] sm:$0xff]  ;;  %v24_v8 = vld [vmem:[%s466_s0 + $0x8] sm:$0xff]  ;;  %v25_v10 = vld [vmem:[%s466_s0 + $0x10] sm:$0xff] }
   0x2   :  { %v244_v1 = vld [vmem:[%s468_s2] ss:$0 sm:$0xff]  ;;  %v86_v9 = vld [vmem:[%s467_s1 + $0x8] sm:$0xff]  ;;  %v87_v15 = vld [vmem:[%s467_s1 + $0x10] sm:$0xff] }
   0x3   :  { %v249_v2 = vld [vmem:[%s469_s3] ss:$0 sm:$0xff]  ;;  %v46_v3 = vmul.f32 %v244_v1, %v23_v0  ;;  %v47_v12 = vmul.f32 %v244_v1, %v24_v8  ;;  %v48_v14 = vmul.f32 %v244_v1, %v25_v10  ;;  %v26_v16 = vld [vmem:[%s466_s0 + $0x18] sm:$0xff]  ;;  %v28_v24 = vld [vmem:[%s466_s0 + $0x28] sm:$0xff] }
   0x4   :  { %v85_v4 = vld [vmem:[%s467_s1] sm:$0xff]  ;;  %v88_v17 = vld [vmem:[%s467_s1 + $0x18] sm:$0xff]  ;;  %v49_v20 = vmul.f32 %v244_v1, %v26_v16  ;;  %v90_v29 = vld [vmem:[%s467_s1 + $0x28] sm:$0xff]  ;;  %v51_v38 = vmul.f32 %v244_v1, %v28_v24 }
   0x5   :  { %v258_v5 = vld [vmem:[%s470_s4] ss:$0 sm:$0xff]  ;;  %v69_v11 = vadd.f32 %v249_v2, %v46_v3  ;;  %v70_v25 = vadd.f32 %v249_v2, %v47_v12  ;;  %v71_v27 = vadd.f32 %v249_v2, %v48_v14  ;;  %v29_v34 = vld [vmem:[%s466_s0 + $0x30] sm:$0xff]  ;;  %v30_v44 = vld [vmem:[%s466_s0 + $0x38] sm:$0xff] }
   0x6   :  { %v263_v6 = vld [vmem:[%s471_s5] ss:$0 sm:$0xff]  ;;  %v108_v7 = vmul.f32 %v258_v5, %v85_v4  ;;  %v109_v13 = vmul.f32 %v258_v5, %v86_v9  ;;  %v110_v19 = vmul.f32 %v258_v5, %v87_v15  ;;  %v111_v21 = vmul.f32 %v258_v5, %v88_v17  ;;  %v91_v39 = vld [vmem:[%s467_s1 + $0x30] sm:$0xff]  ;;  %v92_v45 = vld [vmem:[%s467_s1 + $0x38] sm:$0xff] }
   0x7   :  { %v27_v22 = vld [vmem:[%s466_s0 + $0x20] sm:$0xff]  ;;  %v72_v32 = vadd.f32 %v249_v2, %v49_v20  ;;  %v113_v43 = vmul.f32 %v258_v5, %v90_v29  ;;  %v74_v48 = vadd.f32 %v249_v2, %v51_v38  ;;  %v52_v49 = vmul.f32 %v244_v1, %v29_v34  ;;  %v32_v56 = vld [vmem:[%s466_s0 + $0x48] sm:$0xff]  ;;  %v33_v4 = vld [vmem:[%s466_s0 + $0x50] sm:$0xff] }
   0x8   :  { %v131_v18 = vadd.f32 %v263_v6, %v108_v7  ;;  %v89_v23 = vld [vmem:[%s467_s1 + $0x20] sm:$0xff]  ;;  %v132_v26 = vadd.f32 %v263_v6, %v109_v13  ;;  %v50_v28 = vmul.f32 %v244_v1, %v27_v22  ;;  %v133_v31 = vadd.f32 %v263_v6, %v110_v19  ;;  %v94_v3 = vld [vmem:[%s467_s1 + $0x48] sm:$0xff]  ;;  %v34_v12 = vld [vmem:[%s466_s0 + $0x58] sm:$0xff] }
   0x9   :  { %v134_v33 = vadd.f32 %v263_v6, %v111_v21  ;;  %v112_v37 = vmul.f32 %v258_v5, %v89_v23  ;;  %v31_v50 = vld [vmem:[%s466_s0 + $0x40] sm:$0xff]  ;;  %v136_v54 = vadd.f32 %v263_v6, %v113_v43  ;;  %v114_v55 = vmul.f32 %v258_v5, %v91_v39  ;;  %v96_v17 = vld [vmem:[%s467_s1 + $0x58] sm:$0xff]  ;;  %v37_v34 = vld [vmem:[%s466_s0 + $0x70] sm:$0xff] }
   0xa   :  { %v147_v30 = vadd.f32 %v131_v18, %v69_v11  ;;  %v148_v35 = vadd.f32 %v132_v26, %v70_v25  ;;  %v73_v36 = vadd.f32 %v249_v2, %v50_v28  ;;  %v149_v41 = vadd.f32 %v133_v31, %v71_v27  ;;  %v93_v51 = vld [vmem:[%s467_s1 + $0x40] sm:$0xff]  ;;  %v95_v11 = vld [vmem:[%s467_s1 + $0x50] sm:$0xff]  ;;  %v36_v28 = vld [vmem:[%s466_s0 + $0x68] sm:$0xff] }
   0xb   :  { %v150_v42 = vadd.f32 %v134_v33, %v72_v32  ;;  %v135_v47 = vadd.f32 %v263_v6, %v112_v37  ;;  %v75_v58 = vadd.f32 %v249_v2, %v52_v49  ;;  %v53_v59 = vmul.f32 %v244_v1, %v30_v44  ;;  %v35_v22 = vld [vmem:[%s466_s0 + $0x60] sm:$0xff]  ;;  %v98_v33 = vld [vmem:[%s467_s1 + $0x68] sm:$0xff]  ;;  %v99_v43 = vld [vmem:[%s467_s1 + $0x70] sm:$0xff] }
   0xc   :  { %v163_v40 = vmax.f32 %v147_v30, 0.0  ;;  %v164_v46 = vmax.f32 %v148_v35, 0.0  ;;  %v165_v52 = vmax.f32 %v149_v41, 0.0  ;;  %v115_v60 = vmul.f32 %v258_v5, %v92_v45  ;;  %v97_v27 = vld [vmem:[%s467_s1 + $0x60] sm:$0xff]  ;;  %v100_v49 = vld [vmem:[%s467_s1 + $0x78] sm:$0xff] }
   0xd   :  { %v166_v53 = vmax.f32 %v150_v42, 0.0  ;;  %v151_v57 = vadd.f32 %v135_v47, %v73_v36  ;;  %v152_v61 = vadd.f32 %v136_v54, %v74_v48  ;;  %v137_v62 = vadd.f32 %v263_v6, %v114_v55  ;;  %v38_v48 = vld [vmem:[%s466_s0 + $0x78] sm:$0xff] }
   0xe   :  { %179 = vst [vmem:[%s472_s6] sm:$0xff] %v163_v40  ;;  %180 = vst [vmem:[%s472_s6 + $0x8] sm:$0xff] %v164_v46  ;;  %v54_v63 = vmul.f32 %v244_v1, %v31_v50  ;;  %v116_v0 = vmul.f32 %v258_v5, %v93_v51  ;;  %v76_v8 = vadd.f32 %v249_v2, %v53_v59 }
   0xf   :  { %181 = vst [vmem:[%s472_s6 + $0x10] sm:$0xff] %v165_v52  ;;  %182 = vst [vmem:[%s472_s6 + $0x18] sm:$0xff] %v166_v53  ;;  %v167_v7 = vmax.f32 %v151_v57, 0.0  ;;  %v138_v9 = vadd.f32 %v263_v6, %v115_v60  ;;  %v55_v10 = vmul.f32 %v244_v1, %v32_v56  ;;  %v168_v13 = vmax.f32 %v152_v61, 0.0 }
  0x10   :  { %v153_v14 = vadd.f32 %v137_v62, %v75_v58  ;;  %v77_v15 = vadd.f32 %v249_v2, %v54_v63  ;;  %v139_v16 = vadd.f32 %v263_v6, %v116_v0  ;;  %v117_v20 = vmul.f32 %v258_v5, %v94_v3 }
  0x11   :  { %183 = vst [vmem:[%s472_s6 + $0x20] sm:$0xff] %v167_v7  ;;  %v154_v18 = vadd.f32 %v138_v9, %v76_v8  ;;  %v78_v19 = vadd.f32 %v249_v2, %v55_v10  ;;  %v56_v21 = vmul.f32 %v244_v1, %v33_v4  ;;  %184 = vst [vmem:[%s472_s6 + $0x28] sm:$0xff] %v168_v13 }
  0x12   :  { %v169_v23 = vmax.f32 %v153_v14, 0.0  ;;  %v155_v24 = vadd.f32 %v139_v16, %v77_v15  ;;  %v118_v25 = vmul.f32 %v258_v5, %v95_v11  ;;  %v57_v26 = vmul.f32 %v244_v1, %v34_v12 }
  0x13   :  { %v170_v29 = vmax.f32 %v154_v18, 0.0  ;;  %v140_v30 = vadd.f32 %v263_v6, %v117_v20  ;;  %v79_v31 = vadd.f32 %v249_v2, %v56_v21  ;;  %v119_v32 = vmul.f32 %v258_v5, %v96_v17 }
  0x14   :  { %185 = vst [vmem:[%s472_s6 + $0x30] sm:$0xff] %v169_v23  ;;  %v171_v35 = vmax.f32 %v155_v24, 0.0  ;;  %v141_v36 = vadd.f32 %v263_v6, %v118_v25  ;;  %v80_v37 = vadd.f32 %v249_v2, %v57_v26  ;;  %v58_v38 = vmul.f32 %v244_v1, %v35_v22 }
  0x15   :  { %186 = vst [vmem:[%s472_s6 + $0x38] sm:$0xff] %v170_v29  ;;  %v156_v39 = vadd.f32 %v140_v30, %v78_v19  ;;  %v142_v40 = vadd.f32 %v263_v6, %v119_v32  ;;  %v120_v41 = vmul.f32 %v258_v5, %v97_v27  ;;  %v59_v42 = vmul.f32 %v244_v1, %v36_v28 }
  0x16   :  { %187 = vst [vmem:[%s472_s6 + $0x40] sm:$0xff] %v171_v35  ;;  %v157_v44 = vadd.f32 %v141_v36, %v79_v31  ;;  %v81_v45 = vadd.f32 %v249_v2, %v58_v38  ;;  %v121_v46 = vmul.f32 %v258_v5, %v98_v33  ;;  %v60_v47 = vmul.f32 %v244_v1, %v37_v34 }
  0x17   :  { %v172_v50 = vmax.f32 %v156_v39, 0.0  ;;  %v158_v51 = vadd.f32 %v142_v40, %v80_v37  ;;  %v143_v52 = vadd.f32 %v263_v6, %v120_v41  ;;  %v82_v53 = vadd.f32 %v249_v2, %v59_v42 }
  0x18   :  { %v173_v54 = vmax.f32 %v157_v44, 0.0  ;;  %v144_v55 = vadd.f32 %v263_v6, %v121_v46  ;;  %v83_v56 = vadd.f32 %v249_v2, %v60_v47  ;;  %v122_v57 = vmul.f32 %v258_v5, %v99_v43 }
  0x19   :  { %188 = vst [vmem:[%s472_s6 + $0x48] sm:$0xff] %v172_v50  ;;  %v174_v58 = vmax.f32 %v158_v51, 0.0  ;;  %v159_v59 = vadd.f32 %v143_v52, %v81_v45  ;;  %v61_v60 = vmul.f32 %v244_v1, %v38_v48  ;;  %v123_v61 = vmul.f32 %v258_v5, %v100_v49 }
  0x1a   :  { %189 = vst [vmem:[%s472_s6 + $0x50] sm:$0xff] %v173_v54  ;;  %v160_v62 = vadd.f32 %v144_v55, %v82_v53  ;;  %v145_v63 = vadd.f32 %v263_v6, %v122_v57 }
  0x1b   :  { %190 = vst [vmem:[%s472_s6 + $0x58] sm:$0xff] %v174_v58  ;;  %v175_v0 = vmax.f32 %v159_v59, 0.0  ;;  %v84_v3 = vadd.f32 %v249_v2, %v61_v60  ;;  %v146_v4 = vadd.f32 %v263_v6, %v123_v61 }
  0x1c   :  { %v176_v7 = vmax.f32 %v160_v62, 0.0  ;;  %v161_v1 = vadd.f32 %v145_v63, %v83_v56 }
  0x1d   :  { %191 = vst [vmem:[%s472_s6 + $0x60] sm:$0xff] %v175_v0  ;;  %v162_v5 = vadd.f32 %v146_v4, %v84_v3 }
  0x1e   :  { %192 = vst [vmem:[%s472_s6 + $0x68] sm:$0xff] %v176_v7  ;;  %v177_v8 = vmax.f32 %v161_v1, 0.0 }
  0x1f   :  { %v178_v9 = vmax.f32 %v162_v5, 0.0 }
  0x20   :  { %193 = vst [vmem:[%s472_s6 + $0x70] sm:$0xff] %v177_v8 }
  0x21   :  { %194 = vst [vmem:[%s472_s6 + $0x78] sm:$0xff] %v178_v9 }

// kernel: resblock_forward.4
= control target key start
LH: loop header
LB: loop body
LE: loop exit
PB: predicated region body
PF: predicated region fallthrough
CT: control target
= control target key end

     0   :  { %s2832_s18 = smov 0   ;;  %s3231_s0 = inlined_call_operand.vmem [shape: f32[2,8,8,128], index: 0, kind: input, shape index: {}]   ;;  %s3232_s1 = inlined_call_operand.vmem [shape: f32[1,1,128], index: 1, kind: input, shape index: {}]   ;;  %s3233_s2 = inlined_call_operand.vmem [shape: f32[1,1,128], index: 2, kind: input, shape index: {}]   ;;  %s3234_s3 = inlined_call_operand.vmem [shape: bf16[3,3,128,128], index: 3, kind: input, shape index: {}]   ;;  %s3235_s4 = inlined_call_operand.vmem [shape: f32[2,8,8,128], index: 4, kind: output, shape index: {0}]   ;;  %s3236_s5 = inlined_call_operand.vmem [shape: f32[2,2,128], index: 5, kind: output, shape index: {1}]  }
   0x1 LB: > { %s2020_s19 = sadd.s32 4294967295, %s2799_s18   ;;  %p2024_p0 = scmp.ge.s32.totalorder %s2799_s18, 1  ;;  %s2799_s18 = sphi %s2832_s18, %s16_s18  }
   0x2   : > { %p190_p1 = scmp.lt.s32.totalorder %s2799_s18, 3 }
   0x4   : > { %p191_p2 = pnand %p2024_p0, %p190_p1 }
   0x5   : > { %v2721_v0 = vld [vmem:[%s3234_s3 + $0x40] sm:$0xff] (!%p191_p2)   ;;  %v2723_v2 = vld [vmem:[%s3234_s3 + $0x48] sm:$0xff] (!%p191_p2)   ;;  %p2851_p3 = scmp.lt.s32.totalorder (!%p191_p2), %s2020_s19, 1  ;;  %v2801_v3 = vmov (!%p191_p2), 0.0   ;;  %v2725_v5 = vld [vmem:[%s3234_s3 + $0x50] sm:$0xff] (!%p191_p2)  }
   0x6   : > { %194 = sbr.rel (%p191_p2) target bundleno = 413 (0x19d), region = 36  ;;  %v2722_v1 = vld [vmem:[%s3234_s3 + $0x100] sm:$0xff] (!%p191_p2)   ;;  %2416 = vmatprep.subr.bf16.mxu1 (!%p191_p2), %v2721_v0  ;;  %275 = vst [vmem:[#allocation2] sm:$0xff] (!%p191_p2), %v2801_v3  ;;  %276 = vst [vmem:[#allocation2 + $0x8] sm:$0x3] (!%p191_p2), %v2801_v3  ;;  %v2724_v4 = vld [vmem:[%s3234_s3 + $0x108] sm:$0xff] (!%p191_p2)  }
   0x7   : > { %277 = vst [vmem:[#allocation2 + $0x10] sm:$0xff] (!%p191_p2), %v2801_v3  ;;  %278 = vst [vmem:[#allocation2 + $0x18] sm:$0x3] (!%p191_p2), %v2801_v3  ;;  %2512 = vmatprep.subr.bf16.mxu0 (!%p191_p2), %v2722_v1  ;;  %2417 = vmatpush3.bf16.msra.mxu1 (!%p191_p2), %v2721_v0  ;;  %v2726_v6 = vld [vmem:[%s3234_s3 + $0x110] sm:$0xff] (!%p191_p2)   ;;  %v2727_v7 = vld [vmem:[%s3234_s3 + $0x58] sm:$0xff] (!%p191_p2)  }
   0x8   : > { %279 = vst [vmem:[#allocation2 + $0x20] sm:$0xff] (!%p191_p2), %v2801_v3  ;;  %280 = vst [vmem:[#allocation2 + $0x28] sm:$0x3] (!%p191_p2), %v2801_v3  ;;  %2513 = vmatpush3.bf16.msra.mxu0 (!%p191_p2), %v2722_v1  ;;  %2418 = vmatprep.subr.bf16.mxu1 (!%p191_p2), %v2723_v2  ;;  %v2728_v8 = vld [vmem:[%s3234_s3 + $0x118] sm:$0xff] (!%p191_p2)   ;;  %v2729_v9 = vld [vmem:[%s3234_s3 + $0x60] sm:$0xff] (!%p191_p2)  }
   0x9   : > { %281 = vst [vmem:[#allocation2 + $0x30] sm:$0xff] (!%p191_p2), %v2801_v3  ;;  %282 = vst [vmem:[#allocation2 + $0x38] sm:$0x3] (!%p191_p2), %v2801_v3  ;;  %2514 = vmatprep.subr.bf16.mxu0 (!%p191_p2), %v2724_v4  ;;  %v2730_v10 = vld [vmem:[%s3234_s3 + $0x120] sm:$0xff] (!%p191_p2)   ;;  %v2731_v11 = vld [vmem:[%s3234_s3 + $0x68] sm:$0xff] (!%p191_p2)  }
   0xa   : > { %283 = vst [vmem:[#allocation2 + $0x40] sm:$0xff] (!%p191_p2), %v2801_v3  ;;  %284 = vst [vmem:[#allocation2 + $0x48] sm:$0x3] (!%p191_p2), %v2801_v3  ;;  %v2030_v13 = vld [vmem:[%s3232_s1] ss:$0 sm:$0xff] (!%p191_p2)  ;;  %v2732_v15 = vld [vmem:[%s3234_s3 + $0x128] sm:$0xff] (!%p191_p2)  }
   0xb   : > { %285 = vst [vmem:[#allocation2 + $0x50] sm:$0xff] (!%p191_p2), %v2801_v3  ;;  %286 = vst [vmem:[#allocation2 + $0x58] sm:$0x3] (!%p191_p2), %v2801_v3  ;;  %2419 = vmatpush3.bf16.msra.mxu1 (!%p191_p2), %v2723_v2  ;;  %v2920_v14 = vld [vmem:[%s3233_s2] ss:$0 sm:$0xff] (!%p191_p2)  ;;  %v2733_v19 = vld [vmem:[%s3234_s3 + $0x70] sm:$0xff] (!%p191_p2)  }
   0xc   : > { %287 = vst [vmem:[#allocation2 + $0x60] sm:$0xff] (!%p191_p2), %v2801_v3  ;;  %288 = vst [vmem:[#allocation2 + $0x68] sm:$0x3] (!%p191_p2), %v2801_v3  ;;  %2515 = vmatpush3.bf16.msra.mxu0 (!%p191_p2), %v2724_v4  ;;  %2420 = vmatprep.subr.bf16.mxu1 (!%p191_p2), %v2725_v5  ;;  %v2734_v25 = vld [vmem:[%s3234_s3 + $0x130] sm:$0xff] (!%p191_p2)   ;;  %v2735_v32 = vld [vmem:[%s3234_s3 + $0x78] sm:$0xff] (!%p191_p2)  }
   0xd   : > { %289 = vst [vmem:[#allocation2 + $0x70] sm:$0xff] %v2801_v3  ;;  %290 = vst [vmem:[#allocation2 + $0x78] sm:$0x3] %v2801_v3  ;;  %s3239_s19 = smov (!%p2851_p3, %s2020_s19), 1  ;;  %2516 = vmatprep.subr.bf16.mxu0 %v2726_v6  ;;  %v336_v17 = vld [vmem:[#allocation2 + $0x1] sm:$0xff]  ;;  %v2736_v33 = vld [vmem:[%s3234_s3 + $0x138] sm:$0xff]  }
   0xe   : > { %291 = vst [vmem:[#allocation2 + $0x80] sm:$0xff] %v2801_v3  ;;  %292 = vst [vmem:[#allocation2 + $0x88] sm:$0x3] %v2801_v3  ;;  %s2270_s12 = sshll.u32 %s3239_s19, 6  ;;  %v2737_v34 = vld [vmem:[%s3234_s3] sm:$0xff]   ;;  %v2739_v39 = vld [vmem:[%s3234_s3 + $0x8] sm:$0xff]  }
   0xf   : > { %293 = vst [vmem:[#allocation2 + $0x90] sm:$0xff] %v2801_v3  ;;  %294 = vst [vmem:[#allocation2 + $0x98] sm:$0x3] %v2801_v3  ;;  %2421 = vmatpush3.bf16.msra.mxu1 %v2725_v5  ;;  %s2908_s21 = scalar_lea.vmem %s3231_s0, %s2270_s12  ;;  %v2738_v35 = vld [vmem:[%s3234_s3 + $0x140] sm:$0xff]   ;;  %v2740_v42 = vld [vmem:[%s3234_s3 + $0x148] sm:$0xff]   ;;  %s231_s20 = scalar_lea.vmem %s3235_s4, %s2270_s12 }
  0x10   : > { %2517 = vmatpush3.bf16.msra.mxu0 %v2726_v6  ;;  %2422 = vmatprep.subr.bf16.mxu1 %v2727_v7  ;;  %v237_v12 = vld [vmem:[%s2908_s21] sm:$0xff]  ;;  %v238_v18 = vld [vmem:[%s2908_s21 + $0x8] sm:$0xff]  ;;  %v239_v22 = vld [vmem:[%s2908_s21 + $0x10] sm:$0xff]  ;;  %s2029_s12 = sshll.u32 %s3239_s19, 1 }
  0x11   : > { %2518 = vmatprep.subr.bf16.mxu0 %v2728_v8  ;;  %v252_v16 = vmul.f32 %v2030_v13, %v237_v12  ;;  %v253_v21 = vmul.f32 %v2030_v13, %v238_v18  ;;  %v254_v23 = vmul.f32 %v2030_v13, %v239_v22  ;;  %v240_v24 = vld [vmem:[%s2908_s21 + $0x18] sm:$0xff]  ;;  %v241_v37 = vld [vmem:[%s2908_s21 + $0x20] sm:$0xff]  ;;  %v242_v41 = vld [vmem:[%s2908_s21 + $0x28] sm:$0xff]  ;;  %s235_s24 = scalar_lea.vmem %s3236_s5, %s2029_s12 }
  0x12   : > { %v255_v28 = vmul.f32 %v2030_v13, %v240_v24  ;;  %v256_v40 = vmul.f32 %v2030_v13, %v241_v37  ;;  %v257_v43 = vmul.f32 %v2030_v13, %v242_v41  ;;  %v243_v45 = vld [vmem:[%s2908_s21 + $0x30] sm:$0xff]  ;;  %v244_v46 = vld [vmem:[%s2908_s21 + $0x38] sm:$0xff]  ;;  %v2745_v1 = vld [vmem:[%s3234_s3 + $0x20] sm:$0xff]  }
  0x13   : > { %2423 = vmatpush3.bf16.msra.mxu1 %v2727_v7  ;;  %v267_v20 = vadd.f32 %v2920_v14, %v252_v16  ;;  %v268_v27 = vadd.f32 %v2920_v14, %v253_v21  ;;  %v269_v29 = vadd.f32 %v2920_v14, %v254_v23  ;;  %v258_v48 = vmul.f32 %v2030_v13, %v243_v45  ;;  %v2741_v51 = vld [vmem:[%s3234_s3 + $0x10] sm:$0xff]   ;;  %v2743_v61 = vld [vmem:[%s3234_s3 + $0x18] sm:$0xff]   ;;  %v2746_v2 = vld [vmem:[%s3234_s3 + $0x160] sm:$0xff]  }
  0x14   : > { %2519 = vmatpush3.bf16.msra.mxu0 %v2728_v8  ;;  %2424 = vmatprep.subr.bf16.mxu1 %v2729_v9  ;;  %v270_v31 = vadd.f32 %v2920_v14, %v255_v28  ;;  %v271_v44 = vadd.f32 %v2920_v14, %v256_v40  ;;  %v272_v47 = vadd.f32 %v2920_v14, %v257_v43  ;;  %v2742_v55 = vld [vmem:[%s3234_s3 + $0x150] sm:$0xff]   ;;  %v2744_v62 = vld [vmem:[%s3234_s3 + $0x158] sm:$0xff]   ;;  %v2747_v4 = vld [vmem:[%s3234_s3 + $0x28] sm:$0xff]  }
  0x15   : > { %2520 = vmatprep.subr.bf16.mxu0 %v2730_v10  ;;  %296 = vst [vmem:[#allocation2 + $0x11] sm:$0xff] %v267_v20  ;;  %v2272_v26 = vpack.c.bf16 %v267_v20, %v336_v17  ;;  %297 = vst [vmem:[#allocation2 + $0x21] sm:$0xff] %v268_v27  ;;  %v2288_v30 = vpack.c.bf16 %v268_v27, %v267_v20  ;;  %v2950_v36 = vpack.c.bf16 %v269_v29, %v268_v27  ;;  %v2748_v5 = vld [vmem:[%s3234_s3 + $0x168] sm:$0xff]   ;;  %v2749_v6 = vld [vmem:[%s3234_s3 + $0x30] sm:$0xff]  }
  0x16   : > { %298 = vst [vmem:[#allocation2 + $0x31] sm:$0xff] %v269_v29  ;;  %299 = vst [vmem:[#allocation2 + $0x41] sm:$0xff] %v270_v31  ;;  %v2289_v38 = vpack.c.bf16 %v270_v31, %v269_v29  ;;  %v259_v49 = vmul.f32 %v2030_v13, %v244_v46  ;;  %v2965_v50 = vpack.c.bf16 %v271_v44, %v270_v31  ;;  %v2750_v7 = vld [vmem:[%s3234_s3 + $0x170] sm:$0xff]   ;;  %v2751_v8 = vld [vmem:[%s3234_s3 + $0x38] sm:$0xff]  }
  0x17   : > { %2425 = vmatpush3.bf16.msra.mxu1 %v2729_v9  ;;  %2432 = vmatprep.mubr.bf16.mxu1 %v2272_v26  ;;  %300 = vst [vmem:[#allocation2 + $0x51] sm:$0xff] %v271_v44  ;;  %301 = vst [vmem:[#allocation2 + $0x61] sm:$0xff] %v272_v47  ;;  %v2290_v52 = vpack.c.bf16 %v272_v47, %v271_v44  ;;  %v273_v53 = vadd.f32 %v2920_v14, %v258_v48  ;;  %v2752_v9 = vld [vmem:[%s3234_s3 + $0x178] sm:$0xff]   ;;  %v2753_v12 = vld [vmem:[%s3234_s3 + $0x80] sm:$0xff]  }
  0x18   : > { %2521 = vmatpush3.bf16.msra.mxu0 %v2730_v10  ;;  %2426 = vmatprep.subr.bf16.mxu1 %v2731_v11  ;;  %v2972_v54 = vadd.f32 %v2920_v14, %v259_v49  ;;  %v2754_v14 = vld [vmem:[%s3234_s3 + $0x180] sm:$0xff]   ;;  %v2756_v23 = vld [vmem:[%s3234_s3 + $0x188] sm:$0xff]   ;;  %v2757_v26 = vld [vmem:[%s3234_s3 + $0x90] sm:$0xff]  }
  0x19   : > { %2522 = vmatprep.subr.bf16.mxu0 %v2732_v15  ;;  %2528 = vmatprep.mubr.bf16.mxu0 %v2288_v30  ;;  %302 = vst [vmem:[#allocation2 + $0x71] sm:$0xff] %v273_v53  ;;  %v2978_v56 = vpack.c.bf16 %v273_v53, %v272_v47  ;;  %v2758_v31 = vld [vmem:[%s3234_s3 + $0x190] sm:$0xff]   ;;  %v2760_v37 = vld [vmem:[%s3234_s3 + $0x198] sm:$0xff]   ;;  %v2762_v40 = vld [vmem:[%s3234_s3 + $0x1a0] sm:$0xff]  }
  0x1a   : > { %303 = vst [vmem:[#allocation2 + $0x81] sm:$0xff] %v2972_v54  ;;  %v2291_v58 = vpack.c.bf16 %v2972_v54, %v273_v53  ;;  %v2763_v41 = vld [vmem:[%s3234_s3 + $0xa8] sm:$0xff]   ;;  %v2765_v43 = vld [vmem:[%s3234_s3 + $0xb0] sm:$0xff]   ;;  %v2767_v45 = vld [vmem:[%s3234_s3 + $0xb8] sm:$0xff]  }
  0x1b   : > { %2427 = vmatpush3.bf16.msra.mxu1 %v2731_v11  ;;  %v2766_v44 = vld [vmem:[%s3234_s3 + $0x1b0] sm:$0xff]   ;;  %v2768_v46 = vld [vmem:[%s3234_s3 + $0x1b8] sm:$0xff]   ;;  %v2769_v47 = vld [vmem:[%s3234_s3 + $0xc0] sm:$0xff]  }
  0x1c   : > { %2523 = vmatpush3.bf16.msra.mxu0 %v2732_v15  ;;  %2428 = vmatprep.subr.bf16.mxu1 %v2733_v19  ;;  %v2981_v57 = vld [vmem:[#allocation2 + $0x10] sm:$0xff]  ;;  %v2986_v60 = vld [vmem:[#allocation2 + $0x22] sm:$0xff] }
  0x1d   : > { %2524 = vmatprep.subr.bf16.mxu0 %v2734_v25  ;;  %v2984_v59 = vld [vmem:[#allocation2 + $0x12] sm:$0xff]  ;;  %v2276_v63 = vpack.c.bf16 %v2981_v57, %v2801_v3  ;;  %v3023_v10 = vld [vmem:[#allocation2 + $0x20] sm:$0xff] }
  0x1e   : > { %v2292_v0 = vpack.c.bf16 %v2986_v60, %v2984_v59  ;;  %v3025_v11 = vld [vmem:[#allocation2 + $0x30] sm:$0xff]  ;;  %v3035_v15 = vld [vmem:[#allocation2 + $0x42] sm:$0xff] }
  0x1f   : > { %2429 = vmatpush3.bf16.msra.mxu1 %v2733_v19  ;;  %v3030_v13 = vld [vmem:[#allocation2 + $0x32] sm:$0xff]  ;;  %v3037_v16 = vld [vmem:[#allocation2 + $0x40] sm:$0xff]  ;;  %v2277_v18 = vpack.c.bf16 %v3025_v11, %v3023_v10  ;;  %v2755_v19 = vld [vmem:[%s3234_s3 + $0x88] sm:$0xff]  }
  0x20   : > { %2525 = vmatpush3.bf16.msra.mxu0 %v2734_v25  ;;  %2430 = vmatprep.subr.bf16.mxu1 %v2735_v32  ;;  %v3039_v17 = vld [vmem:[#allocation2 + $0x50] sm:$0xff]  ;;  %v2293_v21 = vpack.c.bf16 %v3035_v15, %v3030_v13  ;;  %v3050_v22 = vld [vmem:[#allocation2 + $0x62] sm:$0xff]  ;;  %v3119_v49 = vpack.c.bf16 %v3030_v13, %v2986_v60 }
  0x21   : > { %2526 = vmatprep.subr.bf16.mxu0 %v2736_v33  ;;  %v3046_v20 = vld [vmem:[#allocation2 + $0x52] sm:$0xff]  ;;  %v3057_v24 = vpack.c.bf16 %v3039_v17, %v3037_v16  ;;  %v3059_v25 = vld [vmem:[#allocation2 + $0x60] sm:$0xff] }
  0x22   : > { %v2294_v27 = vpack.c.bf16 %v3050_v22, %v3046_v20  ;;  %v3066_v28 = vld [vmem:[#allocation2 + $0x70] sm:$0xff]  ;;  %v3070_v30 = vld [vmem:[#allocation2 + $0x82] sm:$0xff]  ;;  %v3129_v53 = vpack.c.bf16 %v3046_v20, %v3035_v15 }
  0x23   : > { %2431 = vmatpush3.bf16.msra.mxu1 %v2735_v32  ;;  %v3068_v29 = vld [vmem:[#allocation2 + $0x72] sm:$0xff]  ;;  %v2279_v32 = vpack.c.bf16 %v3066_v28, %v3059_v25  ;;  %v2770_v48 = vld [vmem:[%s3234_s3 + $0x1c0] sm:$0xff]  }
  0x24   : > { %2527 = vmatpush3.bf16.msra.mxu0 %v2736_v33  ;;  %2440 = vmatprep.subr.bf16.mxu1 %v2737_v34  ;;  %v643_v33 = vld [vmem:[#allocation2 + $0x2] sm:$0xff]  ;;  %v3144_v60 = vpack.c.bf16 %v3068_v29, %v3050_v22  ;;  %v2791_v15 = vld [vmem:[%s3234_s3 + $0x230] sm:$0xff]  }
  0x25   : > { %2536 = vmatprep.subr.bf16.mxu0 %v2738_v35 }
  0x26   : > { %2433 = vmatmul.mubr.bf16.vlgmr.msra.gmra.mrb[0].mxu1 %v2950_v36 }
  0x27   : > { %2441 = vmatpush3.bf16.msra.mxu1 %v2737_v34  ;;  %2529 = vmatmul.mubr.bf16.vlgmr.msra.gmra.mrb[0].mxu0 %v2289_v38  ;;  %v2295_v34 = vpack.c.bf16 %v3070_v30, %v3068_v29  ;;  %v2280_v38 = vpack.c.bf16 %v2984_v59, %v643_v33  ;;  %v2774_v59 = vld [vmem:[%s3234_s3 + $0x1d0] sm:$0xff]  }
  0x28   : > { %2537 = vmatpush3.bf16.msra.mxu0 %v2738_v35  ;;  %2442 = vmatprep.subr.bf16.mxu1 %v2739_v39  ;;  %v2759_v35 = vld [vmem:[%s3234_s3 + $0x98] sm:$0xff]  }
  0x29   : > { %2538 = vmatprep.subr.bf16.mxu0 %v2740_v42  ;;  %2436 = vmatprep.mubr.bf16.mxu1 %v2965_v50 }
  0x2a   : > { %2532 = vmatprep.mubr.bf16.mxu0 %v2290_v52  ;;  %v2772_v52 = vld [vmem:[%s3234_s3 + $0x1c8] sm:$0xff]  }
  0x2b   : > { %2443 = vmatpush3.bf16.msra.mxu1 %v2739_v39  ;;  %v2761_v39 = vld [vmem:[%s3234_s3 + $0xa0] sm:$0xff]  }
  0x2c   : > { %2539 = vmatpush3.bf16.msra.mxu0 %v2740_v42  ;;  %2444 = vmatprep.subr.bf16.mxu1 %v2741_v51  ;;  %v2764_v42 = vld [vmem:[%s3234_s3 + $0x1a8] sm:$0xff]  }
  0x2d   : > { %2540 = vmatprep.subr.bf16.mxu0 %v2742_v55 }
  0x2e   : > { %2437 = vmatmul.mubr.bf16.gmra.mrb[4].mxu1 %v2978_v56 }
  0x2f   : > { %2445 = vmatpush3.bf16.msra.mxu1 %v2741_v51  ;;  %2533 = vmatmul.mubr.bf16.gmra.mrb[4].mxu0 %v2291_v58  ;;  %v2771_v51 = vld [vmem:[%s3234_s3 + $0xc8] sm:$0xff]   ;;  %v3136_v58 = vld [vmem:[#allocation2 + $0x80] sm:$0xff] }
  0x30   : > { %2541 = vmatpush3.bf16.msra.mxu0 %v2742_v55  ;;  %2446 = vmatprep.subr.bf16.mxu1 %v2743_v61  ;;  %v2773_v55 = vld [vmem:[%s3234_s3 + $0xd0] sm:$0xff]   ;;  %v2287_v13 = vpack.c.bf16 %v3136_v58, %v3066_v28 }
  0x31   : > { %2542 = vmatprep.subr.bf16.mxu0 %v2744_v62  ;;  %2456 = vmatprep.mubr.bf16.mxu1 %v2276_v63  ;;  %v2776_v63 = vld [vmem:[%s3234_s3 + $0x1d8] sm:$0xff]  }
  0x32   : > { %2552 = vmatprep.mubr.bf16.mxu0 %v2292_v0  ;;  %v2284_v0 = vpack.c.bf16 %v3023_v10, %v2981_v57  ;;  %v2779_v57 = vld [vmem:[%s3234_s3 + $0xe8] sm:$0xff]   ;;  %v2286_v10 = vpack.c.bf16 %v3059_v25, %v3039_v17  ;;  %v1719_v17 = vld [vmem:[#allocation2 + $0x92] sm:$0xff] }
  0x33   : > { %2447 = vmatpush3.bf16.msra.mxu1 %v2743_v61  ;;  %v2299_v61 = vpack.c.bf16 %v2801_v3, %v3136_v58  ;;  %v2777_v3 = vld [vmem:[%s3234_s3 + $0xe0] sm:$0xff]  }
  0x34   : > { %2543 = vmatpush3.bf16.msra.mxu0 %v2744_v62  ;;  %2448 = vmatprep.subr.bf16.mxu1 %v2745_v1  ;;  %v2775_v62 = vld [vmem:[%s3234_s3 + $0xd8] sm:$0xff]  }
  0x35   : > { %2544 = vmatprep.subr.bf16.mxu0 %v2746_v2 }
  0x37   : > { %2449 = vmatpush3.bf16.msra.mxu1 %v2745_v1  ;;  %v2778_v1 = vld [vmem:[%s3234_s3 + $0x1e0] sm:$0xff]  }
  0x38   : > { %2545 = vmatpush3.bf16.msra.mxu0 %v2746_v2  ;;  %2450 = vmatprep.subr.bf16.mxu1 %v2747_v4  ;;  %v2780_v2 = vld [vmem:[%s3234_s3 + $0x1e8] sm:$0xff]  }
  0x39   : > { %2546 = vmatprep.subr.bf16.mxu0 %v2748_v5 }
  0x3b   : > { %2451 = vmatpush3.bf16.msra.mxu1 %v2747_v4  ;;  %v2781_v4 = vld [vmem:[%s3234_s3 + $0xf0] sm:$0xff]  }
  0x3c   : > { %2547 = vmatpush3.bf16.msra.mxu0 %v2748_v5  ;;  %2452 = vmatprep.subr.bf16.mxu1 %v2749_v6  ;;  %v2783_v5 = vld [vmem:[%s3234_s3 + $0xf8] sm:$0xff]  }
  0x3d   : > { %2548 = vmatprep.subr.bf16.mxu0 %v2750_v7 }
  0x3f   : > { %2453 = vmatpush3.bf16.msra.mxu1 %v2749_v6  ;;  %v2784_v6 = vld [vmem:[%s3234_s3 + $0x1f8] sm:$0xff]  }
  0x40   : > { %2549 = vmatpush3.bf16.msra.mxu0 %v2750_v7  ;;  %2454 = vmatprep.subr.bf16.mxu1 %v2751_v8  ;;  %v2785_v7 = vld [vmem:[%s3234_s3 + $0x200] sm:$0xff]  }
  0x41   : > { %2550 = vmatprep.subr.bf16.mxu0 %v2752_v9 }
  0x43   : > { %2455 = vmatpush3.bf16.msra.mxu1 %v2751_v8  ;;  %v2285_v8 = vpack.c.bf16 %v3037_v16, %v3025_v11  ;;  %v2787_v11 = vld [vmem:[%s3234_s3 + $0x210] sm:$0xff]   ;;  %v2792_v16 = vld [vmem:[%s3234_s3 + $0x238] sm:$0xff]  }
  0x44   : > { %2551 = vmatpush3.bf16.msra.mxu0 %v2752_v9  ;;  %2464 = vmatprep.subr.bf16.mxu1 %v2753_v12  ;;  %v2786_v9 = vld [vmem:[%s3234_s3 + $0x208] sm:$0xff]  }
  0x45   : > { %2560 = vmatprep.subr.bf16.mxu0 %v2754_v14 }
  0x46   : > { %2457 = vmatmul.mubr.bf16.vlgmr.msra.gmra.mrb[0].mxu1 %v2277_v18 }
  0x47   : > { %2465 = vmatpush3.bf16.msra.mxu1 %v2753_v12  ;;  %2553 = vmatmul.mubr.bf16.vlgmr.msra.gmra.mrb[0].mxu0 %v2293_v21  ;;  %v1541_v12 = vld [vmem:[#allocation2 + $0x91] sm:$0xff] }
  0x48   : > { %2561 = vmatpush3.bf16.msra.mxu0 %v2754_v14  ;;  %2466 = vmatprep.subr.bf16.mxu1 %v2755_v19  ;;  %v2303_v14 = vpack.c.bf16 %v1541_v12, %v2972_v54  ;;  %v2790_v54 = vld [vmem:[%s3234_s3 + $0x228] sm:$0xff]  }
  0x49   : > { %2562 = vmatprep.subr.bf16.mxu0 %v2756_v23  ;;  %2460 = vmatprep.mubr.bf16.mxu1 %v3057_v24 }
  0x4a   : > { %2556 = vmatprep.mubr.bf16.mxu0 %v2294_v27 }
  0x4b   : > { %2467 = vmatpush3.bf16.msra.mxu1 %v2755_v19 }
  0x4c   : > { %2563 = vmatpush3.bf16.msra.mxu0 %v2756_v23  ;;  %2468 = vmatprep.subr.bf16.mxu1 %v2757_v26 }
  0x4d   : > { %2564 = vmatprep.subr.bf16.mxu0 %v2758_v31 }
  0x4e   : > { %2461 = vmatmul.mubr.bf16.gmra.mrb[4].mxu1 %v2279_v32 }
  0x4f   : > { %2469 = vmatpush3.bf16.msra.mxu1 %v2757_v26  ;;  %2557 = vmatmul.mubr.bf16.gmra.mrb[4].mxu0 %v2295_v34 }
  0x50   : > { %2565 = vmatpush3.bf16.msra.mxu0 %v2758_v31  ;;  %2470 = vmatprep.subr.bf16.mxu1 %v2759_v35 }
  0x51   : > { %2566 = vmatprep.subr.bf16.mxu0 %v2760_v37  ;;  %2480 = vmatprep.mubr.bf16.mxu1 %v2280_v38 }
  0x52   : > { %2576 = vmatprep.mubr.bf16.mxu0 %v2277_v18  ;;  %v2307_v18 = vpack.c.bf16 %v1719_v17, %v3070_v30 }
  0x53   : > { %2471 = vmatpush3.bf16.msra.mxu1 %v2759_v35 }
  0x54   : > { %2567 = vmatpush3.bf16.msra.mxu0 %v2760_v37  ;;  %2472 = vmatprep.subr.bf16.mxu1 %v2761_v39 }
  0x55   : > { %2568 = vmatprep.subr.bf16.mxu0 %v2762_v40 }
  0x57   : > { %2473 = vmatpush3.bf16.msra.mxu1 %v2761_v39 }
  0x58   : > { %2569 = vmatpush3.bf16.msra.mxu0 %v2762_v40  ;;  %2474 = vmatprep.subr.bf16.mxu1 %v2763_v41 }
  0x59   : > { %2570 = vmatprep.subr.bf16.mxu0 %v2764_v42 }
  0x5b   : > { %2475 = vmatpush3.bf16.msra.mxu1 %v2763_v41 }
  0x5c   : > { %2571 = vmatpush3.bf16.msra.mxu0 %v2764_v42  ;;  %2476 = vmatprep.subr.bf16.mxu1 %v2765_v43 }
  0x5d   : > { %2572 = vmatprep.subr.bf16.mxu0 %v2766_v44 }
  0x5f   : > { %2477 = vmatpush3.bf16.msra.mxu1 %v2765_v43 }
  0x60   : > { %2573 = vmatpush3.bf16.msra.mxu0 %v2766_v44  ;;  %2478 = vmatprep.subr.bf16.mxu1 %v2767_v45 }
  0x61   : > { %2574 = vmatprep.subr.bf16.mxu0 %v2768_v46 }
  0x63   : > { %2479 = vmatpush3.bf16.msra.mxu1 %v2767_v45 }
  0x64   : > { %2575 = vmatpush3.bf16.msra.mxu0 %v2768_v46  ;;  %2488 = vmatprep.subr.bf16.mxu1 %v2769_v47 }
  0x65   : > { %2584 = vmatprep.subr.bf16.mxu0 %v2770_v48 }
  0x66   : > { %2481 = vmatmul.mubr.bf16.vlgmr.msra.gmra.mrb[0].mxu1 %v3119_v49 }
  0x67   : > { %2489 = vmatpush3.bf16.msra.mxu1 %v2769_v47  ;;  %2577 = vmatmul.mubr.bf16.vlgmr.msra.gmra.mrb[0].mxu0 %v3057_v24 }
  0x68   : > { %2585 = vmatpush3.bf16.msra.mxu0 %v2770_v48  ;;  %2490 = vmatprep.subr.bf16.mxu1 %v2771_v51 }
  0x69   : > { %2586 = vmatprep.subr.bf16.mxu0 %v2772_v52  ;;  %2484 = vmatprep.mubr.bf16.mxu1 %v3129_v53 }
  0x6a   : > { %2580 = vmatprep.mubr.bf16.mxu0 %v2279_v32 }
  0x6b   : > { %2491 = vmatpush3.bf16.msra.mxu1 %v2771_v51 }
  0x6c   : > { %2587 = vmatpush3.bf16.msra.mxu0 %v2772_v52  ;;  %2492 = vmatprep.subr.bf16.mxu1 %v2773_v55 }
  0x6d   : > { %2588 = vmatprep.subr.bf16.mxu0 %v2774_v59 }
  0x6e   : > { %2485 = vmatmul.mubr.bf16.gmra.mrb[4].mxu1 %v3144_v60 }
  0x6f   : > { %2493 = vmatpush3.bf16.msra.mxu1 %v2773_v55  ;;  %2581 = vmatmul.mubr.bf16.gmra.mrb[4].mxu0 %v2299_v61 }
  0x70   : > { %2589 = vmatpush3.bf16.msra.mxu0 %v2774_v59  ;;  %2494 = vmatprep.subr.bf16.mxu1 %v2775_v62 }
  0x71   : > { %2590 = vmatprep.subr.bf16.mxu0 %v2776_v63  ;;  %2504 = vmatprep.mubr.bf16.mxu1 %v2284_v0 }
  0x72   : > { %2600 = vmatprep.mubr.bf16.mxu0 %v2950_v36  ;;  %v2782_v36 = vld [vmem:[%s3234_s3 + $0x1f0] sm:$0xff]  }
  0x73   : > { %2495 = vmatpush3.bf16.msra.mxu1 %v2775_v62 }
  0x74   : > { %2591 = vmatpush3.bf16.msra.mxu0 %v2776_v63  ;;  %2496 = vmatprep.subr.bf16.mxu1 %v2777_v3 }
  0x75   : > { %2592 = vmatprep.subr.bf16.mxu0 %v2778_v1 }
  0x77   : > { %2497 = vmatpush3.bf16.msra.mxu1 %v2777_v3 }
  0x78   : > { %2593 = vmatpush3.bf16.msra.mxu0 %v2778_v1  ;;  %2498 = vmatprep.subr.bf16.mxu1 %v2779_v57 }
  0x79   : > { %2594 = vmatprep.subr.bf16.mxu0 %v2780_v2 }
  0x7b   : > { %2499 = vmatpush3.bf16.msra.mxu1 %v2779_v57 }
  0x7c   : > { %2595 = vmatpush3.bf16.msra.mxu0 %v2780_v2  ;;  %2500 = vmatprep.subr.bf16.mxu1 %v2781_v4 }
  0x7d   : > { %2596 = vmatprep.subr.bf16.mxu0 %v2782_v36 }
  0x7f   : > { %2501 = vmatpush3.bf16.msra.mxu1 %v2781_v4 }
  0x80   : > { %2597 = vmatpush3.bf16.msra.mxu0 %v2782_v36  ;;  %2502 = vmatprep.subr.bf16.mxu1 %v2783_v5 }
  0x81   : > { %2598 = vmatprep.subr.bf16.mxu0 %v2784_v6 }
  0x83   : > { %2503 = vmatpush3.bf16.msra.mxu1 %v2783_v5 }
  0x84   : > { %2599 = vmatpush3.bf16.msra.mxu0 %v2784_v6  ;;  %2632 = vmatprep.subr.bf16.mxu1 %v2785_v7 }
  0x85   : > { %2608 = vmatprep.subr.bf16.mxu0 %v2785_v7 }
  0x86   : > { %2505 = vmatmul.mubr.bf16.vlgmr.msra.gmra.mrb[0].mxu1 %v2285_v8 }
  0x87   : > { %2601 = vmatmul.mubr.bf16.vlgmr.msra.gmra.mrb[0].mxu0 %v2965_v50  ;;  %2640 = vmatpush3.bf16.msra.mxu1 %v2785_v7  ;;  %v2788_v50 = vld [vmem:[%s3234_s3 + $0x218] sm:$0xff]  }
  0x88   : > { %2609 = vmatpush3.bf16.msra.mxu0 %v2785_v7  ;;  %2633 = vmatprep.subr.bf16.mxu1 %v2786_v9 }
  0x89   : > { %2610 = vmatprep.subr.bf16.mxu0 %v2786_v9  ;;  %2508 = vmatprep.mubr.bf16.mxu1 %v2286_v10 }
  0x8a   : > { %2604 = vmatprep.mubr.bf16.mxu0 %v2978_v56  ;;  %v2789_v56 = vld [vmem:[%s3234_s3 + $0x220] sm:$0xff]  }
  0x8b   : > { %2641 = vmatpush3.bf16.msra.mxu1 %v2786_v9 }
  0x8c   : > { %2611 = vmatpush3.bf16.msra.mxu0 %v2786_v9  ;;  %2634 = vmatprep.subr.bf16.mxu1 %v2787_v11 }
  0x8d   : > { %2612 = vmatprep.subr.bf16.mxu0 %v2787_v11 }
  0x8e   : > { %2509 = vmatmul.mubr.bf16.gmra.mrb[4].mxu1 %v2287_v13 }
  0x8f   : > { %2605 = vmatmul.mubr.bf16.gmra.mrb[4].mxu0 %v2303_v14  ;;  %2642 = vmatpush3.bf16.msra.mxu1 %v2787_v11 }
  0x90   : > { %2613 = vmatpush3.bf16.msra.mxu0 %v2787_v11  ;;  %2635 = vmatprep.subr.bf16.mxu1 %v2788_v50 }
  0x91   : > { %2614 = vmatprep.subr.bf16.mxu0 %v2788_v50  ;;  %2624 = vmatprep.mubr.bf16.mxu0 %v3119_v49 }
  0x92   : > { %2628 = vmatprep.mubr.bf16.mxu1 %v3144_v60 }
  0x93   : > { %2643 = vmatpush3.bf16.msra.mxu1 %v2788_v50 }
  0x94   : > { %2615 = vmatpush3.bf16.msra.mxu0 %v2788_v50  ;;  %2636 = vmatprep.subr.bf16.mxu1 %v2789_v56 }
  0x95   : > { %2616 = vmatprep.subr.bf16.mxu0 %v2789_v56 }
  0x97   : > { %2644 = vmatpush3.bf16.msra.mxu1 %v2789_v56 }
  0x98   : > { %2617 = vmatpush3.bf16.msra.mxu0 %v2789_v56  ;;  %2637 = vmatprep.subr.bf16.mxu1 %v2790_v54 }
  0x99   : > { %2618 = vmatprep.subr.bf16.mxu0 %v2790_v54 }
  0x9b   : > { %2645 = vmatpush3.bf16.msra.mxu1 %v2790_v54 }
  0x9c   : > { %2619 = vmatpush3.bf16.msra.mxu0 %v2790_v54  ;;  %2638 = vmatprep.subr.bf16.mxu1 %v2791_v15 }
  0x9d   : > { %2620 = vmatprep.subr.bf16.mxu0 %v2791_v15 }
  0x9f   : > { %2646 = vmatpush3.bf16.msra.mxu1 %v2791_v15 }
  0xa0   : > { %2621 = vmatpush3.bf16.msra.mxu0 %v2791_v15  ;;  %2639 = vmatprep.subr.bf16.mxu1 %v2792_v16 }
  0xa1   : > { %2622 = vmatprep.subr.bf16.mxu0 %v2792_v16 }
  0xa3   : > { %2647 = vmatpush3.bf16.msra.mxu1 %v2792_v16 }
  0xa4   : > { %2623 = vmatpush3.bf16.msra.mxu0 %v2792_v16 }
  0xa6   : > { %2629 = vmatmul.mubr.bf16.vlgmr.msra.gmra.mrb[8].mxu1 %v2307_v18 }
  0xa7   : > { %2625 = vmatmul.mubr.bf16.vlgmr.msra.gmra.mrb[0].mxu0 %v3129_v53 }
 0x159   : > { %v2506_v19 = vpop.f32.mrb[0].mxu1 }
 0x15a   : > { %v960_v20 = vpop.f32.mrb[1].mxu1 }
 0x15b   : > { %v2507_v21 = vpop.f32.mrb[2].mxu1 }
 0x15c   : > { %v963_v22 = vpop.f32.mrb[3].mxu1 }
 0x161   : > { %v2510_v23 = vpop.f32.mrb[4].mxu1 }
 0x162   : > { %v2606_v24 = vpop.f32.mrb[4].mxu0  ;;  %v976_v25 = vpop.f32.mrb[5].mxu1 }
 0x163   : > { %v2652_v26 = vadd.f32 %v2606_v24, %v2510_v23  ;;  %v1689_v27 = vpop.f32.mrb[5].mxu0  ;;  %v2511_v28 = vpop.f32.mrb[6].mxu1 }
 0x164   : > { %v2654_v29 = vadd.f32 %v1689_v27, %v976_v25  ;;  %v2607_v31 = vpop.f32.mrb[6].mxu0  ;;  %v979_v32 = vpop.f32.mrb[7].mxu1 }
 0x165   : > { %v2656_v30 = vadd.f32 %v2607_v31, %v2511_v28  ;;  %v1692_v33 = vpop.f32.mrb[7].mxu0 }
 0x166   : > { %v2658_v34 = vadd.f32 %v1692_v33, %v979_v32 }
 0x179   : > { %v2630_v35 = vpop.f32.mrb[8].mxu1 }
 0x17a   : > { %v2626_v37 = vpop.f32.mrb[0].mxu0  ;;  %v2653_v38 = vadd.f32 %v2652_v26, %v2630_v35  ;;  %v1867_v39 = vpop.f32.mrb[9].mxu1 }
 0x17b   : > { %v2648_v40 = vadd.f32 %v2626_v37, %v2506_v19  ;;  %v1851_v41 = vpop.f32.mrb[1].mxu0  ;;  %v2655_v42 = vadd.f32 %v2654_v29, %v1867_v39  ;;  %v2631_v43 = vpop.f32.mrb[10].mxu1 }
 0x17c   : > { %1896 = vst [vmem:[%s231_s20 + $0x30] sm:$0xff] %v2653_v38  ;;  %v2649_v44 = vadd.f32 %v1851_v41, %v960_v20  ;;  %v2627_v45 = vpop.f32.mrb[2].mxu0  ;;  %v2657_v46 = vadd.f32 %v2656_v30, %v2631_v43  ;;  %v1870_v47 = vpop.f32.mrb[11].mxu1  ;;  %v1918_v5 = vmul.f32 %v2653_v38, %v2653_v38 }
 0x17d   : > { %1892 = vst [vmem:[%s231_s20 + $0x10] sm:$0xff] %v2648_v40  ;;  %1894 = vst [vmem:[%s231_s20 + $0x20] sm:$0xff] %v2655_v42  ;;  %v2650_v48 = vadd.f32 %v2627_v45, %v2507_v21  ;;  %v1854_v49 = vpop.f32.mrb[3].mxu0  ;;  %v2659_v51 = vadd.f32 %v2658_v34, %v1870_v47  ;;  %v1914_v59 = vmul.f32 %v2648_v40, %v2648_v40 }
 0x17e   : > { %1890 = vst [vmem:[%s231_s20] sm:$0xff] %v2649_v44  ;;  %1897 = vst [vmem:[%s231_s20 + $0x38] sm:$0xff] %v2657_v46  ;;  %v2651_v52 = vadd.f32 %v1854_v49, %v963_v22  ;;  %v1912_v53 = vmul.f32 %v2649_v44, %v2649_v44  ;;  %v1916_v3 = vmul.f32 %v2655_v42, %v2655_v42 }
 0x17f   : > { %1893 = vst [vmem:[%s231_s20 + $0x18] sm:$0xff] %v2650_v48  ;;  %1895 = vst [vmem:[%s231_s20 + $0x28] sm:$0xff] %v2659_v51  ;;  %v1915_v62 = vmul.f32 %v2650_v48, %v2650_v48  ;;  %v1917_v4 = vmul.f32 %v2659_v51, %v2659_v51  ;;  %v1919_v8 = vmul.f32 %v2657_v46, %v2657_v46 }
 0x180   : > { %1891 = vst [vmem:[%s231_s20 + $0x8] sm:$0xff] %v2651_v52  ;;  %v1898_v55 = vadd.f32 %v2651_v52, %v2649_v44  ;;  %v1913_v58 = vmul.f32 %v2651_v52, %v2651_v52 }
 0x182   : > { %v1899_v60 = vadd.f32 %v2648_v40, %v1898_v55  ;;  %v1920_v61 = vadd.f32 %v1913_v58, %v1912_v53 }
 0x184   : > { %v1921_v63 = vadd.f32 %v1920_v61, %v1914_v59  ;;  %v1900_v0 = vadd.f32 %v2650_v48, %v1899_v60 }
 0x186   : > { %v1901_v1 = vadd.f32 %v2655_v42, %v1900_v0  ;;  %v1922_v57 = vadd.f32 %v1921_v63, %v1915_v62 }
 0x188   : > { %v1902_v2 = vadd.f32 %v2659_v51, %v1901_v1  ;;  %v1923_v36 = vadd.f32 %v1922_v57, %v1916_v3 }
 0x18a   : > { %v1903_v6 = vadd.f32 %v2653_v38, %v1902_v2  ;;  %v1924_v7 = vadd.f32 %v1923_v36, %v1917_v4 }
 0x18c   : > { %v1904_v9 = vadd.f32 %v2657_v46, %v1903_v6  ;;  %v1925_v10 = vadd.f32 %v1924_v7, %v1918_v5 }
 0x18e   : > { %v1905_v12 = vrot.slane %v1904_v9, 4  ;;  %v1926_v11 = vadd.f32 %v1925_v10, %v1919_v8 }
 0x190   : > { %v1906_v13 = vadd.f32 %v1905_v12, %v1904_v9  ;;  %v1927_v14 = vrot.slane %v1926_v11, 4 }
 0x192   : > { %v1907_v50 = vrot.slane %v1906_v13, 2  ;;  %v1928_v56 = vadd.f32 %v1927_v14, %v1926_v11 }
 0x194   : > { %v1908_v54 = vadd.f32 %v1907_v50, %v1906_v13  ;;  %v1929_v15 = vrot.slane %v1928_v56, 2 }
 0x196   : > { %v1909_v16 = vrot.slane %v1908_v54, 1  ;;  %v1930_v17 = vadd.f32 %v1929_v15, %v1928_v56 }
 0x198   : > { %v1910_v18 = vadd.f32 %v1909_v16, %v1908_v54  ;;  %v1931_v19 = vrot.slane %v1930_v17, 1 }
 0x19a   : > { %1911 = vst [vmem:[%s235_s24] sm:$0x1] %v1910_v18  ;;  %v1932_v20 = vadd.f32 %v1931_v19, %v1930_v17 }
 0x19c   : > { %1933 = vst [vmem:[%s235_s24 + $0x1] sm:$0x1] %v1932_v20 }
 0x19d PF: > { %s16_s18 = sadd.s32 1, %s2799_s18  }
 0x19e   : > { %p13_p4 = scmp.ge.s32.totalorder %s16_s18, 4  }
 0x1a0   :  { %15 = sbr.rel (!%p13_p4) target bundleno = 1 (0x1), region = 88 }

// kernel: resblock_forward.3
= control target key start
LH: loop header
LB: loop body
LE: loop exit
PB: predicated region body
PF: predicated region fallthrough
CT: control target
= control target key end

     0   :  { %s3578_s30 = smov 0   ;;  %s4025_s0 = inlined_call_operand.vmem [shape: bf16[2,9,9,128], index: 0, kind: input, shape index: {}]   ;;  %s4026_s1 = inlined_call_operand.vmem [shape: bf16[2,9,9,128], index: 1, kind: input, shape index: {}]   ;;  %s4027_s2 = inlined_call_operand.vmem [shape: bf16[2,9,9,128], index: 2, kind: input, shape index: {}]   ;;  %s4028_s3 = inlined_call_operand.vmem [shape: bf16[2,9,9,128], index: 3, kind: input, shape index: {}]   ;;  %s4029_s4 = inlined_call_operand.vmem [shape: bf16[3,3,128,128], index: 4, kind: input, shape index: {}]   ;;  %s4030_s5 = inlined_call_operand.vmem [shape: bf16[128,128], index: 5, kind: input, shape index: {}]   ;;  %s4031_s6 = inlined_call_operand.vmem [shape: f32[2,8,8,128], index: 6, kind: output, shape index: {0}]   ;;  %s4032_s7 = inlined_call_operand.vmem [shape: f32[2,2,128], index: 7, kind: output, shape index: {1}]   ;;  %s4033_s8 = inlined_call_operand.vmem [shape: f32[2,8,8,128], index: 8, kind: output, shape index: {2}]   ;;  %s4034_s9 = inlined_call_operand.vmem [shape: f32[2,2,128], index: 9, kind: output, shape index: {3}]  }
   0x1 LB: > { %s2684_s10 = sadd.s32 4294967295, %s3526_s30   ;;  %p2688_p0 = scmp.ge.s32.totalorder %s3526_s30, 1  ;;  %s3526_s30 = sphi %s3578_s30, %s20_s30  }
   0x2   : > { %p324_p1 = scmp.lt.s32.totalorder %s3526_s30, 3 }
   0x4   : > { %p325_p2 = pnand %p2688_p0, %p324_p1 }
   0x5   : > { %v3412_v0 = vld [vmem:[%s4029_s4 + $0x40] sm:$0xff] (!%p325_p2)   ;;  %p388_p3 = scmp.lt.s32.totalorder (!%p325_p2), %s2684_s10, 1  ;;  %v3414_v2 = vld [vmem:[%s4029_s4 + $0x48] sm:$0xff] (!%p325_p2)   ;;  %v3416_v4 = vld [vmem:[%s4029_s4 + $0x50] sm:$0xff] (!%p325_p2)   ;;  %vm766_vm0 = vsmask.f32 (!%p325_p2), 3328 }
   0x6   : > { %328 = sbr.rel (%p325_p2) target bundleno = 414 (0x19e), region = 44  ;;  %v3413_v1 = vld [vmem:[%s4029_s4 + $0x100] sm:$0xff] (!%p325_p2)   ;;  %3099 = vmatprep.subr.bf16.mxu1 (!%p325_p2), %v3412_v0  ;;  %v3415_v3 = vld [vmem:[%s4029_s4 + $0x108] sm:$0xff] (!%p325_p2)   ;;  %v3417_v5 = vld [vmem:[%s4029_s4 + $0x110] sm:$0xff] (!%p325_p2)   ;;  %vm767_vm1 = vsmask.f32 (!%p325_p2), 7440 }
   0x7   : > { %3195 = vmatprep.subr.bf16.mxu0 (!%p325_p2), %v3413_v1  ;;  %3100 = vmatpush3.bf16.msra.mxu1 (!%p325_p2), %v3412_v0  ;;  %v3418_v6 = vld [vmem:[%s4029_s4 + $0x58] sm:$0xff] (!%p325_p2)   ;;  %v3420_v8 = vld [vmem:[%s4029_s4 + $0x60] sm:$0xff] (!%p325_p2)   ;;  %v3422_v10 = vld [vmem:[%s4029_s4 + $0x68] sm:$0xff] (!%p325_p2)  }
   0x8   : > { %3196 = vmatpush3.bf16.msra.mxu0 (!%p325_p2), %v3413_v1  ;;  %3101 = vmatprep.subr.bf16.mxu1 (!%p325_p2), %v3414_v2  ;;  %v3419_v7 = vld [vmem:[%s4029_s4 + $0x118] sm:$0xff] (!%p325_p2)   ;;  %v3421_v9 = vld [vmem:[%s4029_s4 + $0x120] sm:$0xff] (!%p325_p2)   ;;  %v3423_v12 = vld [vmem:[%s4029_s4 + $0x128] sm:$0xff] (!%p325_p2)  }
   0x9   : > { %3197 = vmatprep.subr.bf16.mxu0 (!%p325_p2), %v3415_v3  ;;  %v3424_v14 = vld [vmem:[%s4029_s4 + $0x70] sm:$0xff] (!%p325_p2)   ;;  %v3426_v16 = vld [vmem:[%s4029_s4 + $0x78] sm:$0xff] (!%p325_p2)   ;;  %v3429_v18 = vld [vmem:[%s4029_s4] sm:$0xff] (!%p325_p2)  }
   0xa   : > { %v3425_v15 = vld [vmem:[%s4029_s4 + $0x130] sm:$0xff] (!%p325_p2)   ;;  %v3427_v17 = vld [vmem:[%s4029_s4 + $0x138] sm:$0xff] (!%p325_p2)   ;;  %v3431_v19 = vld [vmem:[%s4029_s4 + $0x140] sm:$0xff] (!%p325_p2)  }
   0xb   : > { %3102 = vmatpush3.bf16.msra.mxu1 (!%p325_p2), %v3414_v2  ;;  %v3434_v22 = vld [vmem:[%s4029_s4 + $0x8] sm:$0xff] (!%p325_p2)   ;;  %v3436_v26 = vld [vmem:[%s4029_s4 + $0x10] sm:$0xff] (!%p325_p2)   ;;  %v3438_v28 = vld [vmem:[%s4029_s4 + $0x18] sm:$0xff] (!%p325_p2)  }
   0xc   : > { %3198 = vmatpush3.bf16.msra.mxu0 (!%p325_p2), %v3415_v3  ;;  %3103 = vmatprep.subr.bf16.mxu1 (!%p325_p2), %v3416_v4  ;;  %v3435_v23 = vld [vmem:[%s4029_s4 + $0x148] sm:$0xff] (!%p325_p2)   ;;  %v3437_v27 = vld [vmem:[%s4029_s4 + $0x150] sm:$0xff] (!%p325_p2)   ;;  %v3439_v31 = vld [vmem:[%s4029_s4 + $0x158] sm:$0xff] (!%p325_p2)  }
   0xd   : > { %s4038_s10 = smov (!%p388_p3, %s2684_s10), 1  ;;  %3199 = vmatprep.subr.bf16.mxu0 %v3417_v5  ;;  %v3440_v38 = vld [vmem:[%s4029_s4 + $0x20] sm:$0xff]   ;;  %v3442_v47 = vld [vmem:[%s4029_s4 + $0x28] sm:$0xff]   ;;  %vm3714_vm2 = vmor %vm766_vm0, %vm767_vm1 }
   0xe   : > { %s3613_s27 = smul.u32 72, %s4038_s10  ;;  %v3441_v43 = vld [vmem:[%s4029_s4 + $0x160] sm:$0xff]   ;;  %v3443_v50 = vld [vmem:[%s4029_s4 + $0x168] sm:$0xff]   ;;  %v3445_v2 = vld [vmem:[%s4029_s4 + $0x30] sm:$0xff]   ;;  %s2695_s29 = sshll.u32 %s4038_s10, 1 }
   0xf   : > { %3104 = vmatpush3.bf16.msra.mxu1 %v3416_v4  ;;  %s425_s14 = scalar_lea.vmem %s4034_s9, %s2695_s29  ;;  %s416_s18 = scalar_lea.vmem %s4032_s7, %s2695_s29 }
  0x10   : > { %3200 = vmatpush3.bf16.msra.mxu0 %v3417_v5  ;;  %3105 = vmatprep.subr.bf16.mxu1 %v3418_v6  ;;  %s3625_s15 = scalar_lea.vmem %s4026_s1, %s3613_s27  ;;  %s3634_s20 = scalar_lea.vmem %s4028_s3, %s3613_s27 }
  0x11   : > { %3201 = vmatprep.subr.bf16.mxu0 %v3419_v7  ;;  %v3428_v11 = vld [vmem:[%s3625_s15] ss:$8 sps:$4 sm:$0xff]   ;;  %v3432_v20 = vld [vmem:[%s3625_s15 + $0x10] ss:$8 sps:$4 sm:$0xff]   ;;  %s3679_s11 = scalar_lea.vmem %s4025_s0, %s3613_s27  ;;  %s3689_s17 = scalar_lea.vmem %s4027_s2, %s3613_s27 }
  0x12   : > { %3115 = vmatprep.mubr.bf16.mxu1 %v3428_v11  ;;  %v3430_v13 = vld [vmem:[%s3634_s20] ss:$8 sps:$4 sm:$0xff]   ;;  %v3433_v21 = vld [vmem:[%s3634_s20 + $0x10] ss:$8 sps:$4 sm:$0xff]   ;;  %v1505_v34 = vld [vmem:[%s3689_s17 + $0x4] sm:$0x1] }
  0x13   : > { %3106 = vmatpush3.bf16.msra.mxu1 %v3418_v6  ;;  %3211 = vmatprep.mubr.bf16.mxu0 %v3430_v13  ;;  %v3444_v24 = vld [vmem:[%s3625_s15 + $0x20] ss:$8 sps:$4 sm:$0xff]   ;;  %v3448_v29 = vld [vmem:[%s3625_s15 + $0x30] ss:$8 sps:$4 sm:$0xff]   ;;  %v1507_v39 = vld [vmem:[%s3689_s17 + $0xc] sm:$0x1] }
  0x14   : > { %3202 = vmatpush3.bf16.msra.mxu0 %v3419_v7  ;;  %3107 = vmatprep.subr.bf16.mxu1 %v3420_v8  ;;  %v3446_v25 = vld [vmem:[%s3634_s20 + $0x20] ss:$8 sps:$4 sm:$0xff]   ;;  %v3449_v30 = vld [vmem:[%s3634_s20 + $0x30] ss:$8 sps:$4 sm:$0xff]   ;;  %v1530_v40 = vshll.u32 %v1505_v34, 16  ;;  %v1544_v46 = vshll.u32 %v1507_v39, 16 }
  0x15   : > { %3203 = vmatprep.subr.bf16.mxu0 %v3421_v9  ;;  %v3452_v32 = vld [vmem:[%s3679_s11] ss:$8 sps:$4 sm:$0xff]   ;;  %v1508_v56 = vld [vmem:[%s3689_s17 + $0x10] sm:$0xf]  ;;  %v1509_v57 = vld [vmem:[%s3689_s17 + $0x14] sm:$0x1] }
  0x16   : > { %v1504_v33 = vld [vmem:[%s3689_s17] sm:$0xf]  ;;  %v1506_v35 = vld [vmem:[%s3689_s17 + $0x8] sm:$0xf]  ;;  %v1532_v52 = vrot.slane %v1530_v40, 5  ;;  %v1546_v55 = vrot.slane %v1544_v46, 5 }
  0x17   : > { %3108 = vmatpush3.bf16.msra.mxu1 %v3420_v8  ;;  %v1521_v36 = vshrl.u32 %v1504_v33, 16  ;;  %v1524_v37 = vshll.u32 %v1504_v33, 16  ;;  %v1535_v41 = vshrl.u32 %v1506_v35, 16  ;;  %v1538_v42 = vshll.u32 %v1506_v35, 16  ;;  %v1510_v59 = vld [vmem:[%s3689_s17 + $0x18] sm:$0xf] }
  0x18   : > { %3204 = vmatpush3.bf16.msra.mxu0 %v3421_v9  ;;  %3109 = vmatprep.subr.bf16.mxu1 %v3422_v10  ;;  %v1511_v60 = vld [vmem:[%s3689_s17 + $0x1c] sm:$0x1]  ;;  %v1549_v61 = vshrl.u32 %v1508_v56, 16  ;;  %v1552_v63 = vshll.u32 %v1508_v56, 16  ;;  %v1558_v0 = vshll.u32 %v1509_v57, 16  ;;  %v1563_v1 = vshrl.u32 %v1510_v59, 16 }
  0x19   : > { %3205 = vmatprep.subr.bf16.mxu0 %v3423_v12  ;;  %v1523_v44 = vrot.slane %v1521_v36, 4  ;;  %v1526_v45 = vrot.slane %v1524_v37, 5  ;;  %v1537_v48 = vrot.slane %v1535_v41, 4  ;;  %v1540_v49 = vrot.slane %v1538_v42, 5  ;;  %v3447_v6 = vld [vmem:[%s4029_s4 + $0x170] sm:$0xff]  }
  0x1a   : > { %v1551_v4 = vrot.slane %v1549_v61, 4  ;;  %v1566_v5 = vshll.u32 %v1510_v59, 16  ;;  %v1554_v8 = vrot.slane %v1552_v63, 5  ;;  %v1565_v9 = vrot.slane %v1563_v1, 4  ;;  %v3466_v37 = vld [vmem:[%s3679_s11 + $0x20] ss:$8 sps:$4 sm:$0xff]  }
  0x1b   : > { %3110 = vmatpush3.bf16.msra.mxu1 %v3422_v10  ;;  %v1527_v51 = vor.u32 %v1526_v45, %v1523_v44  ;;  %v1541_v54 = vor.u32 %v1540_v49, %v1537_v48  ;;  %v1572_v10 = vshll.u32 %v1511_v60, 16  ;;  %v3469_v48 = vld [vmem:[%s3679_s11 + $0x30] ss:$8 sps:$4 sm:$0xff]  }
  0x1c   : > { %3206 = vmatpush3.bf16.msra.mxu0 %v3423_v12  ;;  %3111 = vmatprep.subr.bf16.mxu1 %v3424_v14  ;;  %v1560_v12 = vrot.slane %v1558_v0, 5  ;;  %v1568_v13 = vrot.slane %v1566_v5, 5  ;;  %v1516_v49 = vld [vmem:[%s3689_s17 + $0x30] sm:$0xf]  ;;  %v3460_v59 = vld [vmem:[%s4029_s4 + $0x98] sm:$0xff]  }
  0x1d   : > { %3207 = vmatprep.subr.bf16.mxu0 %v3425_v15  ;;  %v1528_v58 = vrot.slane %v1527_v51, 4  ;;  %v1542_v62 = vrot.slane %v1541_v54, 4  ;;  %v1518_v51 = vld [vmem:[%s3689_s17 + $0x38] sm:$0xf]  ;;  %v1605_v56 = vshrl.u32 %v1516_v49, 16  ;;  %v1608_v57 = vshll.u32 %v1516_v49, 16 }
  0x1e   : > { %v1619_v61 = vshrl.u32 %v1518_v51, 16 }
  0x1f   : > { %3112 = vmatpush3.bf16.msra.mxu1 %v3424_v14  ;;  %v1533_v3 = vsel %vm3714_vm2, %v1528_v58, %v1532_v52  ;;  %v1547_v7 = vsel %vm3714_vm2, %v1542_v62, %v1546_v55  ;;  %v3450_v14 = vld [vmem:[%s4029_s4 + $0x38] sm:$0xff]   ;;  %v3459_v52 = vld [vmem:[%s4029_s4 + $0x190] sm:$0xff]   ;;  %v1622_v62 = vshll.u32 %v1518_v51, 16  ;;  %v1607_v1 = vrot.slane %v1605_v56, 4 }
  0x20   : > { %3208 = vmatpush3.bf16.msra.mxu0 %v3425_v15  ;;  %3113 = vmatprep.subr.bf16.mxu1 %v3426_v16  ;;  %v2847_v11 = vcombine.low %v1533_v3, %v1547_v7  ;;  %v1555_v15 = vor.u32 %v1554_v8, %v1551_v4  ;;  %v1519_v55 = vld [vmem:[%s3689_s17 + $0x3c] sm:$0x1] }
  0x21   : > { %3209 = vmatprep.subr.bf16.mxu0 %v3427_v17  ;;  %v1628_v63 = vshll.u32 %v1519_v55, 16  ;;  %v3461_v4 = vld [vmem:[%s4029_s4 + $0x198] sm:$0xff]   ;;  %v1624_v7 = vrot.slane %v1622_v62, 5 }
  0x23   : > { %3114 = vmatpush3.bf16.msra.mxu1 %v3426_v16  ;;  %v1569_v16 = vor.u32 %v1568_v13, %v1565_v9  ;;  %v1630_v8 = vrot.slane %v1628_v63, 5  ;;  %v3462_v13 = vld [vmem:[%s4029_s4 + $0xa0] sm:$0xff]  }
  0x24   : > { %3210 = vmatpush3.bf16.msra.mxu0 %v3427_v17  ;;  %3123 = vmatprep.subr.bf16.mxu1 %v3429_v18  ;;  %v1556_v17 = vrot.slane %v1555_v15, 4 }
  0x25   : > { %3243 = vmatprep.subr.bf16.mxu0 %v3431_v19 }
  0x26   : > { %3116 = vmatmul.mubr.bf16.vlgmr.msra.gmra.mrb[0].mxu1 %v3432_v20  ;;  %v1570_v20 = vrot.slane %v1569_v16, 4  ;;  %v752_v16 = vld [vmem:[%s3679_s11 + $0x8] sm:$0xf] }
  0x27   : > { %3124 = vmatpush3.bf16.msra.mxu1 %v3429_v18  ;;  %3212 = vmatmul.mubr.bf16.vlgmr.msra.gmra.mrb[0].mxu0 %v3433_v21  ;;  %v1574_v18 = vrot.slane %v1572_v10, 5  ;;  %v3453_v21 = vld [vmem:[%s4029_s4 + $0x80] sm:$0xff]  }
  0x28   : > { %3244 = vmatpush3.bf16.msra.mxu0 %v3431_v19  ;;  %3125 = vmatprep.subr.bf16.mxu1 %v3434_v22  ;;  %v3451_v19 = vld [vmem:[%s4029_s4 + $0x178] sm:$0xff]  }
  0x29   : > { %3245 = vmatprep.subr.bf16.mxu0 %v3435_v23  ;;  %3119 = vmatprep.mubr.bf16.mxu1 %v3444_v24  ;;  %v3454_v24 = vld [vmem:[%s4029_s4 + $0x180] sm:$0xff]  }
  0x2a   : > { %3215 = vmatprep.mubr.bf16.mxu0 %v3446_v25  ;;  %v3455_v25 = vld [vmem:[%s3679_s11 + $0x10] ss:$8 sps:$4 sm:$0xff]  }
  0x2b   : > { %3126 = vmatpush3.bf16.msra.mxu1 %v3434_v22  ;;  %v1561_v22 = vsel %vm3714_vm2, %v1556_v17, %v1560_v12  ;;  %v751_v12 = vld [vmem:[%s3679_s11 + $0x4] sm:$0x1]  ;;  %v753_v17 = vld [vmem:[%s3679_s11 + $0xc] sm:$0x1] }
  0x2c   : > { %3246 = vmatpush3.bf16.msra.mxu0 %v3435_v23  ;;  %3127 = vmatprep.subr.bf16.mxu1 %v3436_v26  ;;  %v1575_v23 = vsel %vm3714_vm2, %v1570_v20, %v1574_v18 }
  0x2d   : > { %3247 = vmatprep.subr.bf16.mxu0 %v3437_v27 }
  0x2e   : > { %3120 = vmatmul.mubr.bf16.gmra.mrb[4].mxu1 %v3448_v29  ;;  %v3457_v29 = vld [vmem:[%s4029_s4 + $0x188] sm:$0xff]  }
  0x2f   : > { %3128 = vmatpush3.bf16.msra.mxu1 %v3436_v26  ;;  %3216 = vmatmul.mubr.bf16.gmra.mrb[4].mxu0 %v3449_v30  ;;  %v3456_v26 = vld [vmem:[%s4029_s4 + $0x88] sm:$0xff]   ;;  %v1513_v30 = vld [vmem:[%s3689_s17 + $0x24] sm:$0x1] }
  0x30   : > { %3248 = vmatpush3.bf16.msra.mxu0 %v3437_v27  ;;  %3129 = vmatprep.subr.bf16.mxu1 %v3438_v28  ;;  %v1512_v27 = vld [vmem:[%s3689_s17 + $0x20] sm:$0xf]  ;;  %v1586_v35 = vshll.u32 %v1513_v30, 16 }
  0x31   : > { %3249 = vmatprep.subr.bf16.mxu0 %v3439_v31  ;;  %3139 = vmatprep.mubr.bf16.mxu1 %v3452_v32  ;;  %v1515_v32 = vld [vmem:[%s3689_s17 + $0x2c] sm:$0x1]  ;;  %v1577_v33 = vshrl.u32 %v1512_v27, 16  ;;  %v1580_v34 = vshll.u32 %v1512_v27, 16  ;;  %v793_v27 = vshll.u32 %v753_v17, 16 }
  0x32   : > { %3259 = vmatprep.mubr.bf16.mxu0 %v2847_v11  ;;  %v1600_v39 = vshll.u32 %v1515_v32, 16  ;;  %v1588_v44 = vrot.slane %v1586_v35, 5  ;;  %v750_v11 = vld [vmem:[%s3679_s11] sm:$0xf]  ;;  %v3464_v32 = vld [vmem:[%s4029_s4 + $0xa8] sm:$0xff]  }
  0x33   : > { %3130 = vmatpush3.bf16.msra.mxu1 %v3438_v28  ;;  %v2848_v28 = vcombine.low %v1561_v22, %v1575_v23  ;;  %v1579_v40 = vrot.slane %v1577_v33, 4  ;;  %v1582_v41 = vrot.slane %v1580_v34, 5  ;;  %v770_v18 = vshrl.u32 %v750_v11, 16  ;;  %v761_v17 = vld [vmem:[%s3679_s11 + $0x2c] sm:$0x1] }
  0x34   : > { %3250 = vmatpush3.bf16.msra.mxu0 %v3439_v31  ;;  %3131 = vmatprep.subr.bf16.mxu1 %v3440_v38  ;;  %v1514_v31 = vld [vmem:[%s3689_s17 + $0x28] sm:$0xf]  ;;  %v1602_v46 = vrot.slane %v1600_v39, 5  ;;  %v784_v22 = vshrl.u32 %v752_v16, 16  ;;  %v787_v23 = vshll.u32 %v752_v16, 16 }
  0x35   : > { %3251 = vmatprep.subr.bf16.mxu0 %v3441_v43  ;;  %v1591_v36 = vshrl.u32 %v1514_v31, 16  ;;  %v760_v16 = vld [vmem:[%s3679_s11 + $0x28] sm:$0xf] }
  0x36   : > { %v786_v30 = vrot.slane %v784_v22, 4  ;;  %v840_v22 = vshrl.u32 %v760_v16, 16 }
  0x37   : > { %3132 = vmatpush3.bf16.msra.mxu1 %v3440_v38  ;;  %v1594_v38 = vshll.u32 %v1514_v31, 16  ;;  %v1593_v42 = vrot.slane %v1591_v36, 4  ;;  %v789_v31 = vrot.slane %v787_v23, 5  ;;  %v795_v36 = vrot.slane %v793_v27, 5  ;;  %v762_v23 = vld [vmem:[%s3679_s11 + $0x30] sm:$0xf] }
  0x38   : > { %3252 = vmatpush3.bf16.msra.mxu0 %v3441_v43  ;;  %3133 = vmatprep.subr.bf16.mxu1 %v3442_v47  ;;  %v3458_v43 = vld [vmem:[%s4029_s4 + $0x90] sm:$0xff]   ;;  %v764_v27 = vld [vmem:[%s3679_s11 + $0x38] sm:$0xf] }
  0x39   : > { %3253 = vmatprep.subr.bf16.mxu0 %v3443_v50  ;;  %v1596_v45 = vrot.slane %v1594_v38, 5  ;;  %v3465_v38 = vld [vmem:[%s4029_s4 + $0x1a8] sm:$0xff]  }
  0x3b   : > { %3134 = vmatpush3.bf16.msra.mxu1 %v3442_v47  ;;  %v1583_v47 = vor.u32 %v1582_v41, %v1579_v40  ;;  %v1597_v54 = vor.u32 %v1596_v45, %v1593_v42  ;;  %v790_v40 = vor.u32 %v789_v31, %v786_v30  ;;  %v754_v41 = vld [vmem:[%s3679_s11 + $0x10] sm:$0xf]  ;;  %v842_v31 = vrot.slane %v840_v22, 4  ;;  %v2931_v22 = vld [vmem:[%s3679_s11 + $0x8] sm:$0xf] }
  0x3c   : > { %3254 = vmatpush3.bf16.msra.mxu0 %v3443_v50  ;;  %3135 = vmatprep.subr.bf16.mxu1 %v3445_v2  ;;  %v1517_v50 = vld [vmem:[%s3689_s17 + $0x34] sm:$0x1]  ;;  %v798_v45 = vshrl.u32 %v754_v41, 16 }
  0x3d   : > { %3255 = vmatprep.subr.bf16.mxu0 %v3447_v6  ;;  %v1614_v58 = vshll.u32 %v1517_v50, 16  ;;  %v1584_v60 = vrot.slane %v1583_v47, 4  ;;  %v1598_v0 = vrot.slane %v1597_v54, 4  ;;  %v757_v47 = vld [vmem:[%s3679_s11 + $0x1c] sm:$0x1] }
  0x3f   : > { %3136 = vmatpush3.bf16.msra.mxu1 %v3445_v2  ;;  %v1610_v2 = vrot.slane %v1608_v57, 5  ;;  %v1616_v3 = vrot.slane %v1614_v58, 5  ;;  %v1589_v5 = vsel %vm3714_vm2, %v1584_v60, %v1588_v44  ;;  %v1603_v9 = vsel %vm3714_vm2, %v1598_v0, %v1602_v46  ;;  %v756_v44 = vld [vmem:[%s3679_s11 + $0x18] sm:$0xf]  ;;  %v3468_v60 = vld [vmem:[%s4029_s4 + $0x1b0] sm:$0xff]  }
  0x40   : > { %3256 = vmatpush3.bf16.msra.mxu0 %v3447_v6  ;;  %3137 = vmatprep.subr.bf16.mxu1 %v3450_v14  ;;  %v1621_v6 = vrot.slane %v1619_v61, 4  ;;  %v791_v46 = vrot.slane %v790_v40, 4  ;;  %v812_v50 = vshrl.u32 %v756_v44, 16  ;;  %v815_v54 = vshll.u32 %v756_v44, 16 }
  0x41   : > { %3257 = vmatprep.subr.bf16.mxu0 %v3451_v19  ;;  %v1611_v10 = vor.u32 %v1610_v2, %v1607_v1  ;;  %v821_v58 = vshll.u32 %v757_v47, 16  ;;  %v868_v40 = vshrl.u32 %v764_v27, 16 }
  0x42   : > { %v1625_v15 = vor.u32 %v1624_v7, %v1621_v6  ;;  %v796_v55 = vsel %vm3714_vm2, %v791_v46, %v795_v36  ;;  %v814_v57 = vrot.slane %v812_v50, 4  ;;  %v817_v63 = vrot.slane %v815_v54, 5  ;;  %v3471_v6 = vld [vmem:[%s4029_s4 + $0x1b8] sm:$0xff]   ;;  %v3472_v7 = vld [vmem:[%s4029_s4 + $0xc0] sm:$0xff]  }
  0x43   : > { %3138 = vmatpush3.bf16.msra.mxu1 %v3450_v14  ;;  %v2849_v14 = vcombine.low %v1589_v5, %v1603_v9  ;;  %v1612_v20 = vrot.slane %v1611_v10, 4  ;;  %v3474_v10 = vld [vmem:[%s4029_s4 + $0x1c0] sm:$0xff]   ;;  %v857_v36 = vshll.u32 %v762_v23, 16 }
  0x44   : > { %3258 = vmatpush3.bf16.msra.mxu0 %v3451_v19  ;;  %3147 = vmatprep.subr.bf16.mxu1 %v3453_v21  ;;  %v773_v19 = vshll.u32 %v750_v11, 16  ;;  %v818_v1 = vor.u32 %v817_v63, %v814_v57  ;;  %v3475_v11 = vld [vmem:[%s3679_s11 + $0x18] ss:$8 sps:$4 sm:$0xff]  }
  0x45   : > { %3267 = vmatprep.subr.bf16.mxu0 %v3454_v24 }
  0x46   : > { %3140 = vmatmul.mubr.bf16.vlgmr.msra.gmra.mrb[0].mxu1 %v3455_v25  ;;  %v772_v25 = vrot.slane %v770_v18, 4  ;;  %v819_v5 = vrot.slane %v818_v1, 4  ;;  %v3477_v18 = vld [vmem:[%s4029_s4 + $0x1c8] sm:$0xff]  }
  0x47   : > { %3148 = vmatpush3.bf16.msra.mxu1 %v3453_v21  ;;  %3260 = vmatmul.mubr.bf16.vlgmr.msra.gmra.mrb[0].mxu0 %v2848_v28  ;;  %v779_v21 = vshll.u32 %v751_v12, 16  ;;  %v3463_v28 = vld [vmem:[%s4029_s4 + $0x1a0] sm:$0xff]  }
  0x48   : > { %3268 = vmatpush3.bf16.msra.mxu0 %v3454_v24  ;;  %3149 = vmatprep.subr.bf16.mxu1 %v3456_v26  ;;  %v1626_v24 = vrot.slane %v1625_v15, 4  ;;  %v758_v12 = vld [vmem:[%s3679_s11 + $0x20] sm:$0xf]  ;;  %v759_v15 = vld [vmem:[%s3679_s11 + $0x24] sm:$0x1] }
  0x49   : > { %3269 = vmatprep.subr.bf16.mxu0 %v3457_v29  ;;  %3143 = vmatprep.mubr.bf16.mxu1 %v3466_v37  ;;  %v781_v35 = vrot.slane %v779_v21, 5  ;;  %v3473_v37 = vld [vmem:[%s3679_s11 + $0x8] ss:$8 sps:$4 sm:$0xff]   ;;  %v835_v21 = vshll.u32 %v759_v15, 16  ;;  %v3494_v15 = vld [vmem:[%s4030_s5] sm:$0xff]  }
  0x4a   : > { %3263 = vmatprep.mubr.bf16.mxu0 %v2849_v14  ;;  %v1631_v33 = vsel %vm3714_vm2, %v1626_v24, %v1630_v8  ;;  %v3476_v14 = vld [vmem:[%s4029_s4 + $0xc8] sm:$0xff]   ;;  %v843_v24 = vshll.u32 %v760_v16, 16  ;;  %v3496_v16 = vld [vmem:[%s4029_s4 + $0x200] sm:$0xff]  }
  0x4b   : > { %3150 = vmatpush3.bf16.msra.mxu1 %v3456_v26  ;;  %v775_v26 = vrot.slane %v773_v19, 5  ;;  %v826_v19 = vshrl.u32 %v758_v12, 16  ;;  %v837_v30 = vrot.slane %v835_v21, 5  ;;  %v3510_v21 = vld [vmem:[%s3625_s15 + $0x28] ss:$8 sps:$4 sm:$0xff]  }
  0x4c   : > { %3270 = vmatpush3.bf16.msra.mxu0 %v3457_v29  ;;  %3151 = vmatprep.subr.bf16.mxu1 %v3458_v43  ;;  %v1617_v29 = vsel %vm3714_vm2, %v1612_v20, %v1616_v3  ;;  %v823_v3 = vrot.slane %v821_v58, 5  ;;  %v829_v20 = vshll.u32 %v758_v12, 16  ;;  %v3480_v58 = vld [vmem:[%s4029_s4 + $0xd8] sm:$0xff]  }
  0x4d   : > { %3271 = vmatprep.subr.bf16.mxu0 %v3459_v52  ;;  %v776_v34 = vor.u32 %v775_v26, %v772_v25  ;;  %v2850_v39 = vcombine.low %v1617_v29, %v1631_v33  ;;  %v849_v25 = vshll.u32 %v761_v17, 16  ;;  %v763_v26 = vld [vmem:[%s3679_s11 + $0x34] sm:$0x1]  ;;  %v845_v33 = vrot.slane %v843_v24, 5  ;;  %v3490_v12 = vld [vmem:[%s4029_s4 + $0xf8] sm:$0xff]  }
  0x4e   : > { %3144 = vmatmul.mubr.bf16.gmra.mrb[4].mxu1 %v3469_v48  ;;  %v801_v48 = vshll.u32 %v754_v41, 16  ;;  %v824_v9 = vsel %vm3714_vm2, %v819_v5, %v823_v3  ;;  %v831_v29 = vrot.slane %v829_v20, 5  ;;  %v871_v41 = vshll.u32 %v764_v27, 16  ;;  %v3492_v3 = vld [vmem:[%s3689_s17] ss:$8 sps:$4 sm:$0xff]  }
  0x4f   : > { %3152 = vmatpush3.bf16.msra.mxu1 %v3458_v43  ;;  %v777_v42 = vrot.slane %v776_v34, 4  ;;  %v755_v43 = vld [vmem:[%s3679_s11 + $0x14] sm:$0x1]  ;;  %3264 = vmatmul.mubr.bf16.gmra.mrb[4].mxu0 %v2850_v39  ;;  %v851_v34 = vrot.slane %v849_v25, 5  ;;  %v863_v39 = vshll.u32 %v763_v26, 16  ;;  %v2145_v26 = vshrl.u32 %v2931_v22, 16 }
  0x50   : > { %3272 = vmatpush3.bf16.msra.mxu0 %v3459_v52  ;;  %3153 = vmatprep.subr.bf16.mxu1 %v3460_v59  ;;  %v807_v49 = vshll.u32 %v755_v43, 16  ;;  %v800_v52 = vrot.slane %v798_v45, 4  ;;  %v803_v56 = vrot.slane %v801_v48, 5  ;;  %v846_v43 = vor.u32 %v845_v33, %v842_v31  ;;  %v3497_v17 = vld [vmem:[%s3625_s15 + $0x18] ss:$8 sps:$4 sm:$0xff]   ;;  %v3503_v33 = vld [vmem:[%s4029_s4 + $0x210] sm:$0xff]  }
  0x51   : > { %3273 = vmatprep.subr.bf16.mxu0 %v3461_v4  ;;  %v782_v51 = vsel %vm3714_vm2, %v777_v42, %v781_v35  ;;  %3283 = vmatprep.mubr.bf16.mxu0 %v3473_v37  ;;  %v854_v35 = vshrl.u32 %v762_v23, 16  ;;  %v3478_v37 = vld [vmem:[%s4029_s4 + $0xd0] sm:$0xff]   ;;  %v859_v45 = vrot.slane %v857_v36, 5  ;;  %v865_v48 = vrot.slane %v863_v39, 5  ;;  %v3500_v20 = vld [vmem:[%s3689_s17 + $0x20] ss:$8 sps:$4 sm:$0xff]  }
  0x52   : > { %v2755_v61 = vcombine.low %v782_v51, %v796_v55  ;;  %v809_v62 = vrot.slane %v807_v49, 5  ;;  %v804_v0 = vor.u32 %v803_v56, %v800_v52  ;;  %v3479_v42 = vld [vmem:[%s4029_s4 + $0x1d0] sm:$0xff]   ;;  %v870_v49 = vrot.slane %v868_v40, 4  ;;  %v2932_v23 = vld [vmem:[%s3679_s11 + $0xc] sm:$0x1] }
  0x53   : > { %3154 = vmatpush3.bf16.msra.mxu1 %v3460_v59  ;;  %v3467_v59 = vld [vmem:[%s4029_s4 + $0xb0] sm:$0xff]   ;;  %v856_v44 = vrot.slane %v854_v35, 4  ;;  %v873_v50 = vrot.slane %v871_v41, 5  ;;  %v847_v51 = vrot.slane %v846_v43, 4  ;;  %v2148_v27 = vshll.u32 %v2931_v22, 16  ;;  %v3504_v43 = vld [vmem:[%s4030_s5 + $0x18] sm:$0xff]  }
  0x54   : > { %3274 = vmatpush3.bf16.msra.mxu0 %v3461_v4  ;;  %3155 = vmatprep.subr.bf16.mxu1 %v3462_v13  ;;  %v805_v2 = vrot.slane %v804_v0, 4  ;;  %v3470_v4 = vld [vmem:[%s4029_s4 + $0xb8] sm:$0xff]   ;;  %v3487_v55 = vld [vmem:[%s3679_s11 + $0x28] ss:$8 sps:$4 sm:$0xff]   ;;  %v2934_v25 = vld [vmem:[%s3679_s11 + $0x14] sm:$0x1] }
  0x55   : > { %3275 = vmatprep.subr.bf16.mxu0 %v3463_v28  ;;  %3163 = vmatprep.mubr.bf16.mxu1 %v2755_v61  ;;  %v860_v52 = vor.u32 %v859_v45, %v856_v44  ;;  %v874_v57 = vor.u32 %v873_v50, %v870_v49  ;;  %v3489_v61 = vld [vmem:[%s3679_s11 + $0x38] ss:$8 sps:$4 sm:$0xff]   ;;  %v2933_v24 = vld [vmem:[%s3679_s11 + $0x10] sm:$0xf]  ;;  %v2150_v35 = vrot.slane %v2148_v27, 5 }
  0x56   : > { %v810_v8 = vsel %vm3714_vm2, %v805_v2, %v809_v62  ;;  %v3481_v62 = vld [vmem:[%s4029_s4 + $0x1d8] sm:$0xff]   ;;  %v2162_v31 = vshll.u32 %v2933_v24, 16 }
  0x57   : > { %3156 = vmatpush3.bf16.msra.mxu1 %v3462_v13  ;;  %v2756_v13 = vcombine.low %v810_v8, %v824_v9  ;;  %v875_v0 = vrot.slane %v874_v57, 4  ;;  %v3484_v8 = vld [vmem:[%s4029_s4 + $0xe8] sm:$0xff]   ;;  %v3501_v36 = vld [vmem:[%s3689_s17 + $0x30] ss:$8 sps:$4 sm:$0xff]  }
  0x58   : > { %3276 = vmatpush3.bf16.msra.mxu0 %v3463_v28  ;;  %3157 = vmatprep.subr.bf16.mxu1 %v3464_v32  ;;  %v828_v28 = vrot.slane %v826_v19, 4  ;;  %v3485_v9 = vld [vmem:[%s4029_s4 + $0x1e8] sm:$0xff]   ;;  %v3512_v39 = vld [vmem:[%s3625_s15 + $0x38] ss:$8 sps:$4 sm:$0xff]  }
  0x59   : > { %3277 = vmatprep.subr.bf16.mxu0 %v3465_v38  ;;  %v3499_v19 = vld [vmem:[%s4029_s4 + $0x208] sm:$0xff]  }
  0x5b   : > { %3158 = vmatpush3.bf16.msra.mxu1 %v3464_v32  ;;  %v765_v32 = vld [vmem:[%s3679_s11 + $0x3c] sm:$0x1] }
  0x5c   : > { %3278 = vmatpush3.bf16.msra.mxu0 %v3465_v38  ;;  %3159 = vmatprep.subr.bf16.mxu1 %v3467_v59  ;;  %v832_v38 = vor.u32 %v831_v29, %v828_v28  ;;  %v877_v46 = vshll.u32 %v765_v32, 16  ;;  %v3502_v28 = vld [vmem:[%s4030_s5 + $0x10] sm:$0xff]   ;;  %v2154_v29 = vshll.u32 %v2932_v23, 16  ;;  %v2168_v32 = vshll.u32 %v2934_v25, 16 }
  0x5d   : > { %3279 = vmatprep.subr.bf16.mxu0 %v3468_v60  ;;  %v3511_v23 = vld [vmem:[%s4030_s5 + $0x30] sm:$0xff]  }
  0x5e   : > { %v833_v47 = vrot.slane %v832_v38, 4  ;;  %v879_v54 = vrot.slane %v877_v46, 5  ;;  %v2164_v38 = vrot.slane %v2162_v31, 5  ;;  %v2156_v41 = vrot.slane %v2154_v29, 5  ;;  %v2937_v46 = vld [vmem:[%s3679_s11 + $0x20] sm:$0xf] }
  0x5f   : > { %3160 = vmatpush3.bf16.msra.mxu1 %v3467_v59  ;;  %v852_v59 = vsel %vm3714_vm2, %v847_v51, %v851_v34  ;;  %v2147_v34 = vrot.slane %v2145_v26, 4  ;;  %v2170_v45 = vrot.slane %v2168_v32, 5  ;;  %v2939_v51 = vld [vmem:[%s3679_s11 + $0x28] sm:$0xf]  ;;  %v2190_v57 = vshll.u32 %v2937_v46, 16 }
  0x60   : > { %3280 = vmatpush3.bf16.msra.mxu0 %v3468_v60  ;;  %3161 = vmatprep.subr.bf16.mxu1 %v3470_v4  ;;  %v838_v56 = vsel %vm3714_vm2, %v833_v47, %v837_v30  ;;  %v861_v60 = vrot.slane %v860_v52, 4  ;;  %v880_v2 = vsel %vm3714_vm2, %v875_v0, %v879_v54  ;;  %v2159_v30 = vshrl.u32 %v2933_v24, 16  ;;  %v3505_v47 = vld [vmem:[%s4029_s4 + $0x218] sm:$0xff]   ;;  %v2941_v52 = vld [vmem:[%s3679_s11 + $0x30] sm:$0xf] }
  0x61   : > { %3281 = vmatprep.subr.bf16.mxu0 %v3471_v6  ;;  %v2757_v63 = vcombine.low %v838_v56, %v852_v59  ;;  %v2151_v40 = vor.u32 %v2150_v35, %v2147_v34  ;;  %v2187_v56 = vshrl.u32 %v2937_v46, 16  ;;  %v2204_v0 = vshll.u32 %v2939_v51, 16  ;;  %v3515_v34 = vld [vmem:[%s4029_s4 + $0x238] sm:$0xff]  }
  0x62   : > { %v866_v1 = vsel %vm3714_vm2, %v861_v60, %v865_v48  ;;  %v3507_v60 = vld [vmem:[%s4029_s4 + $0x220] sm:$0xff]  }
  0x63   : > { %3162 = vmatpush3.bf16.msra.mxu1 %v3470_v4  ;;  %v3482_v4 = vld [vmem:[%s4029_s4 + $0xe0] sm:$0xff]   ;;  %v2758_v5 = vcombine.low %v866_v1, %v880_v2  ;;  %v2152_v48 = vrot.slane %v2151_v40, 4  ;;  %v2215_v1 = vshrl.u32 %v2941_v52, 16  ;;  %v2218_v2 = vshll.u32 %v2941_v52, 16 }
  0x64   : > { %3282 = vmatpush3.bf16.msra.mxu0 %v3471_v6  ;;  %3171 = vmatprep.subr.bf16.mxu1 %v3472_v7  ;;  %v3483_v6 = vld [vmem:[%s4029_s4 + $0x1e0] sm:$0xff]  }
  0x65   : > { %3291 = vmatprep.subr.bf16.mxu0 %v3474_v10  ;;  %v2157_v54 = vsel %vm3714_vm2, %v2152_v48, %v2156_v41  ;;  %v2946_v48 = vld [vmem:[%s3679_s11 + $0x44] sm:$0x1] }
  0x66   : > { %3164 = vmatmul.mubr.bf16.vlgmr.msra.gmra.mrb[0].mxu1 %v2756_v13  ;;  %v3491_v13 = vld [vmem:[%s4029_s4 + $0x1f8] sm:$0xff]  }
  0x67   : > { %3172 = vmatpush3.bf16.msra.mxu1 %v3472_v7  ;;  %3284 = vmatmul.mubr.bf16.vlgmr.msra.gmra.mrb[0].mxu0 %v3475_v11  ;;  %v3495_v7 = vld [vmem:[%s3625_s15 + $0x8] ss:$8 sps:$4 sm:$0xff]  }
  0x68   : > { %3292 = vmatpush3.bf16.msra.mxu0 %v3474_v10  ;;  %3173 = vmatprep.subr.bf16.mxu1 %v3476_v14  ;;  %v3486_v10 = vld [vmem:[%s4029_s4 + $0xf0] sm:$0xff]  }
  0x69   : > { %3293 = vmatprep.subr.bf16.mxu0 %v3477_v18  ;;  %3287 = vmatprep.mubr.bf16.mxu0 %v3487_v55  ;;  %v3488_v11 = vld [vmem:[%s4029_s4 + $0x1f0] sm:$0xff]  }
  0x6a   : > { %3167 = vmatprep.mubr.bf16.mxu1 %v2757_v63  ;;  %v2201_v63 = vshrl.u32 %v2939_v51, 16 }
  0x6b   : > { %3174 = vmatpush3.bf16.msra.mxu1 %v3476_v14  ;;  %v3493_v14 = vld [vmem:[%s3689_s17 + $0x10] ss:$8 sps:$4 sm:$0xff]  }
  0x6c   : > { %3294 = vmatpush3.bf16.msra.mxu0 %v3477_v18  ;;  %3175 = vmatprep.subr.bf16.mxu1 %v3478_v37  ;;  %v3498_v18 = vld [vmem:[%s4030_s5 + $0x8] sm:$0xff]  }
  0x6d   : > { %3295 = vmatprep.subr.bf16.mxu0 %v3479_v42 }
  0x6e   : > { %3168 = vmatmul.mubr.bf16.gmra.mrb[4].mxu1 %v2758_v5 }
  0x6f   : > { %3176 = vmatpush3.bf16.msra.mxu1 %v3478_v37  ;;  %3288 = vmatmul.mubr.bf16.gmra.mrb[4].mxu0 %v3489_v61  ;;  %v2161_v37 = vrot.slane %v2159_v30, 4  ;;  %v3516_v61 = vld [vmem:[%s3634_s20] ss:$8 sps:$4 sm:$0xff]  }
  0x70   : > { %3296 = vmatpush3.bf16.msra.mxu0 %v3479_v42  ;;  %3177 = vmatprep.subr.bf16.mxu1 %v3480_v58  ;;  %v2935_v42 = vld [vmem:[%s3679_s11 + $0x18] sm:$0xf] }
  0x71   : > { %3297 = vmatprep.subr.bf16.mxu0 %v3481_v62  ;;  %3187 = vmatprep.mubr.bf16.mxu1 %v3492_v3  ;;  %v2165_v44 = vor.u32 %v2164_v38, %v2161_v37  ;;  %v2173_v50 = vshrl.u32 %v2935_v42, 16  ;;  %v2176_v55 = vshll.u32 %v2935_v42, 16  ;;  %v3508_v3 = vld [vmem:[%s4030_s5 + $0x28] sm:$0xff]  }
  0x72   : > { %3307 = vmatprep.mubr.bf16.mxu0 %v3495_v7  ;;  %v2189_v7 = vrot.slane %v2187_v56, 4 }
  0x73   : > { %3178 = vmatpush3.bf16.msra.mxu1 %v3480_v58  ;;  %v2166_v49 = vrot.slane %v2165_v44, 4  ;;  %v3506_v58 = vld [vmem:[%s4030_s5 + $0x20] sm:$0xff]   ;;  %v2175_v5 = vrot.slane %v2173_v50, 4 }
  0x74   : > { %3298 = vmatpush3.bf16.msra.mxu0 %v3481_v62  ;;  %3179 = vmatprep.subr.bf16.mxu1 %v3482_v4 }
  0x75   : > { %3299 = vmatprep.subr.bf16.mxu0 %v3483_v6  ;;  %v2171_v59 = vsel %vm3714_vm2, %v2166_v49, %v2170_v45 }
  0x76   : > { %v2963_v62 = vcombine.low %v2157_v54, %v2171_v59 }
  0x77   : > { %3180 = vmatpush3.bf16.msra.mxu1 %v3482_v4  ;;  %v3509_v4 = vld [vmem:[%s4029_s4 + $0x228] sm:$0xff]  }
  0x78   : > { %3300 = vmatpush3.bf16.msra.mxu0 %v3483_v6  ;;  %3181 = vmatprep.subr.bf16.mxu1 %v3484_v8  ;;  %v2178_v6 = vrot.slane %v2176_v55, 5  ;;  %v2252_v55 = vshll.u32 %v2946_v48, 16 }
  0x79   : > { %3301 = vmatprep.subr.bf16.mxu0 %v3485_v9 }
  0x7b   : > { %3182 = vmatpush3.bf16.msra.mxu1 %v3484_v8  ;;  %v2192_v8 = vrot.slane %v2190_v57, 5 }
  0x7c   : > { %3302 = vmatpush3.bf16.msra.mxu0 %v3485_v9  ;;  %3183 = vmatprep.subr.bf16.mxu1 %v3486_v10  ;;  %v2936_v9 = vld [vmem:[%s3679_s11 + $0x1c] sm:$0x1] }
  0x7d   : > { %3303 = vmatprep.subr.bf16.mxu0 %v3488_v11 }
  0x7f   : > { %3184 = vmatpush3.bf16.msra.mxu1 %v3486_v10  ;;  %v2938_v10 = vld [vmem:[%s3679_s11 + $0x24] sm:$0x1] }
  0x80   : > { %3304 = vmatpush3.bf16.msra.mxu0 %v3488_v11  ;;  %3185 = vmatprep.subr.bf16.mxu1 %v3490_v12  ;;  %v2943_v11 = vld [vmem:[%s3679_s11 + $0x38] sm:$0xf]  ;;  %v2196_v22 = vshll.u32 %v2938_v10, 16 }
  0x81   : > { %3305 = vmatprep.subr.bf16.mxu0 %v3491_v13  ;;  %v2229_v24 = vshrl.u32 %v2943_v11, 16  ;;  %v2232_v25 = vshll.u32 %v2943_v11, 16 }
  0x82   : > { %v2198_v38 = vrot.slane %v2196_v22, 5 }
  0x83   : > { %3186 = vmatpush3.bf16.msra.mxu1 %v3490_v12  ;;  %v2203_v12 = vrot.slane %v2201_v63, 4  ;;  %v2231_v40 = vrot.slane %v2229_v24, 4  ;;  %v2234_v41 = vrot.slane %v2232_v25, 5  ;;  %v2254_v63 = vrot.slane %v2252_v55, 5 }
  0x84   : > { %3306 = vmatpush3.bf16.msra.mxu0 %v3491_v13  ;;  %3219 = vmatprep.subr.bf16.mxu1 %v3494_v15  ;;  %v2206_v13 = vrot.slane %v2204_v0, 5  ;;  %v3517_v0 = vld [vmem:[%s3634_s20 + $0x10] ss:$8 sps:$4 sm:$0xff]  }
  0x85   : > { %3315 = vmatprep.subr.bf16.mxu0 %v3496_v16  ;;  %v2235_v52 = vor.u32 %v2234_v41, %v2231_v40 }
  0x86   : > { %3188 = vmatmul.mubr.bf16.vlgmr.msra.gmra.mrb[0].mxu1 %v3493_v14  ;;  %v2217_v14 = vrot.slane %v2215_v1, 4  ;;  %v2207_v29 = vor.u32 %v2206_v13, %v2203_v12  ;;  %v3518_v1 = vld [vmem:[%s3634_s20 + $0x20] ss:$8 sps:$4 sm:$0xff]  }
  0x87   : > { %3220 = vmatpush3.bf16.msra.mxu1 %v3494_v15  ;;  %3308 = vmatmul.mubr.bf16.vlgmr.msra.gmra.mrb[0].mxu0 %v3497_v17  ;;  %v2220_v15 = vrot.slane %v2218_v2, 5  ;;  %v2940_v17 = vld [vmem:[%s3679_s11 + $0x2c] sm:$0x1] }
  0x88   : > { %3316 = vmatpush3.bf16.msra.mxu0 %v3496_v16  ;;  %3221 = vmatprep.subr.bf16.mxu1 %v3498_v18  ;;  %v2945_v16 = vld [vmem:[%s3679_s11 + $0x40] sm:$0xf]  ;;  %v2210_v30 = vshll.u32 %v2940_v17, 16  ;;  %v2208_v44 = vrot.slane %v2207_v29, 4 }
  0x89   : > { %3317 = vmatprep.subr.bf16.mxu0 %v3499_v19  ;;  %3191 = vmatprep.mubr.bf16.mxu1 %v3500_v20  ;;  %v2182_v20 = vshll.u32 %v2936_v9, 16  ;;  %v2243_v26 = vshrl.u32 %v2945_v16, 16  ;;  %v2246_v27 = vshll.u32 %v2945_v16, 16  ;;  %v2221_v31 = vor.u32 %v2220_v15, %v2217_v14 }
  0x8a   : > { %3311 = vmatprep.mubr.bf16.mxu0 %v3510_v21  ;;  %v2193_v21 = vor.u32 %v2192_v8, %v2189_v7  ;;  %v2212_v45 = vrot.slane %v2210_v30, 5 }
  0x8b   : > { %3222 = vmatpush3.bf16.msra.mxu1 %v3498_v18  ;;  %v2942_v18 = vld [vmem:[%s3679_s11 + $0x34] sm:$0x1]  ;;  %v2245_v42 = vrot.slane %v2243_v26, 4  ;;  %v2222_v46 = vrot.slane %v2221_v31, 4 }
  0x8c   : > { %3318 = vmatpush3.bf16.msra.mxu0 %v3499_v19  ;;  %3223 = vmatprep.subr.bf16.mxu1 %v3502_v28  ;;  %v2179_v19 = vor.u32 %v2178_v6, %v2175_v5  ;;  %v2224_v32 = vshll.u32 %v2942_v18, 16  ;;  %v2194_v37 = vrot.slane %v2193_v21, 4  ;;  %v2213_v56 = vsel %vm3714_vm2, %v2208_v44, %v2212_v45  ;;  %v3519_v5 = vld [vmem:[%s3634_s20 + $0x30] ss:$8 sps:$4 sm:$0xff]  }
  0x8d   : > { %3319 = vmatprep.subr.bf16.mxu0 %v3503_v33 }
  0x8e   : > { %3192 = vmatmul.mubr.bf16.gmra.mrb[4].mxu1 %v3501_v36  ;;  %v2180_v35 = vrot.slane %v2179_v19, 4  ;;  %v2184_v36 = vrot.slane %v2182_v20, 5  ;;  %v2199_v51 = vsel %vm3714_vm2, %v2194_v37, %v2198_v38 }
  0x8f   : > { %3224 = vmatpush3.bf16.msra.mxu1 %v3502_v28  ;;  %3312 = vmatmul.mubr.bf16.gmra.mrb[4].mxu0 %v3512_v39  ;;  %v3513_v28 = vld [vmem:[%s4029_s4 + $0x230] sm:$0xff]   ;;  %v2944_v39 = vld [vmem:[%s3679_s11 + $0x3c] sm:$0x1]  ;;  %s2977_s11 = sshll.u32 %s4038_s10, 6 }
  0x90   : > { %3320 = vmatpush3.bf16.msra.mxu0 %v3503_v33  ;;  %3225 = vmatprep.subr.bf16.mxu1 %v3504_v43  ;;  %v3514_v33 = vld [vmem:[%s4030_s5 + $0x38] sm:$0xff]   ;;  %v2185_v49 = vsel %vm3714_vm2, %v2180_v35, %v2184_v36  ;;  %v2238_v50 = vshll.u32 %v2944_v39, 16  ;;  %s3991_s25 = scalar_lea.vmem %s4033_s8, %s2977_s11  ;;  %s3997_s28 = scalar_lea.vmem %s4031_s6, %s2977_s11 }
  0x91   : > { %3321 = vmatprep.subr.bf16.mxu0 %v3505_v47  ;;  %3235 = vmatprep.mubr.bf16.mxu1 %v3516_v61  ;;  %v2236_v61 = vrot.slane %v2235_v52, 4 }
  0x92   : > { %3331 = vmatprep.mubr.bf16.mxu0 %v2963_v62  ;;  %v2240_v59 = vrot.slane %v2238_v50, 5 }
  0x93   : > { %3226 = vmatpush3.bf16.msra.mxu1 %v3504_v43  ;;  %v2248_v43 = vrot.slane %v2246_v27, 5 }
  0x94   : > { %3322 = vmatpush3.bf16.msra.mxu0 %v3505_v47  ;;  %3227 = vmatprep.subr.bf16.mxu1 %v3506_v58  ;;  %v2226_v47 = vrot.slane %v2224_v32, 5  ;;  %v2241_v2 = vsel %vm3714_vm2, %v2236_v61, %v2240_v59 }
  0x95   : > { %3323 = vmatprep.subr.bf16.mxu0 %v3507_v60  ;;  %v2249_v54 = vor.u32 %v2248_v43, %v2245_v42 }
  0x96   : > { %v2227_v57 = vsel %vm3714_vm2, %v2222_v46, %v2226_v47 }
  0x97   : > { %3228 = vmatpush3.bf16.msra.mxu1 %v3506_v58  ;;  %v2964_v58 = vcombine.low %v2185_v49, %v2199_v51  ;;  %v2250_v62 = vrot.slane %v2249_v54, 4 }
  0x98   : > { %3324 = vmatpush3.bf16.msra.mxu0 %v3507_v60  ;;  %3229 = vmatprep.subr.bf16.mxu1 %v3508_v3  ;;  %v2965_v60 = vcombine.low %v2213_v56, %v2227_v57 }
  0x99   : > { %3325 = vmatprep.subr.bf16.mxu0 %v3509_v4 }
  0x9b   : > { %3230 = vmatpush3.bf16.msra.mxu1 %v3508_v3  ;;  %v2255_v3 = vsel %vm3714_vm2, %v2250_v62, %v2254_v63 }
  0x9c   : > { %3326 = vmatpush3.bf16.msra.mxu0 %v3509_v4  ;;  %3231 = vmatprep.subr.bf16.mxu1 %v3511_v23  ;;  %v2966_v4 = vcombine.low %v2241_v2, %v2255_v3 }
  0x9d   : > { %3327 = vmatprep.subr.bf16.mxu0 %v3513_v28 }
  0x9f   : > { %3232 = vmatpush3.bf16.msra.mxu1 %v3511_v23 }
  0xa0   : > { %3328 = vmatpush3.bf16.msra.mxu0 %v3513_v28  ;;  %3233 = vmatprep.subr.bf16.mxu1 %v3514_v33 }
  0xa1   : > { %3329 = vmatprep.subr.bf16.mxu0 %v3515_v34 }
  0xa3   : > { %3234 = vmatpush3.bf16.msra.mxu1 %v3514_v33 }
  0xa4   : > { %3330 = vmatpush3.bf16.msra.mxu0 %v3515_v34 }
  0xa6   : > { %3236 = vmatmul.mubr.bf16.vlgmr.msra.gmra.mrb[8].mxu1 %v3517_v0 }
  0xa7   : > { %3332 = vmatmul.mubr.bf16.vlgmr.msra.gmra.mrb[0].mxu0 %v2964_v58  ;;  %3239 = vmatprep.mubr.bf16.mxu1 %v3518_v1 }
  0xa8   : > { %3335 = vmatprep.mubr.bf16.mxu0 %v2965_v60 }
  0xae   : > { %3240 = vmatmul.mubr.bf16.gmra.mrb[12].mxu1 %v3519_v5 }
  0xaf   : > { %3336 = vmatmul.mubr.bf16.gmra.mrb[4].mxu0 %v2966_v4 }
 0x159   : > { %v3189_v6 = vpop.f32.mrb[0].mxu1 }
 0x15a   : > { %v1166_v7 = vpop.f32.mrb[1].mxu1 }
 0x15b   : > { %v3190_v8 = vpop.f32.mrb[2].mxu1 }
 0x15c   : > { %v1169_v9 = vpop.f32.mrb[3].mxu1 }
 0x161   : > { %v3193_v10 = vpop.f32.mrb[4].mxu1 }
 0x162   : > { %v1182_v11 = vpop.f32.mrb[5].mxu1 }
 0x163   : > { %v3194_v12 = vpop.f32.mrb[6].mxu1 }
 0x164   : > { %v3985_v13 = vpop.f32.mrb[7].mxu1 }
 0x179   : > { %v3237_v53 = vpop.f32.mrb[8].mxu1 }
 0x17a   : > { %2456 = vst [vmem:[%s3991_s25 + $0x10] sm:$0xff] %v3237_v53  ;;  %v3333_v14 = vpop.f32.mrb[0].mxu0  ;;  %v1473_v15 = vpop.f32.mrb[9].mxu1  ;;  %v2478_v28 = vmul.f32 %v3237_v53, %v3237_v53 }
 0x17b   : > { %v3339_v16 = vadd.f32 %v3333_v14, %v3189_v6  ;;  %2454 = vst [vmem:[%s3991_s25] sm:$0xff] %v1473_v15  ;;  %v2476_v17 = vmul.f32 %v1473_v15, %v1473_v15  ;;  %v2371_v18 = vpop.f32.mrb[1].mxu0  ;;  %v3238_v19 = vpop.f32.mrb[10].mxu1 }
 0x17c   : > { %v3340_v20 = vadd.f32 %v2371_v18, %v1166_v7  ;;  %2457 = vst [vmem:[%s3991_s25 + $0x18] sm:$0xff] %v3238_v19  ;;  %v3334_v21 = vpop.f32.mrb[2].mxu0  ;;  %v1476_v22 = vpop.f32.mrb[11].mxu1  ;;  %v2479_v34 = vmul.f32 %v3238_v19, %v3238_v19 }
 0x17d   : > { %2412 = vst [vmem:[%s3997_s28 + $0x10] sm:$0xff] %v3339_v16  ;;  %v3341_v23 = vadd.f32 %v3334_v21, %v3190_v8  ;;  %2455 = vst [vmem:[%s3991_s25 + $0x8] sm:$0xff] %v1476_v22  ;;  %v2462_v24 = vadd.f32 %v1476_v22, %v1473_v15  ;;  %v2477_v25 = vmul.f32 %v1476_v22, %v1476_v22  ;;  %v2374_v26 = vpop.f32.mrb[3].mxu0 }
 0x17e   : > { %2410 = vst [vmem:[%s3997_s28] sm:$0xff] %v3340_v20  ;;  %v3342_v27 = vadd.f32 %v2374_v26, %v1169_v9  ;;  %v2432_v31 = vmul.f32 %v3340_v20, %v3340_v20  ;;  %v2434_v38 = vmul.f32 %v3339_v16, %v3339_v16 }
 0x17f   : > { %2413 = vst [vmem:[%s3997_s28 + $0x18] sm:$0xff] %v3341_v23  ;;  %v2463_v29 = vadd.f32 %v3237_v53, %v2462_v24  ;;  %v2484_v30 = vadd.f32 %v2477_v25, %v2476_v17  ;;  %v2435_v49 = vmul.f32 %v3341_v23, %v3341_v23 }
 0x180   : > { %2411 = vst [vmem:[%s3997_s28 + $0x8] sm:$0xff] %v3342_v27  ;;  %v2418_v32 = vadd.f32 %v3342_v27, %v3340_v20  ;;  %v2433_v33 = vmul.f32 %v3342_v27, %v3342_v27 }
 0x181   : > { %v2485_v35 = vadd.f32 %v2484_v30, %v2478_v28  ;;  %v3241_v36 = vpop.f32.mrb[12].mxu1  ;;  %v2464_v37 = vadd.f32 %v3238_v19, %v2463_v29 }
 0x182   : > { %v2419_v39 = vadd.f32 %v3339_v16, %v2418_v32  ;;  %v2440_v40 = vadd.f32 %v2433_v33, %v2432_v31  ;;  %2460 = vst [vmem:[%s3991_s25 + $0x30] sm:$0xff] %v3241_v36  ;;  %v3337_v41 = vpop.f32.mrb[4].mxu0  ;;  %v1489_v42 = vpop.f32.mrb[13].mxu1  ;;  %v2482_v2 = vmul.f32 %v3241_v36, %v3241_v36 }
 0x183   : > { %v3343_v43 = vadd.f32 %v3337_v41, %v3193_v10  ;;  %2458 = vst [vmem:[%s3991_s25 + $0x20] sm:$0xff] %v1489_v42  ;;  %v2465_v44 = vadd.f32 %v2464_v37, %v1489_v42  ;;  %v2480_v45 = vmul.f32 %v1489_v42, %v1489_v42  ;;  %v2486_v46 = vadd.f32 %v2485_v35, %v2479_v34  ;;  %v2387_v47 = vpop.f32.mrb[5].mxu0  ;;  %v3242_v48 = vpop.f32.mrb[14].mxu1 }
 0x184   : > { %v2441_v50 = vadd.f32 %v2440_v40, %v2434_v38  ;;  %v3344_v51 = vadd.f32 %v2387_v47, %v1182_v11  ;;  %v2420_v52 = vadd.f32 %v3341_v23, %v2419_v39  ;;  %2461 = vst [vmem:[%s3991_s25 + $0x38] sm:$0xff] %v3242_v48  ;;  %v3338_v54 = vpop.f32.mrb[6].mxu0  ;;  %v1492_v55 = vpop.f32.mrb[15].mxu1  ;;  %v2483_v8 = vmul.f32 %v3242_v48, %v3242_v48 }
 0x185   : > { %2416 = vst [vmem:[%s3997_s28 + $0x30] sm:$0xff] %v3343_v43  ;;  %v2487_v56 = vadd.f32 %v2486_v46, %v2480_v45  ;;  %v3345_v57 = vadd.f32 %v3338_v54, %v3194_v12  ;;  %2459 = vst [vmem:[%s3991_s25 + $0x28] sm:$0xff] %v1492_v55  ;;  %v2466_v58 = vadd.f32 %v2465_v44, %v1492_v55  ;;  %v2390_v59 = vpop.f32.mrb[7].mxu0 }
 0x186   : > { %2414 = vst [vmem:[%s3997_s28 + $0x20] sm:$0xff] %v3344_v51  ;;  %v2421_v60 = vadd.f32 %v3344_v51, %v2420_v52  ;;  %v2436_v61 = vmul.f32 %v3344_v51, %v3344_v51  ;;  %v2442_v62 = vadd.f32 %v2441_v50, %v2435_v49  ;;  %v2481_v63 = vmul.f32 %v1492_v55, %v1492_v55 }
 0x187   : > { %2417 = vst [vmem:[%s3997_s28 + $0x38] sm:$0xff] %v3345_v57  ;;  %v2467_v0 = vadd.f32 %v3241_v36, %v2466_v58  ;;  %v3346_v1 = vadd.f32 %v2390_v59, %v3985_v13  ;;  %v2438_v10 = vmul.f32 %v3343_v43, %v3343_v43  ;;  %v2439_v15 = vmul.f32 %v3345_v57, %v3345_v57 }
 0x188   : > { %v2443_v3 = vadd.f32 %v2442_v62, %v2436_v61  ;;  %v2488_v4 = vadd.f32 %v2487_v56, %v2481_v63 }
 0x189   : > { %v2468_v5 = vadd.f32 %v3242_v48, %v2467_v0  ;;  %2415 = vst [vmem:[%s3997_s28 + $0x28] sm:$0xff] %v3346_v1  ;;  %v2422_v6 = vadd.f32 %v3346_v1, %v2421_v60  ;;  %v2437_v7 = vmul.f32 %v3346_v1, %v3346_v1 }
 0x18a   : > { %v2489_v9 = vadd.f32 %v2488_v4, %v2482_v2 }
 0x18b   : > { %v2469_v11 = vrot.slane %v2468_v5, 4  ;;  %v2423_v12 = vadd.f32 %v3343_v43, %v2422_v6  ;;  %v2444_v53 = vadd.f32 %v2443_v3, %v2437_v7 }
 0x18c   : > { %v2490_v14 = vadd.f32 %v2489_v9, %v2483_v8 }
 0x18d   : > { %v2470_v16 = vadd.f32 %v2469_v11, %v2468_v5  ;;  %v2424_v17 = vadd.f32 %v3345_v57, %v2423_v12  ;;  %v2445_v18 = vadd.f32 %v2444_v53, %v2438_v10 }
 0x18e   : > { %v2491_v13 = vrot.slane %v2490_v14, 4 }
 0x18f   : > { %v2471_v19 = vrot.slane %v2470_v16, 2  ;;  %v2425_v20 = vrot.slane %v2424_v17, 4  ;;  %v2446_v21 = vadd.f32 %v2445_v18, %v2439_v15 }
 0x190   : > { %v2492_v22 = vadd.f32 %v2491_v13, %v2490_v14 }
 0x191   : > { %v2472_v23 = vadd.f32 %v2471_v19, %v2470_v16  ;;  %v2426_v24 = vadd.f32 %v2425_v20, %v2424_v17  ;;  %v2447_v25 = vrot.slane %v2446_v21, 4 }
 0x192   : > { %v2493_v26 = vrot.slane %v2492_v22, 2 }
 0x193   : > { %v2473_v27 = vrot.slane %v2472_v23, 1  ;;  %v2427_v28 = vrot.slane %v2426_v24, 2  ;;  %v2448_v29 = vadd.f32 %v2447_v25, %v2446_v21 }
 0x194   : > { %v2494_v30 = vadd.f32 %v2493_v26, %v2492_v22 }
 0x195   : > { %v2474_v31 = vadd.f32 %v2473_v27, %v2472_v23  ;;  %v2428_v32 = vadd.f32 %v2427_v28, %v2426_v24  ;;  %v2449_v33 = vrot.slane %v2448_v29, 2 }
 0x196   : > { %v2495_v34 = vrot.slane %v2494_v30, 1 }
 0x197   : > { %2475 = vst [vmem:[%s425_s14] sm:$0x1] %v2474_v31  ;;  %v2429_v35 = vrot.slane %v2428_v32, 1  ;;  %v2450_v36 = vadd.f32 %v2449_v33, %v2448_v29 }
 0x198   : > { %v2496_v37 = vadd.f32 %v2495_v34, %v2494_v30 }
 0x199   : > { %v2430_v38 = vadd.f32 %v2429_v35, %v2428_v32  ;;  %v2451_v39 = vrot.slane %v2450_v36, 1 }
 0x19a   : > { %2497 = vst [vmem:[%s425_s14 + $0x1] sm:$0x1] %v2496_v37 }
 0x19b   : > { %2431 = vst [vmem:[%s416_s18] sm:$0x1] %v2430_v38  ;;  %v2452_v40 = vadd.f32 %v2451_v39, %v2450_v36 }
 0x19d   : > { %2453 = vst [vmem:[%s416_s18 + $0x1] sm:$0x1] %v2452_v40 }
 0x19e PF: > { %s20_s30 = sadd.s32 1, %s3526_s30  }
 0x19f   : > { %p17_p4 = scmp.ge.s32.totalorder %s20_s30, 4  }
 0x1a1   :  { %19 = sbr.rel (!%p17_p4) target bundleno = 1 (0x1), region = 129 }

</bundles_post_ra>
